<compile_context>
chip_gen: v5e
topology: v5e:2x2
jax: 0.10.0
libtpu: 0.0.40
codegen_flags: <defaults>
</compile_context>

<pallas_src>
import numpy as np
import jax
import jax.numpy as jnp
from jax.experimental import pallas as pl
from jax.experimental.pallas import tpu as pltpu


# ---------------------------------------------------------------------------
# Helpers
# ---------------------------------------------------------------------------
def _round_up(x, m):
    return ((x + m - 1) // m) * m


def _padded_block_bytes(shape, dtype):
    """VMEM bytes of a block after (sublane, lane) tile padding of the last 2 dims."""
    dt = jnp.dtype(dtype)
    sub = 16 if dt.itemsize == 2 else 8
    dims = list(shape)
    if len(dims) == 1:
        dims = [1] + dims
    lead = int(np.prod(dims[:-2])) if len(dims) > 2 else 1
    return int(lead * _round_up(dims[-2], sub) * _round_up(dims[-1], 128) * dt.itemsize)


def _pick_th(B, H, block_bytes_fn, budget=6 << 20):
    """Largest divisor of H whose in/out blocks stay under `budget`; keep >= 2
    grid steps when possible (so v7x megacore has something to split)."""
    th = 1
    for cand in range(1, H + 1):
        if H % cand == 0 and block_bytes_fn(cand) <= budget:
            th = cand
    if B * (H // th) == 1:
        for cand in range(th - 1, 0, -1):
            if H % cand == 0 and H // cand >= 2:
                th = cand
                break
    return th


def _vmem_limit_bytes(blocks):
    """Tight VMEM limit from real (padded) block sizes: double buffering + slack."""
    tot = sum(_padded_block_bytes(s, d) for s, d in blocks)
    return int(min(max(2 * tot + (4 << 20), 8 << 20), 64 << 20))


# ---------------------------------------------------------------------------
# Pallas kernels: fused (concat ->) ConvTranspose2d(kernel==stride) -> shuffle
# x/a/p blocks: (1, th, W, C) bf16;  weights: (k, C, k*Cout) bf16, columns (dx, o)
# bias: (k, 1, k*Cout) f32;  out block: (1, th, k, W, k*Cout)
# ---------------------------------------------------------------------------
def _up_single_kernel(x_ref, w_ref, b_ref, o_ref):
    k = w_ref.shape[0]
    _, th, W, cin = x_ref.shape
    n = o_ref.shape[4]
    xm = x_ref[...].reshape(th * W, cin)
    for dy in range(k):
        acc = jnp.dot(xm, w_ref[dy], preferred_element_type=jnp.float32)
        acc = acc + b_ref[dy]
        # (th*W, k*Cout) -> (th, W, k*Cout): leading-dim split only (free), then a
        # dense store of the dy-th upsampled row group.
        o_ref[0, :, dy, :, :] = acc.astype(o_ref.dtype).reshape(th, W, n)


def _up_concat_kernel(a_ref, p_ref, wa_ref, wb_ref, b_ref, o_ref):
    # Concat-fused: dot(a, Wa) + dot(p, Wb); the concatenated tensor never exists.
    k = wa_ref.shape[0]
    _, th, W, ca = a_ref.shape
    cb = p_ref.shape[3]
    n = o_ref.shape[4]
    am = a_ref[...].reshape(th * W, ca)
    pm = p_ref[...].reshape(th * W, cb)
    for dy in range(k):
        acc = jnp.dot(am, wa_ref[dy], preferred_element_type=jnp.float32)
        acc = acc + jnp.dot(pm, wb_ref[dy], preferred_element_type=jnp.float32)
        acc = acc + b_ref[dy]
        o_ref[0, :, dy, :, :] = acc.astype(o_ref.dtype).reshape(th, W, n)


# ---------------------------------------------------------------------------
# Layer wrapper
# ---------------------------------------------------------------------------
def _upsample(acts, weights, bias, out_dtype):
    """Fused (optional concat) + ConvTranspose2d(kernel==stride==k) + pixel shuffle.

    acts    : list of (B, H, W, C_i) bf16 activations sharing (B, H, W).
    weights : list of (k, C_i, k*Cout) bf16, column order (dx, o).
    bias    : (k, 1, k*Cout) f32.
    Returns (B, H*k, W*k, Cout): a free contiguous reshape of the kernel output.
    """
    B, H, W, _ = acts[0].shape
    k, _, n = weights[0].shape
    cout = n // k
    out_shape5 = (B, H, k, W, n)

    def blk_bytes(th):
        s = sum(_padded_block_bytes((1, th, W, a.shape[3]), a.dtype) for a in acts)
        return s + _padded_block_bytes((1, th, k, W, n), out_dtype)

    th = _pick_th(B, H, blk_bytes)
    grid = (B, H // th)

    in_specs = [pl.BlockSpec((1, th, W, a.shape[3]), lambda bb, i: (bb, i, 0, 0))
                for a in acts]
    in_specs += [pl.BlockSpec(w.shape, lambda bb, i: (0, 0, 0)) for w in weights]
    in_specs += [pl.BlockSpec(bias.shape, lambda bb, i: (0, 0, 0))]
    out_spec = pl.BlockSpec((1, th, k, W, n), lambda bb, i: (bb, i, 0, 0, 0))

    vmem = _vmem_limit_bytes(
        [((1, th, W, a.shape[3]), a.dtype) for a in acts]
        + [(w.shape, w.dtype) for w in weights]
        + [(bias.shape, bias.dtype), ((1, th, k, W, n), out_dtype)])

    kernel = _up_single_kernel if len(acts) == 1 else _up_concat_kernel
    out = pl.pallas_call(
        kernel,
        out_shape=jax.ShapeDtypeStruct(out_shape5, out_dtype),
        grid=grid,
        in_specs=in_specs,
        out_specs=out_spec,
        compiler_params=pltpu.CompilerParams(
            dimension_semantics=("parallel", "parallel"),
            vmem_limit_bytes=vmem),
    )(*acts, *weights, bias)
    # (B, H, k, W, k*Cout) -> (B, H*k, W*k, Cout): contiguous row-major => free.
    return out.reshape(B, H * k, W * k, cout)


# ---------------------------------------------------------------------------
# One-time weight preprocessing (hoisted out of the jitted forward)
# ---------------------------------------------------------------------------
def _convT_weight_per_dy(w):
    """ConvTranspose2d weight (Cin, Cout, k, k) -> (k, Cin, k*Cout); columns (dx, o)."""
    cin, cout, k, _ = w.shape
    return jnp.transpose(w, (2, 0, 3, 1)).reshape(k, cin, k * cout)


def prepare_params(params, channels, kernels, strides):
    k0, k1, k2, k3 = kernels
    s0, s1, s2, s3 = strides
    # TODO(synk): general Conv2d (kernel > 1) and ConvTranspose2d with
    # kernel != stride or padding are not implemented (TableNet config only).
    assert k0 == 1 and s0 == 1, "conv_7_table must be 1x1 / stride 1"
    assert (k1, k2, k3) == (s1, s2, s3), "ConvTranspose2d requires kernel_size == stride"

    # Fold conv_7 (1x1) into upsample_1 (valid: nothing between them in forward()).
    w7 = params["conv7_w"][:, :, 0, 0].T.astype(jnp.float32)          # [c, m] = W7[m, c]
    w1dy = _convT_weight_per_dy(params["up1_w"]).astype(jnp.float32)   # (k1, 256, k1*128)
    w1f = jnp.einsum("cm,dmn->dcn", w7, w1dy)
    b1f = (jnp.einsum("m,dmn->dn", params["conv7_b"].astype(jnp.float32), w1dy)
           + jnp.tile(params["up1_b"].astype(jnp.float32), k1)[None, :])[:, None, :]

    w2dy = _convT_weight_per_dy(params["up2_w"])                        # (k2, 128+c4, k2*256)
    n2 = w2dy.shape[-1]
    b2 = jnp.broadcast_to(jnp.tile(params["up2_b"], k2)[None, None, :], (k2, 1, n2))

    w3dy = _convT_weight_per_dy(params["up3_w"])                        # (k3, 256+c3, k3*1)
    n3 = w3dy.shape[-1]
    b3 = jnp.broadcast_to(jnp.tile(params["up3_b"], k3)[None, None, :], (k3, 1, n3))

    bf16 = jnp.bfloat16
    return {
        "w1": w1f.astype(bf16), "b1": b1f.astype(jnp.float32),
        "wa2": w2dy[:, :128].astype(bf16), "wb2": w2dy[:, 128:].astype(bf16),
        "b2": b2.astype(jnp.float32),
        "wa3": w3dy[:, :256].astype(bf16), "wb3": w3dy[:, 256:].astype(bf16),
        "b3": b3.astype(jnp.float32),
    }


# ---------------------------------------------------------------------------
# Forward (NCHW in / NCHW out, matching the PyTorch module)
# ---------------------------------------------------------------------------
def table_decoder_forward(prepared, x, pool_3_out, pool_4_out):
    bf16 = jnp.bfloat16
    # NCHW -> NHWC with the bf16 cast fused into the same XLA copy (one HBM pass).
    # TODO(synk): read the NCHW skips directly inside the kernel to drop this pass.
    xh = jnp.transpose(x, (0, 2, 3, 1)).astype(bf16)
    p3 = jnp.transpose(pool_3_out, (0, 2, 3, 1)).astype(bf16)
    p4 = jnp.transpose(pool_4_out, (0, 2, 3, 1)).astype(bf16)

    h = _upsample([xh], [prepared["w1"]], prepared["b1"], jnp.bfloat16)          # conv7+up1
    h = _upsample([h, p4], [prepared["wa2"], prepared["wb2"]], prepared["b2"],
                  jnp.bfloat16)                                                  # cat + up2
    out = _upsample([h, p3], [prepared["wa3"], prepared["wb3"]], prepared["b3"],
                    jnp.float32)                                                 # cat + up3
    # (B, 8H, 8W, 1) -> (B, 1, 8H, 8W): C == 1, so this is a pure reshape.
    B, Ho, Wo, _ = out.shape
    return out.reshape(B, 1, Ho, Wo)


# ---------------------------------------------------------------------------
# Pure-JAX f32 reference (independent einsum formulation, no folding)
# ---------------------------------------------------------------------------
def reference_forward(params, x, pool_3_out, pool_4_out, kernels):
    x = jnp.transpose(x, (0, 2, 3, 1))
    p3 = jnp.transpose(pool_3_out, (0, 2, 3, 1))
    p4 = jnp.transpose(pool_4_out, (0, 2, 3, 1))

    def ct_ref(xin, w, b, k):
        B, H, W, _ = xin.shape
        cout = w.shape[1]
        y = jnp.einsum("nijc,coyx->niyjxo", xin, w) + b
        return y.reshape(B, H * k, W * k, cout)

    h = jnp.einsum("nijc,oc->nijo", x, params["conv7_w"][:, :, 0, 0]) + params["conv7_b"]
    out = ct_ref(h, params["up1_w"], params["up1_b"], kernels[1])
    out = jnp.concatenate([out, p4], axis=-1)
    out = ct_ref(out, params["up2_w"], params["up2_b"], kernels[2])
    out = jnp.concatenate([out, p3], axis=-1)
    out = ct_ref(out, params["up3_w"], params["up3_b"], kernels[3])
    return jnp.transpose(out, (0, 3, 1, 2))


# ---------------------------------------------------------------------------
# Deterministic parameter init (shapes from TableDecoder.__init__)
# ---------------------------------------------------------------------------
def init_params(key, channels, kernels):
    ks = jax.random.split(key, 8)

    def u(k, shape, fan_in):
        bound = 1.0 / np.sqrt(fan_in)
        return jax.random.uniform(k, shape, jnp.float32, -bound, bound)

    k0, k1, k2, k3 = kernels
    c2_in = 128 + channels[0]
    c3_in = 256 + channels[1]
    return {
        # Conv2d weight layout: [Cout, Cin, kH, kW]
        "conv7_w": u(ks[0], (256, 256, k0, k0), 256 * k0 * k0),
        "conv7_b": u(ks[1], (256,), 256 * k0 * k0),
        # ConvTranspose2d weight layout: [Cin, Cout, kH, kW]
        "up1_w": u(ks[2], (256, 128, k1, k1), 256 * k1 * k1),
        "up1_b": u(ks[3], (128,), 256 * k1 * k1),
        "up2_w": u(ks[4], (c2_in, 256, k2, k2), c2_in * k2 * k2),
        "up2_b": u(ks[5], (256,), c2_in * k2 * k2),
        "up3_w": u(ks[6], (c3_in, 1, k3, k3), c3_in * k3 * k3),
        "up3_b": u(ks[7], (1,), c3_in * k3 * k3),
    }


if __name__ == "__main__":
    # Small TableNet-like configuration: kernel_size == stride everywhere.
    channels = [64, 32]          # [pool_4 channels, pool_3 channels]
    kernels = (1, 2, 2, 2)
    strides = (1, 2, 2, 2)
    B, H0, W0 = 2, 4, 4

    key = jax.random.PRNGKey(0)
    kp, kx, k4, k3k = jax.random.split(key, 4)
    params = init_params(kp, channels, kernels)

    x = jax.random.normal(kx, (B, 256, H0, W0), jnp.float32)
    pool_4_out = jax.random.normal(k4, (B, channels[0], 2 * H0, 2 * W0), jnp.float32)
    pool_3_out = jax.random.normal(k3k, (B, channels[1], 4 * H0, 4 * W0), jnp.float32)

    # One-time weight preprocessing (outside the jitted forward).
    prepared = prepare_params(params, channels, kernels, strides)

    fwd = jax.jit(table_decoder_forward)
    out = jax.block_until_ready(fwd(prepared, x, pool_3_out, pool_4_out))

    ref = jax.block_until_ready(
        reference_forward(params, x, pool_3_out, pool_4_out, kernels))

    assert out.shape == (B, 1, 8 * H0, 8 * W0), out.shape
    # bf16 activations/weights with f32 accumulation -> small relative error.
    if not np.allclose(np.asarray(out), np.asarray(ref), rtol=5e-2, atol=2e-2):
        diff = np.max(np.abs(np.asarray(out) - np.asarray(ref)))
        raise AssertionError(
            f"Pallas TableDecoder output mismatch vs reference (max |diff|={diff})")

    print("KERNEL_OK")
</pallas_src>

<mosaic_0001>
module attributes {stable_mosaic.version = 11 : i64} {
  func.func @_up_single_kernel(%arg0: i32, %arg1: i32, %arg2: memref<1x4x4x256xbf16, #tpu.memory_space<vmem>>, %arg3: memref<2x256x256xbf16, #tpu.memory_space<vmem>>, %arg4: memref<2x1x256xf32, #tpu.memory_space<vmem>>, %arg5: memref<1x4x2x4x256xbf16, #tpu.memory_space<vmem>>) attributes {dimension_semantics = [#tpu.dimension_semantics<parallel>, #tpu.dimension_semantics<parallel>], iteration_bounds = array<i64: 2, 1>, scalar_prefetch = 0 : i64, scratch_operands = 0 : i64, tpu.core_type = #tpu.core_type<tc>, window_params = [{transform_indices = @transform_0, window_bounds = array<i64: 1, 4, 4, 256>}, {pipeline_mode = #tpu.pipeline_mode<synchronous>, transform_indices = @transform_1, window_bounds = array<i64: 2, 256, 256>}, {pipeline_mode = #tpu.pipeline_mode<synchronous>, transform_indices = @transform_2, window_bounds = array<i64: 2, 1, 256>}, {transform_indices = @transform_3, window_bounds = array<i64: 1, 4, 2, 4, 256>}]} {
    %c0 = arith.constant 0 : index
    %c0_0 = arith.constant 0 : index
    %c0_1 = arith.constant 0 : index
    %c0_2 = arith.constant 0 : index
    %0 = vector.load %arg2[%c0, %c0_0, %c0_1, %c0_2] : memref<1x4x4x256xbf16, #tpu.memory_space<vmem>>, vector<1x4x4x256xbf16>
    %1 = vector.shape_cast %0 : vector<1x4x4x256xbf16> to vector<16x256xbf16>
    %c0_3 = arith.constant 0 : index
    %c0_4 = arith.constant 0 : index
    %c0_5 = arith.constant 0 : index
    %2 = vector.load %arg3[%c0_3, %c0_4, %c0_5] : memref<2x256x256xbf16, #tpu.memory_space<vmem>>, vector<1x256x256xbf16>
    %3 = vector.shape_cast %2 : vector<1x256x256xbf16> to vector<256x256xbf16>
    %cst = arith.constant dense<0.000000e+00> : vector<16x256xf32>
    %4 = tpu.matmul %1, %3, %cst {dimension_numbers = #tpu.dot_dimension_numbers<[1], [0], [0], [1], [0, 0, 1, 1], [], []>} : vector<16x256xbf16>, vector<256x256xbf16>, vector<16x256xf32> -> vector<16x256xf32>
    %c0_6 = arith.constant 0 : index
    %c0_7 = arith.constant 0 : index
    %c0_8 = arith.constant 0 : index
    %5 = vector.load %arg4[%c0_6, %c0_7, %c0_8] : memref<2x1x256xf32, #tpu.memory_space<vmem>>, vector<1x1x256xf32>
    %6 = vector.shape_cast %5 : vector<1x1x256xf32> to vector<1x256xf32>
    %7 = vector.broadcast %6 : vector<1x256xf32> to vector<16x256xf32>
    %8 = arith.addf %4, %7 : vector<16x256xf32>
    %9 = arith.truncf %8 : vector<16x256xf32> to vector<16x256xbf16>
    %10 = vector.shape_cast %9 : vector<16x256xbf16> to vector<4x4x256xbf16>
    %c0_9 = arith.constant 0 : index
    %c0_10 = arith.constant 0 : index
    %c0_11 = arith.constant 0 : index
    %c0_12 = arith.constant 0 : index
    %c0_13 = arith.constant 0 : index
    %11 = vector.load %arg5[%c0_9, %c0_10, %c0_11, %c0_12, %c0_13] : memref<1x4x2x4x256xbf16, #tpu.memory_space<vmem>>, vector<1x4x1x4x256xbf16>
    %12 = vector.shape_cast %11 : vector<1x4x1x4x256xbf16> to vector<4x4x256xbf16>
    %13 = vector.shape_cast %10 : vector<4x4x256xbf16> to vector<1x4x1x4x256xbf16>
    tpu.vector_store %arg5[%c0_9, %c0_10, %c0_11, %c0_12, %c0_13], %13 {strides = array<i32>} : memref<1x4x2x4x256xbf16, #tpu.memory_space<vmem>>, vector<1x4x1x4x256xbf16>,
    %c1 = arith.constant 1 : index
    %c0_14 = arith.constant 0 : index
    %c0_15 = arith.constant 0 : index
    %14 = vector.load %arg3[%c1, %c0_14, %c0_15] : memref<2x256x256xbf16, #tpu.memory_space<vmem>>, vector<1x256x256xbf16>
    %15 = vector.shape_cast %14 : vector<1x256x256xbf16> to vector<256x256xbf16>
    %cst_16 = arith.constant dense<0.000000e+00> : vector<16x256xf32>
    %16 = tpu.matmul %1, %15, %cst_16 {dimension_numbers = #tpu.dot_dimension_numbers<[1], [0], [0], [1], [0, 0, 1, 1], [], []>} : vector<16x256xbf16>, vector<256x256xbf16>, vector<16x256xf32> -> vector<16x256xf32>
    %c1_17 = arith.constant 1 : index
    %c0_18 = arith.constant 0 : index
    %c0_19 = arith.constant 0 : index
    %17 = vector.load %arg4[%c1_17, %c0_18, %c0_19] : memref<2x1x256xf32, #tpu.memory_space<vmem>>, vector<1x1x256xf32>
    %18 = vector.shape_cast %17 : vector<1x1x256xf32> to vector<1x256xf32>
    %19 = vector.broadcast %18 : vector<1x256xf32> to vector<16x256xf32>
    %20 = arith.addf %16, %19 : vector<16x256xf32>
    %21 = arith.truncf %20 : vector<16x256xf32> to vector<16x256xbf16>
    %22 = vector.shape_cast %21 : vector<16x256xbf16> to vector<4x4x256xbf16>
    %c0_20 = arith.constant 0 : index
    %c0_21 = arith.constant 0 : index
    %c1_22 = arith.constant 1 : index
    %c0_23 = arith.constant 0 : index
    %c0_24 = arith.constant 0 : index
    %23 = vector.load %arg5[%c0_20, %c0_21, %c1_22, %c0_23, %c0_24] : memref<1x4x2x4x256xbf16, #tpu.memory_space<vmem>>, vector<1x4x1x4x256xbf16>
    %24 = vector.shape_cast %23 : vector<1x4x1x4x256xbf16> to vector<4x4x256xbf16>
    %25 = vector.shape_cast %22 : vector<4x4x256xbf16> to vector<1x4x1x4x256xbf16>
    tpu.vector_store %arg5[%c0_20, %c0_21, %c1_22, %c0_23, %c0_24], %25 {strides = array<i32>} : memref<1x4x2x4x256xbf16, #tpu.memory_space<vmem>>, vector<1x4x1x4x256xbf16>,
    return
  }
  func.func @transform_0(%arg0: i32, %arg1: i32) -> (i32, i32, i32, i32) {
    %c0_i32 = arith.constant 0 : i32
    %c0_i32_0 = arith.constant 0 : i32
    %c0_i32_1 = arith.constant 0 : i32
    return %arg0, %arg1, %c0_i32, %c0_i32_0 : i32, i32, i32, i32
  }
  func.func @transform_1(%arg0: i32, %arg1: i32) -> (i32, i32, i32) {
    %c0_i32 = arith.constant 0 : i32
    %c0_i32_0 = arith.constant 0 : i32
    %c0_i32_1 = arith.constant 0 : i32
    %c0_i32_2 = arith.constant 0 : i32
    return %c0_i32, %c0_i32_0, %c0_i32_1 : i32, i32, i32
  }
  func.func @transform_2(%arg0: i32, %arg1: i32) -> (i32, i32, i32) {
    %c0_i32 = arith.constant 0 : i32
    %c0_i32_0 = arith.constant 0 : i32
    %c0_i32_1 = arith.constant 0 : i32
    %c0_i32_2 = arith.constant 0 : i32
    return %c0_i32, %c0_i32_0, %c0_i32_1 : i32, i32, i32
  }
  func.func @transform_3(%arg0: i32, %arg1: i32) -> (i32, i32, i32, i32, i32) {
    %c0_i32 = arith.constant 0 : i32
    %c0_i32_0 = arith.constant 0 : i32
    %c0_i32_1 = arith.constant 0 : i32
    %c0_i32_2 = arith.constant 0 : i32
    return %arg0, %arg1, %c0_i32, %c0_i32_0, %c0_i32_1 : i32, i32, i32, i32, i32
  }
}

module attributes {stable_mosaic.version = 11 : i64} {
  func.func @_up_concat_kernel(%arg0: i32, %arg1: i32, %arg2: memref<1x8x8x128xbf16, #tpu.memory_space<vmem>>, %arg3: memref<1x8x8x64xbf16, #tpu.memory_space<vmem>>, %arg4: memref<2x128x512xbf16, #tpu.memory_space<vmem>>, %arg5: memref<2x64x512xbf16, #tpu.memory_space<vmem>>, %arg6: memref<2x1x512xf32, #tpu.memory_space<vmem>>, %arg7: memref<1x8x2x8x512xbf16, #tpu.memory_space<vmem>>) attributes {dimension_semantics = [#tpu.dimension_semantics<parallel>, #tpu.dimension_semantics<parallel>], iteration_bounds = array<i64: 2, 1>, scalar_prefetch = 0 : i64, scratch_operands = 0 : i64, tpu.core_type = #tpu.core_type<tc>, window_params = [{transform_indices = @transform_0, window_bounds = array<i64: 1, 8, 8, 128>}, {transform_indices = @transform_1, window_bounds = array<i64: 1, 8, 8, 64>}, {pipeline_mode = #tpu.pipeline_mode<synchronous>, transform_indices = @transform_2, window_bounds = array<i64: 2, 128, 512>}, {pipeline_mode = #tpu.pipeline_mode<synchronous>, transform_indices = @transform_3, window_bounds = array<i64: 2, 64, 512>}, {pipeline_mode = #tpu.pipeline_mode<synchronous>, transform_indices = @transform_4, window_bounds = array<i64: 2, 1, 512>}, {transform_indices = @transform_5, window_bounds = array<i64: 1, 8, 2, 8, 512>}]} {
    %c0 = arith.constant 0 : index
    %c0_0 = arith.constant 0 : index
    %c0_1 = arith.constant 0 : index
    %c0_2 = arith.constant 0 : index
    %0 = vector.load %arg2[%c0, %c0_0, %c0_1, %c0_2] : memref<1x8x8x128xbf16, #tpu.memory_space<vmem>>, vector<1x8x8x128xbf16>
    %1 = vector.shape_cast %0 : vector<1x8x8x128xbf16> to vector<64x128xbf16>
    %c0_3 = arith.constant 0 : index
    %c0_4 = arith.constant 0 : index
    %c0_5 = arith.constant 0 : index
    %c0_6 = arith.constant 0 : index
    %2 = vector.load %arg3[%c0_3, %c0_4, %c0_5, %c0_6] : memref<1x8x8x64xbf16, #tpu.memory_space<vmem>>, vector<1x8x8x64xbf16>
    %3 = vector.shape_cast %2 : vector<1x8x8x64xbf16> to vector<64x64xbf16>
    %c0_7 = arith.constant 0 : index
    %c0_8 = arith.constant 0 : index
    %c0_9 = arith.constant 0 : index
    %4 = vector.load %arg4[%c0_7, %c0_8, %c0_9] : memref<2x128x512xbf16, #tpu.memory_space<vmem>>, vector<1x128x512xbf16>
    %5 = vector.shape_cast %4 : vector<1x128x512xbf16> to vector<128x512xbf16>
    %cst = arith.constant dense<0.000000e+00> : vector<64x512xf32>
    %6 = tpu.matmul %1, %5, %cst {dimension_numbers = #tpu.dot_dimension_numbers<[1], [0], [0], [1], [0, 0, 1, 1], [], []>} : vector<64x128xbf16>, vector<128x512xbf16>, vector<64x512xf32> -> vector<64x512xf32>
    %c0_10 = arith.constant 0 : index
    %c0_11 = arith.constant 0 : index
    %c0_12 = arith.constant 0 : index
    %7 = vector.load %arg5[%c0_10, %c0_11, %c0_12] : memref<2x64x512xbf16, #tpu.memory_space<vmem>>, vector<1x64x512xbf16>
    %8 = vector.shape_cast %7 : vector<1x64x512xbf16> to vector<64x512xbf16>
    %cst_13 = arith.constant dense<0.000000e+00> : vector<64x512xf32>
    %9 = tpu.matmul %3, %8, %cst_13 {dimension_numbers = #tpu.dot_dimension_numbers<[1], [0], [0], [1], [0, 0, 1, 1], [], []>} : vector<64x64xbf16>, vector<64x512xbf16>, vector<64x512xf32> -> vector<64x512xf32>
    %10 = arith.addf %6, %9 : vector<64x512xf32>
    %c0_14 = arith.constant 0 : index
    %c0_15 = arith.constant 0 : index
    %c0_16 = arith.constant 0 : index
    %11 = vector.load %arg6[%c0_14, %c0_15, %c0_16] : memref<2x1x512xf32, #tpu.memory_space<vmem>>, vector<1x1x512xf32>
    %12 = vector.shape_cast %11 : vector<1x1x512xf32> to vector<1x512xf32>
    %13 = vector.broadcast %12 : vector<1x512xf32> to vector<64x512xf32>
    %14 = arith.addf %10, %13 : vector<64x512xf32>
    %15 = arith.truncf %14 : vector<64x512xf32> to vector<64x512xbf16>
    %16 = vector.shape_cast %15 : vector<64x512xbf16> to vector<8x8x512xbf16>
    %c0_17 = arith.constant 0 : index
    %c0_18 = arith.constant 0 : index
    %c0_19 = arith.constant 0 : index
    %c0_20 = arith.constant 0 : index
    %c0_21 = arith.constant 0 : index
    %17 = vector.load %arg7[%c0_17, %c0_18, %c0_19, %c0_20, %c0_21] : memref<1x8x2x8x512xbf16, #tpu.memory_space<vmem>>, vector<1x8x1x8x512xbf16>
    %18 = vector.shape_cast %17 : vector<1x8x1x8x512xbf16> to vector<8x8x512xbf16>
    %19 = vector.shape_cast %16 : vector<8x8x512xbf16> to vector<1x8x1x8x512xbf16>
    tpu.vector_store %arg7[%c0_17, %c0_18, %c0_19, %c0_20, %c0_21], %19 {strides = array<i32>} : memref<1x8x2x8x512xbf16, #tpu.memory_space<vmem>>, vector<1x8x1x8x512xbf16>,
    %c1 = arith.constant 1 : index
    %c0_22 = arith.constant 0 : index
    %c0_23 = arith.constant 0 : index
    %20 = vector.load %arg4[%c1, %c0_22, %c0_23] : memref<2x128x512xbf16, #tpu.memory_space<vmem>>, vector<1x128x512xbf16>
    %21 = vector.shape_cast %20 : vector<1x128x512xbf16> to vector<128x512xbf16>
    %cst_24 = arith.constant dense<0.000000e+00> : vector<64x512xf32>
    %22 = tpu.matmul %1, %21, %cst_24 {dimension_numbers = #tpu.dot_dimension_numbers<[1], [0], [0], [1], [0, 0, 1, 1], [], []>} : vector<64x128xbf16>, vector<128x512xbf16>, vector<64x512xf32> -> vector<64x512xf32>
    %c1_25 = arith.constant 1 : index
    %c0_26 = arith.constant 0 : index
    %c0_27 = arith.constant 0 : index
    %23 = vector.load %arg5[%c1_25, %c0_26, %c0_27] : memref<2x64x512xbf16, #tpu.memory_space<vmem>>, vector<1x64x512xbf16>
    %24 = vector.shape_cast %23 : vector<1x64x512xbf16> to vector<64x512xbf16>
    %cst_28 = arith.constant dense<0.000000e+00> : vector<64x512xf32>
    %25 = tpu.matmul %3, %24, %cst_28 {dimension_numbers = #tpu.dot_dimension_numbers<[1], [0], [0], [1], [0, 0, 1, 1], [], []>} : vector<64x64xbf16>, vector<64x512xbf16>, vector<64x512xf32> -> vector<64x512xf32>
    %26 = arith.addf %22, %25 : vector<64x512xf32>
    %c1_29 = arith.constant 1 : index
    %c0_30 = arith.constant 0 : index
    %c0_31 = arith.constant 0 : index
    %27 = vector.load %arg6[%c1_29, %c0_30, %c0_31] : memref<2x1x512xf32, #tpu.memory_space<vmem>>, vector<1x1x512xf32>
    %28 = vector.shape_cast %27 : vector<1x1x512xf32> to vector<1x512xf32>
    %29 = vector.broadcast %28 : vector<1x512xf32> to vector<64x512xf32>
    %30 = arith.addf %26, %29 : vector<64x512xf32>
    %31 = arith.truncf %30 : vector<64x512xf32> to vector<64x512xbf16>
    %32 = vector.shape_cast %31 : vector<64x512xbf16> to vector<8x8x512xbf16>
    %c0_32 = arith.constant 0 : index
    %c0_33 = arith.constant 0 : index
    %c1_34 = arith.constant 1 : index
    %c0_35 = arith.constant 0 : index
    %c0_36 = arith.constant 0 : index
    %33 = vector.load %arg7[%c0_32, %c0_33, %c1_34, %c0_35, %c0_36] : memref<1x8x2x8x512xbf16, #tpu.memory_space<vmem>>, vector<1x8x1x8x512xbf16>
    %34 = vector.shape_cast %33 : vector<1x8x1x8x512xbf16> to vector<8x8x512xbf16>
    %35 = vector.shape_cast %32 : vector<8x8x512xbf16> to vector<1x8x1x8x512xbf16>
    tpu.vector_store %arg7[%c0_32, %c0_33, %c1_34, %c0_35, %c0_36], %35 {strides = array<i32>} : memref<1x8x2x8x512xbf16, #tpu.memory_space<vmem>>, vector<1x8x1x8x512xbf16>,
    return
  }
  func.func @transform_0(%arg0: i32, %arg1: i32) -> (i32, i32, i32, i32) {
    %c0_i32 = arith.constant 0 : i32
    %c0_i32_0 = arith.constant 0 : i32
    %c0_i32_1 = arith.constant 0 : i32
    return %arg0, %arg1, %c0_i32, %c0_i32_0 : i32, i32, i32, i32
  }
  func.func @transform_1(%arg0: i32, %arg1: i32) -> (i32, i32, i32, i32) {
    %c0_i32 = arith.constant 0 : i32
    %c0_i32_0 = arith.constant 0 : i32
    %c0_i32_1 = arith.constant 0 : i32
    return %arg0, %arg1, %c0_i32, %c0_i32_0 : i32, i32, i32, i32
  }
  func.func @transform_2(%arg0: i32, %arg1: i32) -> (i32, i32, i32) {
    %c0_i32 = arith.constant 0 : i32
    %c0_i32_0 = arith.constant 0 : i32
    %c0_i32_1 = arith.constant 0 : i32
    %c0_i32_2 = arith.constant 0 : i32
    return %c0_i32, %c0_i32_0, %c0_i32_1 : i32, i32, i32
  }
  func.func @transform_3(%arg0: i32, %arg1: i32) -> (i32, i32, i32) {
    %c0_i32 = arith.constant 0 : i32
    %c0_i32_0 = arith.constant 0 : i32
    %c0_i32_1 = arith.constant 0 : i32
    %c0_i32_2 = arith.constant 0 : i32
    return %c0_i32, %c0_i32_0, %c0_i32_1 : i32, i32, i32
  }
  func.func @transform_4(%arg0: i32, %arg1: i32) -> (i32, i32, i32) {
    %c0_i32 = arith.constant 0 : i32
    %c0_i32_0 = arith.constant 0 : i32
    %c0_i32_1 = arith.constant 0 : i32
    %c0_i32_2 = arith.constant 0 : i32
    return %c0_i32, %c0_i32_0, %c0_i32_1 : i32, i32, i32
  }
  func.func @transform_5(%arg0: i32, %arg1: i32) -> (i32, i32, i32, i32, i32) {
    %c0_i32 = arith.constant 0 : i32
    %c0_i32_0 = arith.constant 0 : i32
    %c0_i32_1 = arith.constant 0 : i32
    %c0_i32_2 = arith.constant 0 : i32
    return %arg0, %arg1, %c0_i32, %c0_i32_0, %c0_i32_1 : i32, i32, i32, i32, i32
  }
}

module attributes {stable_mosaic.version = 11 : i64} {
  func.func @_up_concat_kernel(%arg0: i32, %arg1: i32, %arg2: memref<1x16x16x256xbf16, #tpu.memory_space<vmem>>, %arg3: memref<1x16x16x32xbf16, #tpu.memory_space<vmem>>, %arg4: memref<2x256x2xbf16, #tpu.memory_space<vmem>>, %arg5: memref<2x32x2xbf16, #tpu.memory_space<vmem>>, %arg6: memref<2x1x2xf32, #tpu.memory_space<vmem>>, %arg7: memref<1x16x2x16x2xf32, #tpu.memory_space<vmem>>) attributes {dimension_semantics = [#tpu.dimension_semantics<parallel>, #tpu.dimension_semantics<parallel>], iteration_bounds = array<i64: 2, 1>, scalar_prefetch = 0 : i64, scratch_operands = 0 : i64, tpu.core_type = #tpu.core_type<tc>, window_params = [{transform_indices = @transform_0, window_bounds = array<i64: 1, 16, 16, 256>}, {transform_indices = @transform_1, window_bounds = array<i64: 1, 16, 16, 32>}, {pipeline_mode = #tpu.pipeline_mode<synchronous>, transform_indices = @transform_2, window_bounds = array<i64: 2, 256, 2>}, {pipeline_mode = #tpu.pipeline_mode<synchronous>, transform_indices = @transform_3, window_bounds = array<i64: 2, 32, 2>}, {pipeline_mode = #tpu.pipeline_mode<synchronous>, transform_indices = @transform_4, window_bounds = array<i64: 2, 1, 2>}, {transform_indices = @transform_5, window_bounds = array<i64: 1, 16, 2, 16, 2>}]} {
    %c0 = arith.constant 0 : index
    %c0_0 = arith.constant 0 : index
    %c0_1 = arith.constant 0 : index
    %c0_2 = arith.constant 0 : index
    %0 = vector.load %arg2[%c0, %c0_0, %c0_1, %c0_2] : memref<1x16x16x256xbf16, #tpu.memory_space<vmem>>, vector<1x16x16x256xbf16>
    %1 = vector.shape_cast %0 : vector<1x16x16x256xbf16> to vector<256x256xbf16>
    %c0_3 = arith.constant 0 : index
    %c0_4 = arith.constant 0 : index
    %c0_5 = arith.constant 0 : index
    %c0_6 = arith.constant 0 : index
    %2 = vector.load %arg3[%c0_3, %c0_4, %c0_5, %c0_6] : memref<1x16x16x32xbf16, #tpu.memory_space<vmem>>, vector<1x16x16x32xbf16>
    %3 = vector.shape_cast %2 : vector<1x16x16x32xbf16> to vector<256x32xbf16>
    %c0_7 = arith.constant 0 : index
    %c0_8 = arith.constant 0 : index
    %c0_9 = arith.constant 0 : index
    %4 = vector.load %arg4[%c0_7, %c0_8, %c0_9] : memref<2x256x2xbf16, #tpu.memory_space<vmem>>, vector<1x256x2xbf16>
    %5 = vector.shape_cast %4 : vector<1x256x2xbf16> to vector<256x2xbf16>
    %cst = arith.constant dense<0.000000e+00> : vector<256x2xf32>
    %6 = tpu.matmul %1, %5, %cst {dimension_numbers = #tpu.dot_dimension_numbers<[1], [0], [0], [1], [0, 0, 1, 1], [], []>} : vector<256x256xbf16>, vector<256x2xbf16>, vector<256x2xf32> -> vector<256x2xf32>
    %c0_10 = arith.constant 0 : index
    %c0_11 = arith.constant 0 : index
    %c0_12 = arith.constant 0 : index
    %7 = vector.load %arg5[%c0_10, %c0_11, %c0_12] : memref<2x32x2xbf16, #tpu.memory_space<vmem>>, vector<1x32x2xbf16>
    %8 = vector.shape_cast %7 : vector<1x32x2xbf16> to vector<32x2xbf16>
    %cst_13 = arith.constant dense<0.000000e+00> : vector<256x2xf32>
    %9 = tpu.matmul %3, %8, %cst_13 {dimension_numbers = #tpu.dot_dimension_numbers<[1], [0], [0], [1], [0, 0, 1, 1], [], []>} : vector<256x32xbf16>, vector<32x2xbf16>, vector<256x2xf32> -> vector<256x2xf32>
    %10 = arith.addf %6, %9 : vector<256x2xf32>
    %c0_14 = arith.constant 0 : index
    %c0_15 = arith.constant 0 : index
    %c0_16 = arith.constant 0 : index
    %11 = vector.load %arg6[%c0_14, %c0_15, %c0_16] : memref<2x1x2xf32, #tpu.memory_space<vmem>>, vector<1x1x2xf32>
    %12 = vector.shape_cast %11 : vector<1x1x2xf32> to vector<1x2xf32>
    %13 = vector.broadcast %12 : vector<1x2xf32> to vector<256x2xf32>
    %14 = arith.addf %10, %13 : vector<256x2xf32>
    %15 = vector.shape_cast %14 : vector<256x2xf32> to vector<16x16x2xf32>
    %c0_17 = arith.constant 0 : index
    %c0_18 = arith.constant 0 : index
    %c0_19 = arith.constant 0 : index
    %c0_20 = arith.constant 0 : index
    %c0_21 = arith.constant 0 : index
    %16 = vector.load %arg7[%c0_17, %c0_18, %c0_19, %c0_20, %c0_21] : memref<1x16x2x16x2xf32, #tpu.memory_space<vmem>>, vector<1x16x1x16x2xf32>
    %17 = vector.shape_cast %16 : vector<1x16x1x16x2xf32> to vector<16x16x2xf32>
    %18 = vector.shape_cast %15 : vector<16x16x2xf32> to vector<1x16x1x16x2xf32>
    tpu.vector_store %arg7[%c0_17, %c0_18, %c0_19, %c0_20, %c0_21], %18 {strides = array<i32>} : memref<1x16x2x16x2xf32, #tpu.memory_space<vmem>>, vector<1x16x1x16x2xf32>,
    %c1 = arith.constant 1 : index
    %c0_22 = arith.constant 0 : index
    %c0_23 = arith.constant 0 : index
    %19 = vector.load %arg4[%c1, %c0_22, %c0_23] : memref<2x256x2xbf16, #tpu.memory_space<vmem>>, vector<1x256x2xbf16>
    %20 = vector.shape_cast %19 : vector<1x256x2xbf16> to vector<256x2xbf16>
    %cst_24 = arith.constant dense<0.000000e+00> : vector<256x2xf32>
    %21 = tpu.matmul %1, %20, %cst_24 {dimension_numbers = #tpu.dot_dimension_numbers<[1], [0], [0], [1], [0, 0, 1, 1], [], []>} : vector<256x256xbf16>, vector<256x2xbf16>, vector<256x2xf32> -> vector<256x2xf32>
    %c1_25 = arith.constant 1 : index
    %c0_26 = arith.constant 0 : index
    %c0_27 = arith.constant 0 : index
    %22 = vector.load %arg5[%c1_25, %c0_26, %c0_27] : memref<2x32x2xbf16, #tpu.memory_space<vmem>>, vector<1x32x2xbf16>
    %23 = vector.shape_cast %22 : vector<1x32x2xbf16> to vector<32x2xbf16>
    %cst_28 = arith.constant dense<0.000000e+00> : vector<256x2xf32>
    %24 = tpu.matmul %3, %23, %cst_28 {dimension_numbers = #tpu.dot_dimension_numbers<[1], [0], [0], [1], [0, 0, 1, 1], [], []>} : vector<256x32xbf16>, vector<32x2xbf16>, vector<256x2xf32> -> vector<256x2xf32>
    %25 = arith.addf %21, %24 : vector<256x2xf32>
    %c1_29 = arith.constant 1 : index
    %c0_30 = arith.constant 0 : index
    %c0_31 = arith.constant 0 : index
    %26 = vector.load %arg6[%c1_29, %c0_30, %c0_31] : memref<2x1x2xf32, #tpu.memory_space<vmem>>, vector<1x1x2xf32>
    %27 = vector.shape_cast %26 : vector<1x1x2xf32> to vector<1x2xf32>
    %28 = vector.broadcast %27 : vector<1x2xf32> to vector<256x2xf32>
    %29 = arith.addf %25, %28 : vector<256x2xf32>
    %30 = vector.shape_cast %29 : vector<256x2xf32> to vector<16x16x2xf32>
    %c0_32 = arith.constant 0 : index
    %c0_33 = arith.constant 0 : index
    %c1_34 = arith.constant 1 : index
    %c0_35 = arith.constant 0 : index
    %c0_36 = arith.constant 0 : index
    %31 = vector.load %arg7[%c0_32, %c0_33, %c1_34, %c0_35, %c0_36] : memref<1x16x2x16x2xf32, #tpu.memory_space<vmem>>, vector<1x16x1x16x2xf32>
    %32 = vector.shape_cast %31 : vector<1x16x1x16x2xf32> to vector<16x16x2xf32>
    %33 = vector.shape_cast %30 : vector<16x16x2xf32> to vector<1x16x1x16x2xf32>
    tpu.vector_store %arg7[%c0_32, %c0_33, %c1_34, %c0_35, %c0_36], %33 {strides = array<i32>} : memref<1x16x2x16x2xf32, #tpu.memory_space<vmem>>, vector<1x16x1x16x2xf32>,
    return
  }
  func.func @transform_0(%arg0: i32, %arg1: i32) -> (i32, i32, i32, i32) {
    %c0_i32 = arith.constant 0 : i32
    %c0_i32_0 = arith.constant 0 : i32
    %c0_i32_1 = arith.constant 0 : i32
    return %arg0, %arg1, %c0_i32, %c0_i32_0 : i32, i32, i32, i32
  }
  func.func @transform_1(%arg0: i32, %arg1: i32) -> (i32, i32, i32, i32) {
    %c0_i32 = arith.constant 0 : i32
    %c0_i32_0 = arith.constant 0 : i32
    %c0_i32_1 = arith.constant 0 : i32
    return %arg0, %arg1, %c0_i32, %c0_i32_0 : i32, i32, i32, i32
  }
  func.func @transform_2(%arg0: i32, %arg1: i32) -> (i32, i32, i32) {
    %c0_i32 = arith.constant 0 : i32
    %c0_i32_0 = arith.constant 0 : i32
    %c0_i32_1 = arith.constant 0 : i32
    %c0_i32_2 = arith.constant 0 : i32
    return %c0_i32, %c0_i32_0, %c0_i32_1 : i32, i32, i32
  }
  func.func @transform_3(%arg0: i32, %arg1: i32) -> (i32, i32, i32) {
    %c0_i32 = arith.constant 0 : i32
    %c0_i32_0 = arith.constant 0 : i32
    %c0_i32_1 = arith.constant 0 : i32
    %c0_i32_2 = arith.constant 0 : i32
    return %c0_i32, %c0_i32_0, %c0_i32_1 : i32, i32, i32
  }
  func.func @transform_4(%arg0: i32, %arg1: i32) -> (i32, i32, i32) {
    %c0_i32 = arith.constant 0 : i32
    %c0_i32_0 = arith.constant 0 : i32
    %c0_i32_1 = arith.constant 0 : i32
    %c0_i32_2 = arith.constant 0 : i32
    return %c0_i32, %c0_i32_0, %c0_i32_1 : i32, i32, i32
  }
  func.func @transform_5(%arg0: i32, %arg1: i32) -> (i32, i32, i32, i32, i32) {
    %c0_i32 = arith.constant 0 : i32
    %c0_i32_0 = arith.constant 0 : i32
    %c0_i32_1 = arith.constant 0 : i32
    %c0_i32_2 = arith.constant 0 : i32
    return %arg0, %arg1, %c0_i32, %c0_i32_0, %c0_i32_1 : i32, i32, i32, i32, i32
  }
}

</mosaic_0001>

<bundles_post_ra>
// kernel: table_decoder_forward.3
= control target key start
LH: loop header
LB: loop body
LE: loop exit
PB: predicated region body
PF: predicated region fallthrough
CT: control target
= control target key end

     0   :  { %8 = vsyncpa [#allocation3], 0  ;;  %s1576_s0 = inlined_call_operand.vmem [shape: bf16[2,4,4,256], index: 0, kind: input, shape index: {}]   ;;  %s1577_s1 = inlined_call_operand.hbm [shape: bf16[2,256,256], index: 1, kind: input, shape index: {}]   ;;  %s1578_s2 = inlined_call_operand.hbm [shape: f32[2,1,256], index: 2, kind: input, shape index: {}]   ;;  %s1579_s3 = inlined_call_operand.vmem [shape: bf16[2,4,2,4,256], index: 3, kind: output, shape index: {}]  }
   0x1   :  { %9 = vsyncpa [#allocation5], 0  ;;  %s1470_s12 = smov 0   ;;  %s1472_s13 = smov 0  }
   0x2   :  { %s1474_s14 = smov 0  }
   0x3 LB: > { %s962_s15 = sadd.s32 4294967295, %s1442_s14   ;;  %s27_s16 = sadd.s32 1, %s1438_s13  ;;  %s1442_s14 = sphi %s1474_s14, %s15_s14   ;;  %s1438_s13 = sphi %s1472_s13, %s1583_s13   ;;  %s1434_s12 = sphi %s1470_s12, %s1582_s12  }
   0x4   : > { %p29_p0 = scmp.ge.s32.totalorder %s27_s16, 2  ;;  %p964_p1 = scmp.ge.s32.totalorder %s1442_s14, 1 }
   0x5   : > { %p130_p2 = scmp.lt.s32.totalorder %s1442_s14, 3  ;;  %p1495_p4 = scmp.eq.s32.totalorder %s962_s15, 0 }
   0x6   : > { %s1585_s16 = smov (%p29_p0, %s27_s16), 0  ;;  %s141_s21 = sshll.u32 %s1577_s1, 4  ;;  %s142_s21 = int_to_ptr.hbm [resolvable:$true] %s141_s21 }
   0x7   : > { %p1491_p3 = pnand %p964_p1, %p130_p2  ;;  %s1444_s22 = smov [#allocation2]  }
   0x8   : > { %s143_s23 = sshll.u32 %s1444_s22, 4  ;;  %s155_s26 = sshll.u32 %s1578_s2, 4  ;;  %s144_s23 = int_to_ptr.vmem [resolvable:$true] %s143_s23  ;;  %s156_s26 = int_to_ptr.hbm [resolvable:$true] %s155_s26 }
   0x9   : > { %p1311_p5 = pneg %p1491_p3  ;;  %s1445_s27 = smov 128  }
   0xa   : > { %s1446_s28 = smov 8   ;;  %s1447_s29 = smov [#allocation4]  }
   0xb   : > { %p1312_p6 = pnand %p1495_p4, %p1311_p5  ;;  %s157_s30 = sshll.u32 %s1447_s29, 4  ;;  %s158_s30 = int_to_ptr.vmem [resolvable:$true] %s157_s30 }
   0xc   : > { %s1448_s4 = smov 32   ;;  %s1449_s5 = smov 2  }
   0xd   : > { %1314 = dma.hbm_to_vmem [thread:$0]  (!%p1312_p6), %s142_s21, 8192, %s144_s23, [#allocation3], %s1445_s27, %s1445_s27, %s1446_s28  }
   0xe   : > { %1317 = dma.hbm_to_vmem [thread:$0]  (!%p1312_p6), %s156_s26, 64, %s158_s30, [#allocation5], %s1448_s4, %s1448_s4, %s1449_s5  }
   0xf   : > { %187 = sbr.rel (%p1491_p3) target bundleno = 243 (0xf3), region = 32 }
  0x14   : > { %1425 = dma.done.wait (%p1495_p4), [#allocation3], 8192  }
  0x15   : > { %1427 = vsyncadd (%p1495_p4), [#allocation3], 4294959104 }
  0x16   : > { %1429 = dma.done.wait (%p1495_p4), [#allocation5], 64  }
  0x17   : > { %1431 = vsyncadd (%p1495_p4), [#allocation5], 4294967232  ;;  %v1033_v0 = vld [vmem:[#allocation2 + $0x70] sm:$0xf]  ;;  %v1254_v1 = vld [vmem:[#allocation2 + $0x74] sm:$0xf0] }
  0x18   : > { %v1097_v2 = vld [vmem:[#allocation2 + $0xf0] sm:$0xf]  ;;  %v1034_v3 = vor.u32 %v1254_v1, %v1033_v0  ;;  %v1270_v4 = vld [vmem:[#allocation2 + $0xf4] sm:$0xf0]  ;;  %v1253_v5 = vld [vmem:[#allocation2 + $0x74] sm:$0xf] }
  0x19   : > { %v1035_v6 = vld [vmem:[#allocation2 + $0x78] sm:$0xf0]  ;;  %v1098_v7 = vor.u32 %v1270_v4, %v1097_v2  ;;  %v1269_v9 = vld [vmem:[#allocation2 + $0xf4] sm:$0xf]  ;;  %v1025_v11 = vld [vmem:[#allocation2 + $0x60] sm:$0xf] }
  0x1a   : > { %v1038_v8 = vor.u32 %v1253_v5, %v1035_v6  ;;  %v1099_v10 = vld [vmem:[#allocation2 + $0xf8] sm:$0xf0]  ;;  %466 = vmatpush.bf16.msra.mxu0 %v1034_v3  ;;  %v1252_v13 = vld [vmem:[#allocation2 + $0x64] sm:$0xf0]  ;;  %v1089_v14 = vld [vmem:[#allocation2 + $0xe0] sm:$0xf] }
  0x1b   : > { %v1102_v12 = vor.u32 %v1269_v9, %v1099_v10  ;;  %v1268_v15 = vld [vmem:[#allocation2 + $0xe4] sm:$0xf0]  ;;  %480 = vmatpush.bf16.msra.mxu1 %v1098_v7  ;;  %v1026_v16 = vor.u32 %v1252_v13, %v1025_v11  ;;  %v1251_v18 = vld [vmem:[#allocation2 + $0x64] sm:$0xf]  ;;  %v1027_v19 = vld [vmem:[#allocation2 + $0x68] sm:$0xf0] }
  0x1c   : > { %494 = vmatpush.bf16.msra.mxu2 %v1038_v8  ;;  %v1090_v17 = vor.u32 %v1268_v15, %v1089_v14  ;;  %v1267_v20 = vld [vmem:[#allocation2 + $0xe4] sm:$0xf]  ;;  %v1030_v21 = vor.u32 %v1251_v18, %v1027_v19  ;;  %v1091_v22 = vld [vmem:[#allocation2 + $0xe8] sm:$0xf0]  ;;  %v1017_v23 = vld [vmem:[#allocation2 + $0x50] sm:$0xf] }
  0x1d   : > { %508 = vmatpush.bf16.msra.mxu3 %v1102_v12  ;;  %v1250_v24 = vld [vmem:[#allocation2 + $0x54] sm:$0xf0]  ;;  %v1094_v25 = vor.u32 %v1267_v20, %v1091_v22  ;;  %v1081_v26 = vld [vmem:[#allocation2 + $0xd0] sm:$0xf]  ;;  %v1249_v28 = vld [vmem:[#allocation2 + $0x54] sm:$0xf] }
  0x1e   : > { %v1266_v27 = vld [vmem:[#allocation2 + $0xd4] sm:$0xf0]  ;;  %467 = vmatpush.bf16.msra.mxu0 %v1026_v16  ;;  %v1018_v29 = vor.u32 %v1250_v24, %v1017_v23  ;;  %v1019_v30 = vld [vmem:[#allocation2 + $0x58] sm:$0xf0]  ;;  %v1265_v31 = vld [vmem:[#allocation2 + $0xd4] sm:$0xf] }
  0x1f   : > { %v1083_v32 = vld [vmem:[#allocation2 + $0xd8] sm:$0xf0]  ;;  %481 = vmatpush.bf16.msra.mxu1 %v1090_v17  ;;  %v1082_v33 = vor.u32 %v1266_v27, %v1081_v26  ;;  %v1022_v34 = vor.u32 %v1249_v28, %v1019_v30  ;;  %v1009_v35 = vld [vmem:[#allocation2 + $0x40] sm:$0xf]  ;;  %v1248_v36 = vld [vmem:[#allocation2 + $0x44] sm:$0xf0] }
  0x20   : > { %495 = vmatpush.bf16.msra.mxu2 %v1030_v21  ;;  %v1073_v37 = vld [vmem:[#allocation2 + $0xc0] sm:$0xf]  ;;  %v1086_v38 = vor.u32 %v1265_v31, %v1083_v32  ;;  %v1264_v39 = vld [vmem:[#allocation2 + $0xc4] sm:$0xf0]  ;;  %v1247_v40 = vld [vmem:[#allocation2 + $0x44] sm:$0xf]  ;;  %v1010_v44 = vor.u32 %v1248_v36, %v1009_v35 }
  0x21   : > { %509 = vmatpush.bf16.msra.mxu3 %v1094_v25  ;;  %v1011_v41 = vld [vmem:[#allocation2 + $0x48] sm:$0xf0]  ;;  %v1263_v42 = vld [vmem:[#allocation2 + $0xc4] sm:$0xf]  ;;  %p228_p7 = scmp.lt.s32.totalorder %s1434_s12, 1  ;;  %v1074_v45 = vor.u32 %v1264_v39, %v1073_v37  ;;  %vm528_vm0 = vcmask 1041408  }
  0x22   : > { %v1075_v43 = vld [vmem:[#allocation2 + $0xc8] sm:$0xf0]  ;;  %468 = vmatpush.bf16.msra.mxu0 %v1018_v29  ;;  %v1014_v46 = vor.u32 %v1247_v40, %v1011_v41  ;;  %v1001_v47 = vld [vmem:[#allocation2 + $0x30] sm:$0xf]  ;;  %v1246_v48 = vld [vmem:[#allocation2 + $0x34] sm:$0xf0] }
  0x23   : > { %482 = vmatpush.bf16.msra.mxu1 %v1082_v33  ;;  %v1065_v49 = vld [vmem:[#allocation2 + $0xb0] sm:$0xf]  ;;  %v1078_v50 = vor.u32 %v1263_v42, %v1075_v43  ;;  %v1262_v51 = vld [vmem:[#allocation2 + $0xb4] sm:$0xf0]  ;;  %v1245_v52 = vld [vmem:[#allocation2 + $0x34] sm:$0xf]  ;;  %v1002_v56 = vor.u32 %v1246_v48, %v1001_v47 }
  0x24   : > { %496 = vmatpush.bf16.msra.mxu2 %v1022_v34  ;;  %v1003_v53 = vld [vmem:[#allocation2 + $0x38] sm:$0xf0]  ;;  %v1261_v54 = vld [vmem:[#allocation2 + $0xb4] sm:$0xf]  ;;  %s1587_s12 = smov (!%p228_p7, %s1434_s12), 1  ;;  %v1066_v57 = vor.u32 %v1262_v51, %v1065_v49  ;;  %vm532_vm1 = vcmask 1043458  }
  0x25   : > { %510 = vmatpush.bf16.msra.mxu3 %v1086_v38  ;;  %v1067_v55 = vld [vmem:[#allocation2 + $0xb8] sm:$0xf0]  ;;  %v1006_v58 = vor.u32 %v1245_v52, %v1003_v53  ;;  %v993_v59 = vld [vmem:[#allocation2 + $0x20] sm:$0xf]  ;;  %v1244_v60 = vld [vmem:[#allocation2 + $0x24] sm:$0xf0] }
  0x26   : > { %469 = vmatpush.bf16.msra.mxu0 %v1010_v44  ;;  %v1057_v61 = vld [vmem:[#allocation2 + $0xa0] sm:$0xf]  ;;  %v1070_v62 = vor.u32 %v1261_v54, %v1067_v55  ;;  %v1260_v63 = vld [vmem:[#allocation2 + $0xa4] sm:$0xf0]  ;;  %v1243_v0 = vld [vmem:[#allocation2 + $0x24] sm:$0xf]  ;;  %v994_v4 = vor.u32 %v1244_v60, %v993_v59 }
  0x27   : > { %483 = vmatpush.bf16.msra.mxu1 %v1074_v45  ;;  %v995_v1 = vld [vmem:[#allocation2 + $0x28] sm:$0xf0]  ;;  %v1259_v2 = vld [vmem:[#allocation2 + $0xa4] sm:$0xf]  ;;  %v985_v5 = vld [vmem:[#allocation2 + $0x10] sm:$0xf]  ;;  %v1058_v6 = vor.u32 %v1260_v63, %v1057_v61 }
  0x28   : > { %497 = vmatpush.bf16.msra.mxu2 %v1014_v46  ;;  %v1059_v3 = vld [vmem:[#allocation2 + $0xa8] sm:$0xf0]  ;;  %s1237_s6 = sshll.u32 %s1587_s12, 4  ;;  %v998_v7 = vor.u32 %v1243_v0, %v995_v1  ;;  %v1242_v8 = vld [vmem:[#allocation2 + $0x14] sm:$0xf0]  ;;  %s1238_s10 = sshll.u32 %s1587_s12, 5 }
  0x29   : > { %511 = vmatpush.bf16.msra.mxu3 %v1078_v50  ;;  %v1049_v9 = vld [vmem:[#allocation2 + $0x90] sm:$0xf]  ;;  %v1258_v10 = vld [vmem:[#allocation2 + $0x94] sm:$0xf0]  ;;  %v1062_v11 = vor.u32 %v1259_v2, %v1059_v3  ;;  %v1241_v12 = vld [vmem:[#allocation2 + $0x14] sm:$0xf]  ;;  %v986_v18 = vor.u32 %v1242_v8, %v985_v5  ;;  %s236_s9 = scalar_lea.vmem %s1576_s0, %s1237_s6  ;;  %s1549_s17 = scalar_lea.vmem %s1579_s3, %s1238_s10 }
  0x2a   : > { %470 = vmatpush.bf16.msra.mxu0 %v1002_v56  ;;  %v987_v13 = vld [vmem:[#allocation2 + $0x18] sm:$0xf0]  ;;  %v1257_v14 = vld [vmem:[#allocation2 + $0x94] sm:$0xf]  ;;  %v977_v16 = vld [vmem:[#allocation2] sm:$0xf]  ;;  %v1050_v23 = vor.u32 %v1258_v10, %v1049_v9 }
  0x2b   : > { %484 = vmatpush.bf16.msra.mxu1 %v1066_v57  ;;  %v1051_v15 = vld [vmem:[#allocation2 + $0x98] sm:$0xf0]  ;;  %v1240_v17 = vld [vmem:[#allocation2 + $0x4] sm:$0xf0]  ;;  %v1041_v19 = vld [vmem:[#allocation2 + $0x80] sm:$0xf]  ;;  %v990_v24 = vor.u32 %v1241_v12, %v987_v13 }
  0x2c   : > { %498 = vmatpush.bf16.msra.mxu2 %v1006_v58  ;;  %v1256_v20 = vld [vmem:[#allocation2 + $0x84] sm:$0xf0]  ;;  %v1239_v21 = vld [vmem:[#allocation2 + $0x4] sm:$0xf]  ;;  %v979_v22 = vld [vmem:[#allocation2 + $0x8] sm:$0xf0]  ;;  %v1054_v28 = vor.u32 %v1257_v14, %v1051_v15  ;;  %v978_v35 = vor.u32 %v1240_v17, %v977_v16 }
  0x2d   : > { %512 = vmatpush.bf16.msra.mxu3 %v1070_v62  ;;  %v1255_v25 = vld [vmem:[#allocation2 + $0x84] sm:$0xf]  ;;  %v1043_v26 = vld [vmem:[#allocation2 + $0x88] sm:$0xf0]  ;;  %v1161_v27 = vld [vmem:[#allocation2 + $0x170] sm:$0xf]  ;;  %v1042_v39 = vor.u32 %v1256_v20, %v1041_v19  ;;  %v982_v40 = vor.u32 %v1239_v21, %v979_v22 }
  0x2e   : > { %471 = vmatpush.bf16.msra.mxu0 %v994_v4  ;;  %v1286_v29 = vld [vmem:[#allocation2 + $0x174] sm:$0xf0]  ;;  %v1225_v30 = vld [vmem:[#allocation2 + $0x1f0] sm:$0xf]  ;;  %v1285_v32 = vld [vmem:[#allocation2 + $0x174] sm:$0xf]  ;;  %v1046_v43 = vor.u32 %v1255_v25, %v1043_v26 }
  0x2f   : > { %485 = vmatpush.bf16.msra.mxu1 %v1058_v6  ;;  %v1302_v31 = vld [vmem:[#allocation2 + $0x1f4] sm:$0xf0]  ;;  %v1163_v33 = vld [vmem:[#allocation2 + $0x178] sm:$0xf0]  ;;  %v1301_v36 = vld [vmem:[#allocation2 + $0x1f4] sm:$0xf]  ;;  %v1162_v44 = vor.u32 %v1286_v29, %v1161_v27 }
  0x30   : > { %499 = vmatpush.bf16.msra.mxu2 %v998_v7  ;;  %v1529_v34 = vld [vmem:[%s236_s9] sm:$0xf]  ;;  %v1531_v37 = vld [vmem:[%s236_s9 + $0x4] sm:$0xf]  ;;  %v1533_v38 = vld [vmem:[%s236_s9 + $0x8] sm:$0xf]  ;;  %v1226_v47 = vor.u32 %v1302_v31, %v1225_v30  ;;  %v1166_v48 = vor.u32 %v1285_v32, %v1163_v33 }
  0x31   : > { %513 = vmatpush.bf16.msra.mxu3 %v1062_v11  ;;  %v1227_v41 = vld [vmem:[#allocation2 + $0x1f8] sm:$0xf0]  ;;  %v1535_v42 = vld [vmem:[%s236_s9 + $0xc] sm:$0xf]  ;;  %292 = vst [vmem:[#allocation1] ss:$4 sm:$0xff] %v1529_v34 }
  0x32   : > { %472 = vmatpush.bf16.msra.mxu0 %v986_v18  ;;  %v1153_v45 = vld [vmem:[#allocation2 + $0x160] sm:$0xf]  ;;  %v1284_v46 = vld [vmem:[#allocation2 + $0x164] sm:$0xf0]  ;;  %295 = vst [vmem:[#allocation1 + $0x1] ss:$4 sm:$0xff] %v1531_v37  ;;  %v1230_v51 = vor.u32 %v1301_v36, %v1227_v41 }
  0x33   : > { %486 = vmatpush.bf16.msra.mxu1 %v1050_v23  ;;  %v1217_v49 = vld [vmem:[#allocation2 + $0x1e0] sm:$0xf]  ;;  %v1300_v50 = vld [vmem:[#allocation2 + $0x1e4] sm:$0xf0]  ;;  %298 = vst [vmem:[#allocation1 + $0x2] ss:$4 sm:$0xff] %v1533_v38  ;;  %v1154_v56 = vor.u32 %v1284_v46, %v1153_v45 }
  0x34   : > { %500 = vmatpush.bf16.msra.mxu2 %v990_v24  ;;  %v1283_v52 = vld [vmem:[#allocation2 + $0x164] sm:$0xf]  ;;  %v1155_v53 = vld [vmem:[#allocation2 + $0x168] sm:$0xf0]  ;;  %301 = vst [vmem:[#allocation1 + $0x3] ss:$4 sm:$0xff] %v1535_v42  ;;  %v1218_v57 = vor.u32 %v1300_v50, %v1217_v49 }
  0x35   : > { %514 = vmatpush.bf16.msra.mxu3 %v1054_v28  ;;  %v1299_v54 = vld [vmem:[#allocation2 + $0x1e4] sm:$0xf]  ;;  %v1219_v55 = vld [vmem:[#allocation2 + $0x1e8] sm:$0xf0]  ;;  %v1158_v58 = vor.u32 %v1283_v52, %v1155_v53  ;;  %v1145_v59 = vld [vmem:[#allocation2 + $0x150] sm:$0xf] }
  0x36   : > { %473 = vmatpush.bf16.msra.mxu0 %v978_v35  ;;  %v1282_v60 = vld [vmem:[#allocation2 + $0x154] sm:$0xf0]  ;;  %v1209_v61 = vld [vmem:[#allocation2 + $0x1d0] sm:$0xf]  ;;  %v1222_v62 = vor.u32 %v1299_v54, %v1219_v55  ;;  %v1281_v0 = vld [vmem:[#allocation2 + $0x154] sm:$0xf] }
  0x37   : > { %487 = vmatpush.bf16.msra.mxu1 %v1042_v39  ;;  %v1298_v63 = vld [vmem:[#allocation2 + $0x1d4] sm:$0xf0]  ;;  %v1147_v1 = vld [vmem:[#allocation2 + $0x158] sm:$0xf0]  ;;  %v1297_v2 = vld [vmem:[#allocation2 + $0x1d4] sm:$0xf]  ;;  %v1146_v5 = vor.u32 %v1282_v60, %v1145_v59 }
  0x38   : > { %501 = vmatpush.bf16.msra.mxu2 %v982_v40  ;;  %v1211_v3 = vld [vmem:[#allocation2 + $0x1d8] sm:$0xf0]  ;;  %v1137_v4 = vld [vmem:[#allocation2 + $0x140] sm:$0xf]  ;;  %v1280_v6 = vld [vmem:[#allocation2 + $0x144] sm:$0xf0]  ;;  %v1210_v11 = vor.u32 %v1298_v63, %v1209_v61  ;;  %v1150_v12 = vor.u32 %v1281_v0, %v1147_v1 }
  0x39   : > { %515 = vmatpush.bf16.msra.mxu3 %v1046_v43  ;;  %v1201_v7 = vld [vmem:[#allocation2 + $0x1c0] sm:$0xf]  ;;  %v1296_v8 = vld [vmem:[#allocation2 + $0x1c4] sm:$0xf0]  ;;  %v1214_v13 = vor.u32 %v1297_v2, %v1211_v3  ;;  %v1279_v14 = vld [vmem:[#allocation2 + $0x144] sm:$0xf]  ;;  %v1138_v18 = vor.u32 %v1280_v6, %v1137_v4 }
  0x3a   : > { %761 = vmatpush.bf16.msrb.mxu0 %v1162_v44  ;;  %v1139_v15 = vld [vmem:[#allocation2 + $0x148] sm:$0xf0]  ;;  %v1295_v16 = vld [vmem:[#allocation2 + $0x1c4] sm:$0xf]  ;;  %v1129_v19 = vld [vmem:[#allocation2 + $0x130] sm:$0xf]  ;;  %v1202_v20 = vor.u32 %v1296_v8, %v1201_v7 }
  0x3b   : > { %775 = vmatpush.bf16.msrb.mxu1 %v1226_v47  ;;  %v302_v9 = vld.sshfl [vmem:[#allocation1] sm:$0xff pattern:$0x73625140]  ;;  %v303_v10 = vld.sshfl [vmem:[#allocation1 + $0x8] sm:$0xff pattern:$0x73625140]  ;;  %v1142_v21 = vor.u32 %v1279_v14, %v1139_v15 }
  0x3c   : > { %789 = vmatpush.bf16.msrb.mxu2 %v1166_v48  ;;  %590 = vst [vmem:[#allocation1] ss:$4 sm:$0xff] %v1529_v34  ;;  %516 = vmatmul.bf16.vlgmr.msra.gmra.mxu3 %v303_v10  ;;  %v1203_v17 = vld [vmem:[#allocation2 + $0x1c8] sm:$0xf0]  ;;  %v1278_v22 = vld [vmem:[#allocation2 + $0x134] sm:$0xf0] }
  0x3d   : > { %803 = vmatpush.bf16.msrb.mxu3 %v1230_v51  ;;  %502 = vmatmul.bf16.vlgmr.msra.gmra.mxu2 %v302_v9  ;;  %592 = vst [vmem:[#allocation1 + $0x1] ss:$4 sm:$0xff] %v1531_v37  ;;  %v1193_v23 = vld [vmem:[#allocation2 + $0x1b0] sm:$0xf]  ;;  %v1206_v24 = vor.u32 %v1295_v16, %v1203_v17  ;;  %v1294_v25 = vld [vmem:[#allocation2 + $0x1b4] sm:$0xf0]  ;;  %v1130_v30 = vor.u32 %v1278_v22, %v1129_v19 }
  0x3e   : > { %762 = vmatpush.bf16.msrb.mxu0 %v1154_v56  ;;  %594 = vst [vmem:[#allocation1 + $0x2] ss:$4 sm:$0xff] %v1533_v38  ;;  %488 = vmatmul.bf16.vlgmr.msra.gmra.mxu1 %v303_v10  ;;  %v1277_v26 = vld [vmem:[#allocation2 + $0x134] sm:$0xf]  ;;  %v1131_v27 = vld [vmem:[#allocation2 + $0x138] sm:$0xf0]  ;;  %v1194_v31 = vor.u32 %v1294_v25, %v1193_v23 }
  0x3f   : > { %776 = vmatpush.bf16.msrb.mxu1 %v1218_v57  ;;  %474 = vmatmul.bf16.vlgmr.msra.gmra.mxu0 %v302_v9  ;;  %596 = vst [vmem:[#allocation1 + $0x3] ss:$4 sm:$0xff] %v1535_v42  ;;  %v1293_v28 = vld [vmem:[#allocation2 + $0x1b4] sm:$0xf]  ;;  %v1195_v29 = vld [vmem:[#allocation2 + $0x1b8] sm:$0xf0]  ;;  %v1134_v32 = vor.u32 %v1277_v26, %v1131_v27 }
  0x40   : > { %790 = vmatpush.bf16.msrb.mxu2 %v1158_v58  ;;  %v1121_v33 = vld [vmem:[#allocation2 + $0x120] sm:$0xf]  ;;  %v1276_v34 = vld [vmem:[#allocation2 + $0x124] sm:$0xf0]  ;;  %v1198_v36 = vor.u32 %v1293_v28, %v1195_v29  ;;  %v1275_v38 = vld [vmem:[#allocation2 + $0x124] sm:$0xf] }
  0x41   : > { %804 = vmatpush.bf16.msrb.mxu3 %v1222_v62  ;;  %v1185_v35 = vld [vmem:[#allocation2 + $0x1a0] sm:$0xf]  ;;  %v1292_v37 = vld [vmem:[#allocation2 + $0x1a4] sm:$0xf0]  ;;  %v1123_v39 = vld [vmem:[#allocation2 + $0x128] sm:$0xf0]  ;;  %v1122_v42 = vor.u32 %v1276_v34, %v1121_v33 }
  0x42   : > { %763 = vmatpush.bf16.msrb.mxu0 %v1146_v5  ;;  %v1291_v40 = vld [vmem:[#allocation2 + $0x1a4] sm:$0xf]  ;;  %v1187_v41 = vld [vmem:[#allocation2 + $0x1a8] sm:$0xf0]  ;;  %v1186_v43 = vor.u32 %v1292_v37, %v1185_v35  ;;  %v1126_v44 = vor.u32 %v1275_v38, %v1123_v39  ;;  %v1113_v45 = vld [vmem:[#allocation2 + $0x110] sm:$0xf] }
  0x43   : > { %777 = vmatpush.bf16.msrb.mxu1 %v1210_v11  ;;  %v1274_v46 = vld [vmem:[#allocation2 + $0x114] sm:$0xf0]  ;;  %v1177_v47 = vld [vmem:[#allocation2 + $0x190] sm:$0xf]  ;;  %v1190_v48 = vor.u32 %v1291_v40, %v1187_v41  ;;  %v1273_v50 = vld [vmem:[#allocation2 + $0x114] sm:$0xf] }
  0x44   : > { %791 = vmatpush.bf16.msrb.mxu2 %v1150_v12  ;;  %v1290_v49 = vld [vmem:[#allocation2 + $0x194] sm:$0xf0]  ;;  %v1115_v51 = vld [vmem:[#allocation2 + $0x118] sm:$0xf0]  ;;  %v1289_v52 = vld [vmem:[#allocation2 + $0x194] sm:$0xf]  ;;  %v1114_v54 = vor.u32 %v1274_v46, %v1113_v45 }
  0x45   : > { %805 = vmatpush.bf16.msrb.mxu3 %v1214_v13  ;;  %v1179_v53 = vld [vmem:[#allocation2 + $0x198] sm:$0xf0]  ;;  %v1178_v55 = vor.u32 %v1290_v49, %v1177_v47  ;;  %v1118_v56 = vor.u32 %v1273_v50, %v1115_v51  ;;  %v1105_v57 = vld [vmem:[#allocation2 + $0x100] sm:$0xf]  ;;  %v1272_v58 = vld [vmem:[#allocation2 + $0x104] sm:$0xf0] }
  0x46   : > { %764 = vmatpush.bf16.msrb.mxu0 %v1138_v18  ;;  %v1169_v59 = vld [vmem:[#allocation2 + $0x180] sm:$0xf]  ;;  %v1182_v60 = vor.u32 %v1289_v52, %v1179_v53  ;;  %v1288_v61 = vld [vmem:[#allocation2 + $0x184] sm:$0xf0]  ;;  %v1271_v62 = vld [vmem:[#allocation2 + $0x104] sm:$0xf]  ;;  %v1106_v2 = vor.u32 %v1272_v58, %v1105_v57 }
  0x47   : > { %778 = vmatpush.bf16.msrb.mxu1 %v1202_v20  ;;  %v1107_v63 = vld [vmem:[#allocation2 + $0x108] sm:$0xf0]  ;;  %v1287_v0 = vld [vmem:[#allocation2 + $0x184] sm:$0xf]  ;;  %v1170_v3 = vor.u32 %v1288_v61, %v1169_v59  ;;  %v285_v8 = vld [vmem:[#allocation4] sm:$0x3] }
  0x48   : > { %792 = vmatpush.bf16.msrb.mxu2 %v1142_v21  ;;  %v1171_v1 = vld [vmem:[#allocation2 + $0x188] sm:$0xf0]  ;;  %v1110_v4 = vor.u32 %v1271_v62, %v1107_v63  ;;  %v597_v6 = vld.sshfl [vmem:[#allocation1] sm:$0xff pattern:$0x73625140]  ;;  %v287_v9 = vperm.slane %v285_v8, 0 }
  0x49   : > { %806 = vmatpush.bf16.msrb.mxu3 %v1206_v24  ;;  %v1174_v5 = vor.u32 %v1287_v0, %v1171_v1  ;;  %v598_v7 = vld.sshfl [vmem:[#allocation1 + $0x8] sm:$0xff pattern:$0x73625140]  ;;  %v288_v13 = vperm.slane %v285_v8, 1 }
  0x4a   : > { %765 = vmatpush.bf16.msrb.mxu0 %v1130_v30  ;;  %v584_v34 = vld [vmem:[#allocation4 + $0x2] sm:$0x3] }
  0x4b   : > { %779 = vmatpush.bf16.msrb.mxu1 %v1194_v31  ;;  %v586_v38 = vperm.slane %v584_v34, 0  ;;  %v587_v41 = vperm.slane %v584_v34, 1 }
  0x4c   : > { %793 = vmatpush.bf16.msrb.mxu2 %v1134_v32 }
  0x4d   : > { %807 = vmatpush.bf16.msrb.mxu3 %v1198_v36 }
  0x4e   : > { %766 = vmatpush.bf16.msrb.mxu0 %v1122_v42 }
  0x4f   : > { %780 = vmatpush.bf16.msrb.mxu1 %v1186_v43 }
  0x50   : > { %794 = vmatpush.bf16.msrb.mxu2 %v1126_v44 }
  0x51   : > { %808 = vmatpush.bf16.msrb.mxu3 %v1190_v48 }
  0x52   : > { %767 = vmatpush.bf16.msrb.mxu0 %v1114_v54 }
  0x53   : > { %781 = vmatpush.bf16.msrb.mxu1 %v1178_v55 }
  0x54   : > { %795 = vmatpush.bf16.msrb.mxu2 %v1118_v56 }
  0x55   : > { %809 = vmatpush.bf16.msrb.mxu3 %v1182_v60 }
  0x56   : > { %768 = vmatpush.bf16.msrb.mxu0 %v1106_v2 }
  0x57   : > { %782 = vmatpush.bf16.msrb.mxu1 %v1170_v3 }
  0x58   : > { %796 = vmatpush.bf16.msrb.mxu2 %v1110_v4 }
  0x59   : > { %810 = vmatpush.bf16.msrb.mxu3 %v1174_v5  ;;  %769 = vmatmul.bf16.vlgmr.msrb.gmra.mxu0 %v597_v6 }
  0x5a   : > { %783 = vmatmul.bf16.vlgmr.msrb.gmra.mxu1 %v598_v7 }
  0x5b   : > { %797 = vmatmul.bf16.vlgmr.msrb.gmra.mxu2 %v597_v6 }
  0x5c   : > { %811 = vmatmul.bf16.vlgmr.msrb.gmra.mxu3 %v598_v7 }
  0xbb   : > { %v489_v11 = vpop.f32.mrf.mxu1 }
  0xbc   : > { %v475_v10 = vpop.f32.mrf.mxu0 }
  0xbd   : > { %v476_v12 = vadd.f32 %v475_v10, %v287_v9 }
  0xbf   : > { %v490_v16 = vadd.f32 %v489_v11, %v476_v12  ;;  %v517_v17 = vpop.f32.mrf.mxu3 }
  0xc0   : > { %v503_v14 = vpop.f32.mrf.mxu2 }
  0xc1   : > { %v504_v15 = vadd.f32 %v503_v14, %v288_v13 }
  0xc3   : > { %v518_v18 = vadd.f32 %v517_v17, %v504_v15  ;;  %v491_v22 = vpop.f32.mrf.mxu1 }
  0xc4   : > { %v477_v19 = vpop.f32.mrf.mxu0 }
  0xc5   : > { %v522_v20 = vpack.c.bf16 %v518_v18, %v490_v16  ;;  %v478_v21 = vadd.f32 %v477_v19, %v287_v9 }
  0xc7   : > { %v526_v23 = vrot.slane %v522_v20, 2  ;;  %v492_v28 = vadd.f32 %v491_v22, %v478_v21  ;;  %v519_v29 = vpop.f32.mrf.mxu3 }
  0xc8   : > { %v505_v24 = vpop.f32.mrf.mxu2 }
  0xc9   : > { %v531_v25 = vsel %vm528_vm0, %v522_v20, %v526_v23  ;;  %v533_v26 = vsel %vm532_vm1, %v522_v20, %v526_v23  ;;  %v506_v27 = vadd.f32 %v505_v24, %v288_v13 }
  0xca   : > { %v535_v30 = vrot.slane %v533_v26, 2  ;;  %546 = vst [vmem:[%s1549_s17] sm:$0xf] %v531_v25 }
  0xcb   : > { %v520_v31 = vadd.f32 %v519_v29, %v506_v27 }
  0xcc   : > { %547 = vst [vmem:[%s1549_s17 + $0x8] sm:$0xf] %v535_v30 }
  0xcd   : > { %v523_v32 = vpack.c.bf16 %v520_v31, %v492_v28 }
  0xcf   : > { %v527_v33 = vrot.slane %v523_v32, 2 }
  0xd1   : > { %v538_v35 = vsel %vm528_vm0, %v523_v32, %v527_v33  ;;  %v539_v36 = vsel %vm532_vm1, %v523_v32, %v527_v33 }
  0xd2   : > { %v541_v37 = vrot.slane %v539_v36, 2  ;;  %548 = vst [vmem:[%s1549_s17 + $0x10] sm:$0xf] %v538_v35 }
  0xd4   : > { %549 = vst [vmem:[%s1549_s17 + $0x18] sm:$0xf] %v541_v37 }
  0xd6   : > { %v770_v39 = vpop.f32.mrf.mxu0 }
  0xd7   : > { %v771_v40 = vadd.f32 %v770_v39, %v586_v38  ;;  %v784_v42 = vpop.f32.mrf.mxu1 }
  0xd9   : > { %v785_v44 = vadd.f32 %v784_v42, %v771_v40 }
  0xde   : > { %v798_v43 = vpop.f32.mrf.mxu2  ;;  %v772_v48 = vpop.f32.mrf.mxu0 }
  0xdf   : > { %v799_v45 = vadd.f32 %v798_v43, %v587_v41  ;;  %v812_v46 = vpop.f32.mrf.mxu3  ;;  %v773_v51 = vadd.f32 %v772_v48, %v586_v38  ;;  %v786_v57 = vpop.f32.mrf.mxu1 }
  0xe1   : > { %v813_v47 = vadd.f32 %v812_v46, %v799_v45  ;;  %v787_v59 = vadd.f32 %v786_v57, %v773_v51 }
  0xe3   : > { %v817_v49 = vpack.c.bf16 %v813_v47, %v785_v44 }
  0xe5   : > { %v821_v50 = vrot.slane %v817_v49, 2 }
  0xe6   : > { %v800_v52 = vpop.f32.mrf.mxu2 }
  0xe7   : > { %v825_v53 = vsel %vm528_vm0, %v817_v49, %v821_v50  ;;  %v826_v54 = vsel %vm532_vm1, %v817_v49, %v821_v50  ;;  %v801_v55 = vadd.f32 %v800_v52, %v587_v41  ;;  %v814_v58 = vpop.f32.mrf.mxu3 }
  0xe8   : > { %v828_v56 = vrot.slane %v826_v54, 2  ;;  %1231 = vst [vmem:[%s1549_s17 + $0x4] sm:$0xf] %v825_v53 }
  0xe9   : > { %v815_v60 = vadd.f32 %v814_v58, %v801_v55 }
  0xea   : > { %1232 = vst [vmem:[%s1549_s17 + $0xc] sm:$0xf] %v828_v56 }
  0xeb   : > { %v818_v61 = vpack.c.bf16 %v815_v60, %v787_v59 }
  0xed   : > { %v822_v62 = vrot.slane %v818_v61, 2 }
  0xef   : > { %v831_v63 = vsel %vm528_vm0, %v818_v61, %v822_v62  ;;  %v832_v0 = vsel %vm532_vm1, %v818_v61, %v822_v62 }
  0xf0   : > { %v834_v1 = vrot.slane %v832_v0, 2  ;;  %1233 = vst [vmem:[%s1549_s17 + $0x14] sm:$0xf] %v831_v63 }
  0xf2   : > { %1234 = vst [vmem:[%s1549_s17 + $0x1c] sm:$0xf] %v834_v1 }
  0xf3 PF: > { %s15_s14 = sadd.s32 1, %s1442_s14   ;;  %s1582_s12 = smov %s1438_s13 }
  0xf4   : > { %p12_p8 = scmp.ge.s32.totalorder %s15_s14, 4   ;;  %s1583_s13 = smov %s1585_s16 }
  0xf6   :  { %14 = sbr.rel (!%p12_p8) target bundleno = 3 (0x3), region = 80 }
  0xfb   :  { %876 = vsyncpa [#allocation3], 1 }
  0xfc   :  { %878 = vsyncpa [#allocation3 + $0x1], 1 }
  0xfd   :  { %879 = vsyncpa [#allocation5], 1 }

// kernel: table_decoder_forward.5
= control target key start
LH: loop header
LB: loop body
LE: loop exit
PB: predicated region body
PF: predicated region fallthrough
CT: control target
= control target key end

     0   :  { %s2363_s18 = smov 0   ;;  %s2365_s19 = smov 0   ;;  %s3266_s0 = inlined_call_operand.vmem [shape: bf16[2,16,16,256], index: 0, kind: input, shape index: {}]   ;;  %s3267_s1 = inlined_call_operand.vmem [shape: bf16[2,16,16,32], index: 1, kind: input, shape index: {}]   ;;  %s3268_s2 = inlined_call_operand.vmem [shape: bf16[2,256,2], index: 2, kind: input, shape index: {}]   ;;  %s3269_s3 = inlined_call_operand.vmem [shape: bf16[2,32,2], index: 3, kind: input, shape index: {}]   ;;  %s3270_s4 = inlined_call_operand.vmem [shape: f32[2,1,2], index: 4, kind: input, shape index: {}]   ;;  %s3271_s5 = inlined_call_operand.vmem [shape: f32[2,16,2,16,2], index: 5, kind: output, shape index: {}]  }
   0x1   :  { %s2367_s20 = smov 0  }
   0x2 LB: > { %s27_s21 = sadd.s32 1, %s2327_s19  ;;  %p1746_p0 = scmp.ge.s32.totalorder %s2331_s20, 1  ;;  %s2331_s20 = sphi %s2367_s20, %s15_s20   ;;  %s2327_s19 = sphi %s2365_s19, %s3319_s19   ;;  %s2323_s18 = sphi %s2363_s18, %s3318_s18  }
   0x3   : > { %p29_p1 = scmp.ge.s32.totalorder %s27_s21, 2  ;;  %p227_p2 = scmp.lt.s32.totalorder %s2331_s20, 3 }
   0x5   : > { %s3321_s21 = smov (%p29_p1, %s27_s21), 0  ;;  %p228_p3 = pnand %p1746_p0, %p227_p2 }
   0x7   : > { %231 = sbr.rel (%p228_p3) target bundleno = 550 (0x226), region = 40 }
   0xc   : > { %v2260_v0 = vld [vmem:[%s3269_s3 + $0x8] sm:$0xff]  ;;  %v2258_v1 = vld [vmem:[%s3268_s2 + $0x78] sm:$0xff]  ;;  %p276_p4 = scmp.lt.s32.totalorder %s2323_s18, 1  ;;  %v2259_v3 = vld [vmem:[%s3269_s3] sm:$0xff]  ;;  %vm501_vm0 = vcmask 261120   ;;  %vm1109_vm1 = vcmask 15360  }
   0xd   : > { %v2390_v2 = vld [vmem:[%s3269_s3 + $0x18] sm:$0xff]  ;;  %556 = vmatpush.bf16.msra.mxu0 %v2260_v0  ;;  %2279 = vmatpush.bf16.msra.mxu1 %v2260_v0  ;;  %v2257_v4 = vld [vmem:[%s3268_s2 + $0x70] sm:$0xff]  ;;  %v2256_v11 = vld [vmem:[%s3268_s2 + $0x68] sm:$0xff] }
   0xe   : > { %s3323_s18 = smov (!%p276_p4, %s2323_s18), 1  ;;  %984 = vmatpush.bf16.msra.mxu2 %v2258_v1  ;;  %2281 = vmatpush.bf16.msra.mxu3 %v2390_v2  ;;  %v2277_v5 = vld [vmem:[%s3269_s3 + $0x10] sm:$0xff]  ;;  %v2276_v6 = vld [vmem:[%s3268_s2 + $0xf8] sm:$0xff]  ;;  %v2255_v15 = vld [vmem:[%s3268_s2 + $0x60] sm:$0xff] }
   0xf   : > { %s2193_s9 = sshll.u32 %s3323_s18, 7  ;;  %v2268_v7 = vld [vmem:[%s3268_s2 + $0xb8] sm:$0xff]  ;;  %v2275_v12 = vld [vmem:[%s3268_s2 + $0xf0] sm:$0xff]  ;;  %v2274_v16 = vld [vmem:[%s3268_s2 + $0xe8] sm:$0xff]  ;;  %s2192_s14 = sshll.u32 %s3323_s18, 8 }
  0x10   : > { %s2414_s16 = scalar_lea.vmem %s3267_s1, %s2193_s9  ;;  %v2267_v13 = vld [vmem:[%s3268_s2 + $0xb0] sm:$0xff]  ;;  %v2250_v14 = vld [vmem:[%s3268_s2 + $0x38] sm:$0xff]  ;;  %v2266_v18 = vld [vmem:[%s3268_s2 + $0xa8] sm:$0xff]  ;;  %s2469_s24 = scalar_lea.vmem %s3266_s0, %s2192_s14 }
  0x11   : > { %557 = vmatpush.bf16.msra.mxu0 %v2259_v3  ;;  %2280 = vmatpush.bf16.msra.mxu1 %v2259_v3  ;;  %v2417_v8 = vld [vmem:[%s2414_s16] sm:$0xff]  ;;  %v2236_v9 = vld [vmem:[%s2414_s16 + $0x48] sm:$0xff]  ;;  %v2421_v10 = vld [vmem:[%s2414_s16 + $0x38] sm:$0xff] }
  0x12   : > { %985 = vmatpush.bf16.msra.mxu2 %v2257_v4  ;;  %2282 = vmatpush.bf16.msra.mxu3 %v2277_v5  ;;  %v2254_v17 = vld [vmem:[%s3268_s2 + $0x58] sm:$0xff]  ;;  %v2253_v19 = vld [vmem:[%s3268_s2 + $0x50] sm:$0xff]  ;;  %v2457_v20 = vld [vmem:[%s2414_s16 + $0x8] sm:$0xff] }
  0x13   : > { %v2237_v21 = vld [vmem:[%s2414_s16 + $0x50] sm:$0xff]  ;;  %v2461_v22 = vld [vmem:[%s2414_s16 + $0x40] sm:$0xff]  ;;  %v2252_v23 = vld [vmem:[%s3268_s2 + $0x48] sm:$0xff] }
  0x14   : > { %1825 = vmatmul.msk.bf16.vlgmr.msra.gmra.mxu0 %vm501_vm0, %v2417_v8  ;;  %1834 = vmatmul.msk.bf16.vlgmr.msra.gmra.mxu1 %vm501_vm0, %v2236_v9  ;;  %v2249_v24 = vld [vmem:[%s3268_s2 + $0x30] sm:$0xff]  ;;  %v2273_v25 = vld [vmem:[%s3268_s2 + $0xe0] sm:$0xff]  ;;  %v1845_v28 = vld [vmem:[%s2469_s24 + $0x8] sm:$0xf0] }
  0x15   : > { %1377 = vmatpush.bf16.msrb.mxu0 %v2268_v7  ;;  %2084 = vmatmul.msk.bf16.vlgmr.msra.gmra.mxu3 %vm501_vm0, %v2421_v10  ;;  %v2251_v26 = vld [vmem:[%s3268_s2 + $0x40] sm:$0xff]  ;;  %v2495_v31 = vld [vmem:[%s2414_s16 + $0x10] sm:$0xff]  ;;  %v2238_v32 = vld [vmem:[%s2414_s16 + $0x58] sm:$0xff] }
  0x16   : > { %1466 = vmatpush.bf16.msrb.mxu3 %v2276_v6  ;;  %986 = vmatpush.bf16.msra.mxu2 %v2256_v11  ;;  %v2195_v27 = vld [vmem:[%s2469_s24 + $0x4] sm:$0xf]  ;;  %v2248_v33 = vld [vmem:[%s3268_s2 + $0x28] sm:$0xff]  ;;  %v2197_v34 = vld [vmem:[%s2469_s24 + $0x14] sm:$0xf] }
  0x17   : > { %895 = vmatpush.bf16.msrb.mxu1 %v2250_v14  ;;  %v2487_v29 = vor.u32 %v2195_v27, %v1845_v28  ;;  %v2265_v30 = vld [vmem:[%s3268_s2 + $0xa0] sm:$0xff]  ;;  %v1853_v35 = vld [vmem:[%s2469_s24 + $0x18] sm:$0xf0]  ;;  %v1861_v43 = vld [vmem:[%s2469_s24 + $0x28] sm:$0xf0] }
  0x18   : > { %v2507_v36 = vor.u32 %v2197_v34, %v1853_v35  ;;  %v2272_v37 = vld [vmem:[%s3268_s2 + $0xd8] sm:$0xff]  ;;  %v2247_v39 = vld [vmem:[%s3268_s2 + $0x20] sm:$0xff]  ;;  %v2271_v45 = vld [vmem:[%s3268_s2 + $0xd0] sm:$0xff] }
  0x19   : > { %1378 = vmatpush.bf16.msrb.mxu0 %v2267_v13  ;;  %v2264_v38 = vld [vmem:[%s3268_s2 + $0x98] sm:$0xff]  ;;  %v2239_v41 = vld [vmem:[%s2414_s16 + $0x60] sm:$0xff]  ;;  %v2263_v47 = vld [vmem:[%s3268_s2 + $0x90] sm:$0xff] }
  0x1a   : > { %1467 = vmatpush.bf16.msrb.mxu3 %v2275_v12  ;;  %987 = vmatpush.bf16.msra.mxu2 %v2255_v15  ;;  %v2520_v40 = vld [vmem:[%s2414_s16 + $0x18] sm:$0xff]  ;;  %v2199_v42 = vld [vmem:[%s2469_s24 + $0x24] sm:$0xf]  ;;  %v2240_v49 = vld [vmem:[%s2414_s16 + $0x68] sm:$0xff] }
  0x1b   : > { %896 = vmatpush.bf16.msrb.mxu1 %v2249_v24  ;;  %v2529_v44 = vor.u32 %v2199_v42, %v1861_v43  ;;  %v2246_v46 = vld [vmem:[%s3268_s2 + $0x18] sm:$0xff]  ;;  %v2542_v48 = vld [vmem:[%s2414_s16 + $0x20] sm:$0xff]  ;;  %v2245_v50 = vld [vmem:[%s3268_s2 + $0x10] sm:$0xff] }
  0x1c   : > { %v2201_v51 = vld [vmem:[%s2469_s24 + $0x34] sm:$0xf]  ;;  %v1869_v52 = vld [vmem:[%s2469_s24 + $0x38] sm:$0xf0]  ;;  %v2244_v54 = vld [vmem:[%s3268_s2 + $0x8] sm:$0xff] }
  0x1d   : > { %1379 = vmatpush.bf16.msrb.mxu0 %v2266_v18  ;;  %v2554_v53 = vor.u32 %v2201_v51, %v1869_v52  ;;  %v2270_v55 = vld [vmem:[%s3268_s2 + $0xc8] sm:$0xff]  ;;  %v2243_v56 = vld [vmem:[%s3268_s2] sm:$0xff]  ;;  %v2241_v58 = vld [vmem:[%s2414_s16 + $0x70] sm:$0xff] }
  0x1e   : > { %1468 = vmatpush.bf16.msrb.mxu3 %v2274_v16  ;;  %988 = vmatpush.bf16.msra.mxu2 %v2254_v17  ;;  %v2567_v57 = vld [vmem:[%s2414_s16 + $0x28] sm:$0xff]  ;;  %v2203_v60 = vld [vmem:[%s2469_s24 + $0x44] sm:$0xf]  ;;  %v2583_v63 = vld [vmem:[%s2414_s16 + $0x30] sm:$0xff] }
  0x1f   : > { %897 = vmatpush.bf16.msrb.mxu1 %v2248_v33  ;;  %v2262_v59 = vld [vmem:[%s3268_s2 + $0x88] sm:$0xff]  ;;  %v2242_v0 = vld [vmem:[%s2414_s16 + $0x78] sm:$0xff]  ;;  %v2269_v1 = vld [vmem:[%s3268_s2 + $0xc0] sm:$0xff]  ;;  %s2194_s16 = sshll.u32 %s3323_s18, 9 }
  0x20   : > { %v1877_v61 = vld [vmem:[%s2469_s24 + $0x48] sm:$0xf0]  ;;  %v2205_v3 = vld [vmem:[%s2469_s24 + $0x54] sm:$0xf]  ;;  %v1885_v4 = vld [vmem:[%s2469_s24 + $0x58] sm:$0xf0]  ;;  %s2790_s27 = scalar_lea.vmem %s3271_s5, %s2194_s16 }
  0x21   : > { %1380 = vmatpush.bf16.msrb.mxu0 %v2265_v30  ;;  %v2579_v62 = vor.u32 %v2203_v60, %v1877_v61  ;;  %v1843_v6 = vld [vmem:[%s2469_s24] sm:$0xf]  ;;  %v2196_v7 = vld [vmem:[%s2469_s24 + $0x4] sm:$0xf0]  ;;  %v2207_v11 = vld [vmem:[%s2469_s24 + $0x64] sm:$0xf] }
  0x22   : > { %989 = vmatpush.bf16.msra.mxu2 %v2253_v19  ;;  %1469 = vmatpush.bf16.msrb.mxu3 %v2273_v25  ;;  %v1893_v12 = vld [vmem:[%s2469_s24 + $0x68] sm:$0xf0]  ;;  %v1851_v14 = vld [vmem:[%s2469_s24 + $0x10] sm:$0xf]  ;;  %v2198_v15 = vld [vmem:[%s2469_s24 + $0x14] sm:$0xf0] }
  0x23   : > { %898 = vmatpush.bf16.msrb.mxu1 %v2247_v39  ;;  %v2608_v13 = vor.u32 %v2207_v11, %v1893_v12  ;;  %v1852_v16 = vor.u32 %v2198_v15, %v1851_v14  ;;  %v1901_v19 = vld [vmem:[%s2469_s24 + $0x78] sm:$0xf0]  ;;  %v2211_v33 = vld [vmem:[%s2469_s24 + $0x84] sm:$0xf]  ;;  %v1909_v34 = vld [vmem:[%s2469_s24 + $0x88] sm:$0xf0] }
  0x24   : > { %1826 = vmatmul.msk.bf16.gmra.mxu0 %vm501_vm0, %v2457_v20  ;;  %1835 = vmatmul.msk.bf16.gmra.mxu1 %vm501_vm0, %v2237_v21  ;;  %v2648_v39 = vor.u32 %v2211_v33, %v1909_v34  ;;  %v2202_v42 = vld [vmem:[%s2469_s24 + $0x34] sm:$0xf0]  ;;  %v1883_v12 = vld [vmem:[%s2469_s24 + $0x50] sm:$0xf] }
  0x25   : > { %2085 = vmatmul.msk.bf16.gmra.mxu3 %vm501_vm0, %v2461_v22  ;;  %1381 = vmatpush.bf16.msrb.mxu0 %v2264_v38  ;;  %v2206_v14 = vld [vmem:[%s2469_s24 + $0x54] sm:$0xf0] }
  0x26   : > { %990 = vmatpush.bf16.msra.mxu2 %v2252_v23  ;;  %1470 = vmatpush.bf16.msrb.mxu3 %v2272_v37 }
  0x27   : > { %899 = vmatpush.bf16.msrb.mxu1 %v2246_v46 }
  0x29   : > { %1382 = vmatpush.bf16.msrb.mxu0 %v2263_v47 }
  0x2a   : > { %991 = vmatpush.bf16.msra.mxu2 %v2251_v26  ;;  %1471 = vmatpush.bf16.msrb.mxu3 %v2271_v45  ;;  %v1859_v26 = vld [vmem:[%s2469_s24 + $0x20] sm:$0xf] }
  0x2b   : > { %900 = vmatpush.bf16.msrb.mxu1 %v2245_v50  ;;  %v1917_v50 = vld [vmem:[%s2469_s24 + $0x98] sm:$0xf0] }
  0x2d   : > { %992 = vmatmul.bf16.vlgmr.msra.gmra.mxu2 %v2487_v29  ;;  %1383 = vmatpush.bf16.msrb.mxu0 %v2262_v59  ;;  %v2204_v59 = vld [vmem:[%s2469_s24 + $0x44] sm:$0xf0] }
  0x2e   : > { %1198 = vmatpush.bf16.msrb.mxu2 %v2390_v2  ;;  %1472 = vmatpush.bf16.msrb.mxu3 %v2270_v55  ;;  %v2261_v2 = vld [vmem:[%s3268_s2 + $0x80] sm:$0xff] }
  0x2f   : > { %901 = vmatpush.bf16.msrb.mxu1 %v2244_v54 }
  0x31   : > { %1384 = vmatpush.bf16.msrb.mxu0 %v2261_v2  ;;  %v2215_v2 = vld [vmem:[%s2469_s24 + $0xa4] sm:$0xf] }
  0x32   : > { %1199 = vmatpush.bf16.msrb.mxu2 %v2277_v5  ;;  %1473 = vmatpush.bf16.msrb.mxu3 %v2269_v1  ;;  %v2598_v5 = vor.u32 %v2205_v3, %v1885_v4  ;;  %v1925_v3 = vld [vmem:[%s2469_s24 + $0xa8] sm:$0xf0] }
  0x33   : > { %902 = vmatpush.bf16.msrb.mxu1 %v2243_v56  ;;  %v2696_v11 = vor.u32 %v2215_v2, %v1925_v3  ;;  %v2219_v3 = vld [vmem:[%s2469_s24 + $0xc4] sm:$0xf] }
  0x34   : > { %1827 = vmatmul.msk.bf16.gmra.mxu0 %vm501_vm0, %v2495_v31  ;;  %1836 = vmatmul.msk.bf16.gmra.mxu1 %vm501_vm0, %v2238_v32 }
  0x35   : > { %2086 = vmatmul.msk.bf16.gmra.mxu3 %vm501_vm0, %v2236_v9  ;;  %v1844_v9 = vor.u32 %v2196_v7, %v1843_v6 }
  0x3d   : > { %997 = vmatmul.bf16.gmra.mxu2 %v2507_v36 }
  0x44   : > { %1828 = vmatmul.msk.bf16.gmra.mxu0 %vm501_vm0, %v2520_v40  ;;  %1837 = vmatmul.msk.bf16.gmra.mxu1 %vm501_vm0, %v2239_v41 }
  0x45   : > { %2087 = vmatmul.msk.bf16.gmra.mxu3 %vm501_vm0, %v2237_v21 }
  0x4d   : > { %1002 = vmatmul.bf16.gmra.mxu2 %v2529_v44 }
  0x54   : > { %1829 = vmatmul.msk.bf16.gmra.mxu0 %vm501_vm0, %v2542_v48  ;;  %1838 = vmatmul.msk.bf16.gmra.mxu1 %vm501_vm0, %v2240_v49 }
  0x55   : > { %2088 = vmatmul.msk.bf16.gmra.mxu3 %vm501_vm0, %v2238_v32 }
  0x5d   : > { %1007 = vmatmul.bf16.gmra.mxu2 %v2554_v53 }
  0x64   : > { %1830 = vmatmul.msk.bf16.gmra.mxu0 %vm501_vm0, %v2567_v57  ;;  %1839 = vmatmul.msk.bf16.gmra.mxu1 %vm501_vm0, %v2241_v58 }
  0x65   : > { %2089 = vmatmul.msk.bf16.gmra.mxu3 %vm501_vm0, %v2239_v41  ;;  %v1867_v41 = vld [vmem:[%s2469_s24 + $0x30] sm:$0xf] }
  0x66   : > { %v1868_v45 = vor.u32 %v2202_v42, %v1867_v41 }
  0x6d   : > { %1012 = vmatmul.bf16.gmra.mxu2 %v2579_v62 }
  0x74   : > { %1831 = vmatmul.msk.bf16.gmra.mxu0 %vm501_vm0, %v2583_v63  ;;  %1840 = vmatmul.msk.bf16.gmra.mxu1 %vm501_vm0, %v2242_v0 }
  0x75   : > { %2090 = vmatmul.msk.bf16.gmra.mxu3 %vm501_vm0, %v2240_v49  ;;  %v2213_v49 = vld [vmem:[%s2469_s24 + $0x94] sm:$0xf] }
  0x76   : > { %v2672_v56 = vor.u32 %v2213_v49, %v1917_v50  ;;  %v1891_v49 = vld [vmem:[%s2469_s24 + $0x60] sm:$0xf] }
  0x7d   : > { %1017 = vmatmul.bf16.gmra.mxu2 %v2598_v5 }
  0x84   : > { %1832 = vmatmul.msk.bf16.gmra.mxu0 %vm501_vm0, %v2421_v10  ;;  %903 = vmatmul.bf16.vlgmr.msrb.gmra.mxu1 %v1844_v9  ;;  %v2209_v10 = vld [vmem:[%s2469_s24 + $0x74] sm:$0xf] }
  0x85   : > { %2091 = vmatmul.msk.bf16.gmra.mxu3 %vm501_vm0, %v2241_v58  ;;  %v2628_v25 = vor.u32 %v2209_v10, %v1901_v19  ;;  %v1875_v58 = vld [vmem:[%s2469_s24 + $0x40] sm:$0xf] }
  0x86   : > { %v1876_v61 = vor.u32 %v2204_v59, %v1875_v58 }
  0x8d   : > { %1022 = vmatmul.bf16.gmra.mxu2 %v2608_v13 }
  0x91   : > { %v2613_v17 = vpop.f32.mrf.mxu0  ;;  %v2615_v18 = vpop.f32.mrf.mxu1 }
  0x94   : > { %1833 = vmatmul.msk.bf16.gmra.mxu0 %vm501_vm0, %v2461_v22  ;;  %908 = vmatmul.bf16.gmra.mxu1 %v1852_v16  ;;  %v2200_v22 = vld [vmem:[%s2469_s24 + $0x24] sm:$0xf0] }
  0x95   : > { %2092 = vmatmul.msk.bf16.gmra.mxu3 %vm501_vm0, %v2242_v0  ;;  %v1860_v28 = vor.u32 %v2200_v22, %v1859_v26  ;;  %v2217_v26 = vld [vmem:[%s2469_s24 + $0xb4] sm:$0xf]  ;;  %v1933_v22 = vld [vmem:[%s2469_s24 + $0xb8] sm:$0xf0] }
  0x96   : > { %v2720_v42 = vor.u32 %v2217_v26, %v1933_v22 }
  0x98   : > { %v2622_v21 = vpop.f32.mrf.mxu3 }
  0x99   : > { %v2624_v23 = vpop.f32.mrf.mxu0  ;;  %v2626_v24 = vpop.f32.mrf.mxu1 }
  0x9d   : > { %1027 = vmatmul.bf16.gmra.mxu2 %v2628_v25 }
  0xa0   : > { %v2633_v27 = vpop.f32.mrf.mxu3 }
  0xa1   : > { %v2635_v30 = vpop.f32.mrf.mxu0  ;;  %v2637_v32 = vpop.f32.mrf.mxu1 }
  0xa4   : > { %913 = vmatmul.bf16.gmra.mxu1 %v1860_v28  ;;  %1385 = vmatmul.bf16.vlgmr.msrb.gmra.mxu0 %v1844_v9 }
  0xa5   : > { %1474 = vmatmul.bf16.vlgmr.msrb.gmra.mxu3 %v2487_v29 }
  0xa8   : > { %v2642_v35 = vpop.f32.mrf.mxu3 }
  0xa9   : > { %v2644_v37 = vpop.f32.mrf.mxu0  ;;  %v2646_v38 = vpop.f32.mrf.mxu1 }
  0xad   : > { %1032 = vmatmul.bf16.gmra.mxu2 %v2648_v39 }
  0xb0   : > { %v2653_v43 = vpop.f32.mrf.mxu2  ;;  %v2655_v29 = vpop.f32.mrf.mxu3 }
  0xb1   : > { %v2657_v46 = vpop.f32.mrf.mxu0  ;;  %v2659_v47 = vpop.f32.mrf.mxu1 }
  0xb4   : > { %918 = vmatmul.bf16.gmra.mxu1 %v1868_v45  ;;  %1390 = vmatmul.bf16.gmra.mxu0 %v1852_v16  ;;  %v1884_v16 = vor.u32 %v2206_v14, %v1883_v12  ;;  %v1941_v12 = vld [vmem:[%s2469_s24 + $0xc8] sm:$0xf0] }
  0xb5   : > { %1479 = vmatmul.bf16.gmra.mxu3 %v2507_v36 }
  0xb8   : > { %v2664_v51 = vpop.f32.mrf.mxu2  ;;  %v2666_v52 = vpop.f32.mrf.mxu3 }
  0xb9   : > { %3272 = vst [vmem:[#allocation2_spill] sm:$0xff] %v2666_v52  ;;  %v2668_v54 = vpop.f32.mrf.mxu0  ;;  %v2670_v55 = vpop.f32.mrf.mxu1 }
  0xba   : > { %3273 = vst [vmem:[#allocation3_spill] sm:$0xff] %v2670_v55 }
  0xbd   : > { %1037 = vmatmul.bf16.gmra.mxu2 %v2672_v56 }
  0xc0   : > { %v2677_v60 = vpop.f32.mrf.mxu2  ;;  %v2679_v36 = vpop.f32.mrf.mxu3 }
  0xc1   : > { %3274 = vst [vmem:[#allocation4_spill] sm:$0xff] %v2679_v36  ;;  %v2681_v0 = vpop.f32.mrf.mxu0  ;;  %v2683_v1 = vpop.f32.mrf.mxu1  ;;  %v2214_v36 = vld [vmem:[%s2469_s24 + $0x94] sm:$0xf0] }
  0xc2   : > { %3275 = vst [vmem:[#allocation5_spill] sm:$0xff] %v2683_v1 }
  0xc4   : > { %923 = vmatmul.bf16.gmra.mxu1 %v1876_v61  ;;  %1395 = vmatmul.bf16.gmra.mxu0 %v1860_v28 }
  0xc5   : > { %1484 = vmatmul.bf16.gmra.mxu3 %v2529_v44 }
  0xc8   : > { %v2688_v4 = vpop.f32.mrf.mxu2  ;;  %v2690_v6 = vpop.f32.mrf.mxu3 }
  0xc9   : > { %3276 = vst [vmem:[#allocation6_spill] sm:$0xff] %v2690_v6  ;;  %v2692_v7 = vpop.f32.mrf.mxu0  ;;  %v2694_v9 = vpop.f32.mrf.mxu1 }
  0xca   : > { %3277 = vst [vmem:[#allocation7_spill] sm:$0xff] %v2694_v9 }
  0xcd   : > { %1042 = vmatmul.bf16.gmra.mxu2 %v2696_v11 }
  0xd0   : > { %v2701_v15 = vpop.f32.mrf.mxu2  ;;  %v2703_v44 = vpop.f32.mrf.mxu3 }
  0xd1   : > { %3278 = vst [vmem:[#allocation8_spill] sm:$0xff] %v2703_v44  ;;  %v2705_v10 = vpop.f32.mrf.mxu0  ;;  %v2707_v19 = vpop.f32.mrf.mxu1 }
  0xd2   : > { %3279 = vst [vmem:[#allocation9_spill] sm:$0xff] %v2707_v19 }
  0xd4   : > { %928 = vmatmul.bf16.gmra.mxu1 %v1884_v16  ;;  %1400 = vmatmul.bf16.gmra.mxu0 %v1868_v45  ;;  %v2208_v45 = vld [vmem:[%s2469_s24 + $0x64] sm:$0xf0] }
  0xd5   : > { %1489 = vmatmul.bf16.gmra.mxu3 %v2554_v53  ;;  %v1892_v58 = vor.u32 %v2208_v45, %v1891_v49  ;;  %v2744_v49 = vor.u32 %v2219_v3, %v1941_v12  ;;  %v1899_v45 = vld [vmem:[%s2469_s24 + $0x70] sm:$0xf]  ;;  %v2221_v3 = vld [vmem:[%s2469_s24 + $0xd4] sm:$0xf]  ;;  %v1949_v12 = vld [vmem:[%s2469_s24 + $0xd8] sm:$0xf0] }
  0xd8   : > { %v2712_v28 = vpop.f32.mrf.mxu2  ;;  %v2714_v33 = vpop.f32.mrf.mxu3 }
  0xd9   : > { %3280 = vst [vmem:[#allocation10_spill] sm:$0xff] %v2714_v33  ;;  %v2716_v34 = vpop.f32.mrf.mxu0  ;;  %v2718_v41 = vpop.f32.mrf.mxu1 }
  0xda   : > { %3281 = vst [vmem:[#allocation11_spill] sm:$0xff] %v2718_v41 }
  0xdd   : > { %1047 = vmatmul.bf16.gmra.mxu2 %v2720_v42 }
  0xe0   : > { %v2725_v50 = vpop.f32.mrf.mxu2  ;;  %v2727_v53 = vpop.f32.mrf.mxu3 }
  0xe1   : > { %3282 = vst [vmem:[#allocation12_spill] sm:$0xff] %v2727_v53  ;;  %v2729_v59 = vpop.f32.mrf.mxu0  ;;  %v2731_v2 = vpop.f32.mrf.mxu1 }
  0xe2   : > { %3283 = vst [vmem:[#allocation13_spill] sm:$0xff] %v2731_v2 }
  0xe4   : > { %933 = vmatmul.bf16.gmra.mxu1 %v1892_v58  ;;  %1405 = vmatmul.bf16.gmra.mxu0 %v1876_v61  ;;  %v2210_v61 = vld [vmem:[%s2469_s24 + $0x74] sm:$0xf0] }
  0xe5   : > { %1494 = vmatmul.bf16.gmra.mxu3 %v2579_v62  ;;  %v1900_v41 = vor.u32 %v2210_v61, %v1899_v45  ;;  %v2768_v45 = vor.u32 %v2221_v3, %v1949_v12  ;;  %v1907_v61 = vld [vmem:[%s2469_s24 + $0x80] sm:$0xf] }
  0xe6   : > { %v2784_v3 = vld [vmem:[%s3270_s4] ss:$0 sm:$0xff] }
  0xe8   : > { %v2736_v14 = vpop.f32.mrf.mxu2  ;;  %v2738_v26 = vpop.f32.mrf.mxu3 }
  0xe9   : > { %3284 = vst [vmem:[#allocation14_spill] sm:$0xff] %v2738_v26  ;;  %v2740_v22 = vpop.f32.mrf.mxu0  ;;  %v2742_v53 = vpop.f32.mrf.mxu1 }
  0xea   : > { %3285 = vst [vmem:[#allocation15_spill] sm:$0xff] %v2742_v53 }
  0xed   : > { %1052 = vmatmul.bf16.gmra.mxu2 %v2744_v49 }
  0xf0   : > { %v2749_v2 = vpop.f32.mrf.mxu2  ;;  %v2751_v62 = vpop.f32.mrf.mxu3 }
  0xf1   : > { %3286 = vst [vmem:[#allocation16_spill] sm:$0xff] %v2751_v62  ;;  %v2753_v33 = vpop.f32.mrf.mxu0  ;;  %v2755_v26 = vpop.f32.mrf.mxu1 }
  0xf2   : > { %3287 = vst [vmem:[#allocation17_spill] sm:$0xff] %v2755_v26  ;;  %v2212_v26 = vld [vmem:[%s2469_s24 + $0x84] sm:$0xf0] }
  0xf3   : > { %v1908_v9 = vor.u32 %v2212_v26, %v1907_v61  ;;  %v1957_v26 = vld [vmem:[%s2469_s24 + $0xe8] sm:$0xf0] }
  0xf4   : > { %938 = vmatmul.bf16.gmra.mxu1 %v1900_v41  ;;  %1410 = vmatmul.bf16.gmra.mxu0 %v1884_v16 }
  0xf5   : > { %1499 = vmatmul.bf16.gmra.mxu3 %v2598_v5 }
  0xf8   : > { %v2760_v53 = vpop.f32.mrf.mxu2  ;;  %v2762_v19 = vpop.f32.mrf.mxu3 }
  0xf9   : > { %3288 = vst [vmem:[#allocation18_spill] sm:$0xff] %v2762_v19  ;;  %v2764_v44 = vpop.f32.mrf.mxu0  ;;  %v2766_v62 = vpop.f32.mrf.mxu1 }
  0xfa   : > { %3289 = vst [vmem:[#allocation19_spill] sm:$0xff] %v2766_v62 }
  0xfd   : > { %1057 = vmatmul.bf16.gmra.mxu2 %v2768_v45 }
 0x100   : > { %v2773_v16 = vpop.f32.mrf.mxu2  ;;  %v2775_v5 = vpop.f32.mrf.mxu3 }
 0x101   : > { %3290 = vst [vmem:[#allocation20_spill] sm:$0xff] %v2775_v5  ;;  %v2777_v6 = vpop.f32.mrf.mxu0  ;;  %v904_v19 = vpop.f32.mrf.mxu1 }
 0x102   : > { %v905_v1 = vadd.f32 %v904_v19, %v2613_v17  ;;  %v2223_v19 = vld [vmem:[%s2469_s24 + $0xe4] sm:$0xf] }
 0x103   : > { %v2804_v5 = vor.u32 %v2223_v19, %v1957_v26 }
 0x104   : > { %v994_v12 = vadd.f32 %v2653_v43, %v905_v1  ;;  %943 = vmatmul.bf16.gmra.mxu1 %v1908_v9  ;;  %1415 = vmatmul.bf16.gmra.mxu0 %v1892_v58 }
 0x105   : > { %1504 = vmatmul.bf16.gmra.mxu3 %v2608_v13 }
 0x106   : > { %v1077_v17 = vadd.f32 %v2784_v3, %v994_v12  ;;  %v1915_v12 = vld [vmem:[%s2469_s24 + $0x90] sm:$0xf] }
 0x107   : > { %v1916_v19 = vor.u32 %v2214_v36, %v1915_v12 }
 0x108   : > { %1110 = vst.msk [vmem:[%s2790_s27] sm:$0xff] %vm1109_vm1, %v1077_v17  ;;  %v2798_v43 = vpop.f32.mrf.mxu2  ;;  %v2800_v1 = vpop.f32.mrf.mxu3 }
 0x109   : > { %3291 = vst [vmem:[#allocation21_spill] sm:$0xff] %v2800_v1  ;;  %v2802_v58 = vpop.f32.mrf.mxu0  ;;  %v906_v61 = vpop.f32.mrf.mxu1 }
 0x10a   : > { %v907_v62 = vadd.f32 %v906_v61, %v2624_v23 }
 0x10c   : > { %v996_v13 = vadd.f32 %v2664_v51, %v907_v62 }
 0x10d   : > { %1062 = vmatmul.bf16.gmra.mxu2 %v2804_v5 }
 0x10e   : > { %v1078_v17 = vadd.f32 %v2784_v3, %v996_v13  ;;  %v2225_v13 = vld [vmem:[%s2469_s24 + $0xf4] sm:$0xf] }
 0x110   : > { %1111 = vst.msk [vmem:[%s2790_s27 + $0x8] sm:$0xff] %vm1109_vm1, %v1078_v17  ;;  %v2814_v1 = vpop.f32.mrf.mxu2  ;;  %v2816_v55 = vpop.f32.mrf.mxu3  ;;  %v1965_v17 = vld [vmem:[%s2469_s24 + $0xf8] sm:$0xf0] }
 0x111   : > { %3292 = vst [vmem:[#allocation22_spill] sm:$0xff] %v2816_v55  ;;  %v2818_v26 = vpop.f32.mrf.mxu0  ;;  %v909_v23 = vpop.f32.mrf.mxu1 }
 0x112   : > { %v910_v51 = vadd.f32 %v909_v23, %v2635_v30  ;;  %v2834_v23 = vor.u32 %v2225_v13, %v1965_v17 }
 0x114   : > { %v999_v62 = vadd.f32 %v2677_v60, %v910_v51  ;;  %948 = vmatmul.bf16.gmra.mxu1 %v1916_v19  ;;  %1420 = vmatmul.bf16.gmra.mxu0 %v1900_v41  ;;  %v1923_v51 = vld [vmem:[%s2469_s24 + $0xa0] sm:$0xf] }
 0x115   : > { %1509 = vmatmul.bf16.gmra.mxu3 %v2628_v25 }
 0x116   : > { %v1079_v61 = vadd.f32 %v2784_v3, %v999_v62  ;;  %v2216_v62 = vld [vmem:[%s2469_s24 + $0xa4] sm:$0xf0] }
 0x117   : > { %v1924_v52 = vor.u32 %v2216_v62, %v1923_v51 }
 0x118   : > { %1112 = vst.msk [vmem:[%s2790_s27 + $0x20] sm:$0xff] %vm1109_vm1, %v1079_v61  ;;  %v2828_v36 = vpop.f32.mrf.mxu2  ;;  %v2830_v12 = vpop.f32.mrf.mxu3 }
 0x119   : > { %3293 = vst [vmem:[#allocation23_spill] sm:$0xff] %v2830_v12  ;;  %v2832_v30 = vpop.f32.mrf.mxu0  ;;  %v911_v60 = vpop.f32.mrf.mxu1 }
 0x11a   : > { %v912_v41 = vadd.f32 %v911_v60, %v2644_v37 }
 0x11c   : > { %v1001_v25 = vadd.f32 %v2688_v4, %v912_v41 }
 0x11d   : > { %1067 = vmatmul.bf16.gmra.mxu2 %v2834_v23 }
 0x11e   : > { %v1080_v61 = vadd.f32 %v2784_v3, %v1001_v25 }
 0x120   : > { %1113 = vst.msk [vmem:[%s2790_s27 + $0x28] sm:$0xff] %vm1109_vm1, %v1080_v61  ;;  %v2844_v55 = vpop.f32.mrf.mxu2  ;;  %v2846_v12 = vpop.f32.mrf.mxu3 }
 0x121   : > { %3294 = vst [vmem:[#allocation24_spill] sm:$0xff] %v2846_v12  ;;  %v914_v13 = vpop.f32.mrf.mxu1  ;;  %v2848_v17 = vpop.f32.mrf.mxu0 }
 0x122   : > { %v915_v37 = vadd.f32 %v914_v13, %v2657_v46 }
 0x124   : > { %v1004_v4 = vadd.f32 %v2701_v15, %v915_v37  ;;  %953 = vmatmul.bf16.gmra.mxu1 %v1924_v52  ;;  %1425 = vmatmul.bf16.gmra.mxu0 %v1908_v9  ;;  %v2218_v9 = vld [vmem:[%s2469_s24 + $0xb4] sm:$0xf0] }
 0x125   : > { %1514 = vmatmul.bf16.gmra.mxu3 %v2648_v39  ;;  %v1931_v39 = vld [vmem:[%s2469_s24 + $0xb0] sm:$0xf] }
 0x126   : > { %v1081_v60 = vadd.f32 %v2784_v3, %v1004_v4  ;;  %v1932_v4 = vor.u32 %v2218_v9, %v1931_v39 }
 0x128   : > { %1114 = vst.msk [vmem:[%s2790_s27 + $0x40] sm:$0xff] %vm1109_vm1, %v1081_v60  ;;  %v2856_v41 = vpop.f32.mrf.mxu2  ;;  %v2858_v25 = vpop.f32.mrf.mxu3 }
 0x129   : > { %v916_v51 = vpop.f32.mrf.mxu1  ;;  %v2860_v62 = vpop.f32.mrf.mxu0 }
 0x12a   : > { %v917_v46 = vadd.f32 %v916_v51, %v2668_v54 }
 0x12c   : > { %v1006_v15 = vadd.f32 %v2712_v28, %v917_v46 }
 0x12d   : > { %2077 = vmatmul.msk.bf16.vlgmr.msrb.gmra.mxu2 %vm501_vm0, %v2417_v8 }
 0x12e   : > { %v1082_v61 = vadd.f32 %v2784_v3, %v1006_v15 }
 0x130   : > { %1115 = vst.msk [vmem:[%s2790_s27 + $0x48] sm:$0xff] %vm1109_vm1, %v1082_v61  ;;  %v2871_v13 = vpop.f32.mrf.mxu2  ;;  %v2873_v37 = vpop.f32.mrf.mxu3 }
 0x131   : > { %v919_v60 = vpop.f32.mrf.mxu1  ;;  %v2875_v54 = vpop.f32.mrf.mxu0 }
 0x132   : > { %v920_v28 = vadd.f32 %v919_v60, %v2681_v0 }
 0x134   : > { %v1009_v8 = vadd.f32 %v2725_v50, %v920_v28  ;;  %958 = vmatmul.bf16.gmra.mxu1 %v1932_v4  ;;  %1430 = vmatmul.bf16.gmra.mxu0 %v1916_v19  ;;  %v2220_v19 = vld [vmem:[%s2469_s24 + $0xc4] sm:$0xf0] }
 0x135   : > { %1519 = vmatmul.bf16.gmra.mxu3 %v2672_v56  ;;  %v1939_v56 = vld [vmem:[%s2469_s24 + $0xc0] sm:$0xf] }
 0x136   : > { %v1083_v51 = vadd.f32 %v2784_v3, %v1009_v8  ;;  %v1940_v8 = vor.u32 %v2220_v19, %v1939_v56 }
 0x138   : > { %1116 = vst.msk [vmem:[%s2790_s27 + $0x60] sm:$0xff] %vm1109_vm1, %v1083_v51  ;;  %v2883_v46 = vpop.f32.mrf.mxu2  ;;  %v2885_v15 = vpop.f32.mrf.mxu3 }
 0x139   : > { %v921_v39 = vpop.f32.mrf.mxu1  ;;  %v2887_v9 = vpop.f32.mrf.mxu0 }
 0x13a   : > { %v922_v0 = vadd.f32 %v921_v39, %v2692_v7 }
 0x13c   : > { %v1011_v50 = vadd.f32 %v2736_v14, %v922_v0 }
 0x13d   : > { %2078 = vmatmul.msk.bf16.gmra.mxu2 %vm501_vm0, %v2457_v20 }
 0x13e   : > { %v1084_v61 = vadd.f32 %v2784_v3, %v1011_v50 }
 0x140   : > { %1117 = vst.msk [vmem:[%s2790_s27 + $0x68] sm:$0xff] %vm1109_vm1, %v1084_v61  ;;  %v2898_v60 = vpop.f32.mrf.mxu2  ;;  %v2900_v28 = vpop.f32.mrf.mxu3 }
 0x141   : > { %v924_v51 = vpop.f32.mrf.mxu1  ;;  %v2902_v7 = vpop.f32.mrf.mxu0 }
 0x142   : > { %v925_v14 = vadd.f32 %v924_v51, %v2705_v10 }
 0x144   : > { %v1014_v20 = vadd.f32 %v2749_v2, %v925_v14  ;;  %963 = vmatmul.bf16.gmra.mxu1 %v1940_v8  ;;  %1435 = vmatmul.bf16.gmra.mxu0 %v1924_v52  ;;  %v1947_v52 = vld [vmem:[%s2469_s24 + $0xd0] sm:$0xf] }
 0x145   : > { %1524 = vmatmul.bf16.gmra.mxu3 %v2696_v11  ;;  %v2222_v11 = vld [vmem:[%s2469_s24 + $0xd4] sm:$0xf0] }
 0x146   : > { %v1085_v39 = vadd.f32 %v2784_v3, %v1014_v20  ;;  %v1948_v20 = vor.u32 %v2222_v11, %v1947_v52 }
 0x148   : > { %1118 = vst.msk [vmem:[%s2790_s27 + $0x80] sm:$0xff] %vm1109_vm1, %v1085_v39  ;;  %v2910_v0 = vpop.f32.mrf.mxu2  ;;  %v2912_v50 = vpop.f32.mrf.mxu3 }
 0x149   : > { %v926_v56 = vpop.f32.mrf.mxu1  ;;  %v2914_v19 = vpop.f32.mrf.mxu0 }
 0x14a   : > { %v927_v10 = vadd.f32 %v926_v56, %v2716_v34 }
 0x14c   : > { %v1016_v2 = vadd.f32 %v2760_v53, %v927_v10 }
 0x14d   : > { %2079 = vmatmul.msk.bf16.gmra.mxu2 %vm501_vm0, %v2495_v31 }
 0x14e   : > { %v1086_v61 = vadd.f32 %v2784_v3, %v1016_v2 }
 0x150   : > { %1119 = vst.msk [vmem:[%s2790_s27 + $0x88] sm:$0xff] %vm1109_vm1, %v1086_v61  ;;  %v2925_v51 = vpop.f32.mrf.mxu2  ;;  %v2927_v14 = vpop.f32.mrf.mxu3 }
 0x151   : > { %v929_v39 = vpop.f32.mrf.mxu1  ;;  %v2929_v34 = vpop.f32.mrf.mxu0 }
 0x152   : > { %v930_v53 = vadd.f32 %v929_v39, %v2729_v59 }
 0x154   : > { %v1019_v31 = vadd.f32 %v2773_v16, %v930_v53  ;;  %968 = vmatmul.bf16.gmra.mxu1 %v1948_v20  ;;  %1440 = vmatmul.bf16.gmra.mxu0 %v1932_v4  ;;  %v2224_v4 = vld [vmem:[%s2469_s24 + $0xe4] sm:$0xf0] }
 0x155   : > { %1529 = vmatmul.bf16.gmra.mxu3 %v2720_v42  ;;  %v1955_v42 = vld [vmem:[%s2469_s24 + $0xe0] sm:$0xf] }
 0x156   : > { %v1087_v56 = vadd.f32 %v2784_v3, %v1019_v31  ;;  %v1956_v31 = vor.u32 %v2224_v4, %v1955_v42 }
 0x158   : > { %1120 = vst.msk [vmem:[%s2790_s27 + $0xa0] sm:$0xff] %vm1109_vm1, %v1087_v56  ;;  %v2937_v10 = vpop.f32.mrf.mxu2  ;;  %v2939_v2 = vpop.f32.mrf.mxu3 }
 0x159   : > { %v931_v52 = vpop.f32.mrf.mxu1  ;;  %v2941_v11 = vpop.f32.mrf.mxu0 }
 0x15a   : > { %v932_v59 = vadd.f32 %v931_v52, %v2740_v22 }
 0x15c   : > { %v1021_v16 = vadd.f32 %v2798_v43, %v932_v59 }
 0x15d   : > { %2080 = vmatmul.msk.bf16.gmra.mxu2 %vm501_vm0, %v2520_v40 }
 0x15e   : > { %v1088_v61 = vadd.f32 %v2784_v3, %v1021_v16 }
 0x160   : > { %1121 = vst.msk [vmem:[%s2790_s27 + $0xa8] sm:$0xff] %vm1109_vm1, %v1088_v61  ;;  %v2952_v39 = vpop.f32.mrf.mxu2  ;;  %v2954_v53 = vpop.f32.mrf.mxu3 }
 0x161   : > { %v934_v56 = vpop.f32.mrf.mxu1  ;;  %v2956_v22 = vpop.f32.mrf.mxu0 }
 0x162   : > { %v935_v43 = vadd.f32 %v934_v56, %v2753_v33 }
 0x164   : > { %v1024_v40 = vadd.f32 %v2814_v1, %v935_v43  ;;  %973 = vmatmul.bf16.gmra.mxu1 %v1956_v31  ;;  %1445 = vmatmul.bf16.gmra.mxu0 %v1940_v8  ;;  %v2226_v8 = vld [vmem:[%s2469_s24 + $0xf4] sm:$0xf0] }
 0x165   : > { %1534 = vmatmul.bf16.gmra.mxu3 %v2744_v49  ;;  %v1963_v49 = vld [vmem:[%s2469_s24 + $0xf0] sm:$0xf] }
 0x166   : > { %v1089_v52 = vadd.f32 %v2784_v3, %v1024_v40  ;;  %v1964_v40 = vor.u32 %v2226_v8, %v1963_v49 }
 0x168   : > { %1122 = vst.msk [vmem:[%s2790_s27 + $0xc0] sm:$0xff] %vm1109_vm1, %v1089_v52  ;;  %v2964_v59 = vpop.f32.mrf.mxu2  ;;  %v2966_v16 = vpop.f32.mrf.mxu3 }
 0x169   : > { %v936_v42 = vpop.f32.mrf.mxu1  ;;  %v2968_v4 = vpop.f32.mrf.mxu0 }
 0x16a   : > { %v937_v33 = vadd.f32 %v936_v42, %v2764_v44 }
 0x16c   : > { %v1026_v1 = vadd.f32 %v2828_v36, %v937_v33 }
 0x16d   : > { %2081 = vmatmul.msk.bf16.gmra.mxu2 %vm501_vm0, %v2542_v48 }
 0x16e   : > { %v1090_v61 = vadd.f32 %v2784_v3, %v1026_v1 }
 0x170   : > { %1123 = vst.msk [vmem:[%s2790_s27 + $0xc8] sm:$0xff] %vm1109_vm1, %v1090_v61  ;;  %v2979_v56 = vpop.f32.mrf.mxu2  ;;  %v2981_v43 = vpop.f32.mrf.mxu3 }
 0x171   : > { %v939_v52 = vpop.f32.mrf.mxu1  ;;  %v2983_v12 = vpop.f32.mrf.mxu0 }
 0x172   : > { %v940_v44 = vadd.f32 %v939_v52, %v2777_v6 }
 0x174   : > { %v1029_v48 = vadd.f32 %v2844_v55, %v940_v44  ;;  %978 = vmatmul.bf16.gmra.mxu1 %v1964_v40  ;;  %1450 = vmatmul.bf16.gmra.mxu0 %v1948_v20 }
 0x175   : > { %1539 = vmatmul.bf16.gmra.mxu3 %v2768_v45 }
 0x176   : > { %v1091_v36 = vadd.f32 %v2784_v3, %v1029_v48 }
 0x178   : > { %1124 = vst.msk [vmem:[%s2790_s27 + $0xe0] sm:$0xff] %vm1109_vm1, %v1091_v36  ;;  %v2991_v42 = vpop.f32.mrf.mxu2  ;;  %v2993_v33 = vpop.f32.mrf.mxu3 }
 0x179   : > { %v941_v1 = vpop.f32.mrf.mxu1  ;;  %v2995_v49 = vpop.f32.mrf.mxu0 }
 0x17a   : > { %v942_v6 = vadd.f32 %v941_v1, %v2802_v58 }
 0x17c   : > { %v1031_v55 = vadd.f32 %v2856_v41, %v942_v6 }
 0x17d   : > { %2082 = vmatmul.msk.bf16.gmra.mxu2 %vm501_vm0, %v2567_v57 }
 0x17e   : > { %v1092_v45 = vadd.f32 %v2784_v3, %v1031_v55 }
 0x180   : > { %1125 = vst.msk [vmem:[%s2790_s27 + $0xe8] sm:$0xff] %vm1109_vm1, %v1092_v45  ;;  %v3004_v20 = vpop.f32.mrf.mxu2  ;;  %v3006_v8 = vpop.f32.mrf.mxu3 }
 0x181   : > { %v944_v61 = vpop.f32.mrf.mxu1  ;;  %v3008_v52 = vpop.f32.mrf.mxu0 }
 0x182   : > { %v945_v44 = vadd.f32 %v944_v61, %v2818_v26 }
 0x184   : > { %v1034_v58 = vadd.f32 %v2871_v13, %v945_v44  ;;  %1455 = vmatmul.bf16.gmra.mxu0 %v1956_v31  ;;  %v3041_v44 = vld [vmem:[%s3270_s4 + $0x1] ss:$0 sm:$0xff] }
 0x185   : > { %1544 = vmatmul.bf16.gmra.mxu3 %v2804_v5 }
 0x186   : > { %v1093_v57 = vadd.f32 %v2784_v3, %v1034_v58 }
 0x188   : > { %1126 = vst.msk [vmem:[%s2790_s27 + $0x100] sm:$0xff] %vm1109_vm1, %v1093_v57  ;;  %v3016_v41 = vpop.f32.mrf.mxu2  ;;  %v3018_v48 = vpop.f32.mrf.mxu3 }
 0x189   : > { %v946_v36 = vpop.f32.mrf.mxu1  ;;  %v3020_v1 = vpop.f32.mrf.mxu0 }
 0x18a   : > { %v947_v6 = vadd.f32 %v946_v36, %v2832_v30 }
 0x18c   : > { %v1036_v26 = vadd.f32 %v2883_v46, %v947_v6 }
 0x18d   : > { %2083 = vmatmul.msk.bf16.gmra.mxu2 %vm501_vm0, %v2583_v63 }
 0x18e   : > { %v1094_v5 = vadd.f32 %v2784_v3, %v1036_v26 }
 0x190   : > { %1127 = vst.msk [vmem:[%s2790_s27 + $0x108] sm:$0xff] %vm1109_vm1, %v1094_v5  ;;  %v3029_v13 = vpop.f32.mrf.mxu2  ;;  %v3031_v31 = vpop.f32.mrf.mxu3 }
 0x191   : > { %v949_v55 = vpop.f32.mrf.mxu1  ;;  %v1421_v45 = vpop.f32.mrf.mxu0 }
 0x192   : > { %v950_v61 = vadd.f32 %v949_v55, %v2615_v18  ;;  %v1422_v46 = vadd.f32 %v1421_v45, %v2622_v21 }
 0x194   : > { %v1039_v30 = vadd.f32 %v2898_v60, %v950_v61  ;;  %1460 = vmatmul.bf16.gmra.mxu0 %v1964_v40 }
 0x195   : > { %1549 = vmatmul.bf16.gmra.mxu3 %v2834_v23 }
 0x196   : > { %v1095_v63 = vadd.f32 %v2784_v3, %v1039_v30 }
 0x198   : > { %1128 = vst.msk [vmem:[%s2790_s27 + $0x120] sm:$0xff] %vm1109_vm1, %v1095_v63  ;;  %v3045_v58 = vpop.f32.mrf.mxu2  ;;  %v1510_v18 = vpop.f32.mrf.mxu3 }
 0x199   : > { %v1511_v57 = vadd.f32 %v1510_v18, %v1422_v46  ;;  %v951_v60 = vpop.f32.mrf.mxu1  ;;  %v1423_v40 = vpop.f32.mrf.mxu0 }
 0x19a   : > { %v952_v23 = vadd.f32 %v951_v60, %v2626_v24  ;;  %v1424_v26 = vadd.f32 %v1423_v40, %v2633_v27 }
 0x19b   : > { %v1574_v36 = vadd.f32 %v3041_v44, %v1511_v57 }
 0x19c   : > { %v1041_v21 = vadd.f32 %v2910_v0, %v952_v23 }
 0x19d   : > { %2172 = vst.msk [vmem:[%s2790_s27 + $0xf0] sm:$0xff] %vm1109_vm1, %v1574_v36 }
 0x19e   : > { %v1096_v6 = vadd.f32 %v2784_v3, %v1041_v21 }
 0x1a0   : > { %1129 = vst.msk [vmem:[%s2790_s27 + $0x128] sm:$0xff] %vm1109_vm1, %v1096_v6  ;;  %v3056_v5 = vpop.f32.mrf.mxu2  ;;  %v1512_v55 = vpop.f32.mrf.mxu3 }
 0x1a1   : > { %v1513_v45 = vadd.f32 %v1512_v55, %v1424_v26  ;;  %v954_v61 = vpop.f32.mrf.mxu1  ;;  %v1426_v30 = vpop.f32.mrf.mxu0 }
 0x1a2   : > { %v955_v24 = vadd.f32 %v954_v61, %v2637_v32  ;;  %v1427_v46 = vadd.f32 %v1426_v30, %v2642_v35 }
 0x1a3   : > { %v1575_v0 = vadd.f32 %v3041_v44, %v1513_v45 }
 0x1a4   : > { %v1044_v63 = vadd.f32 %v2925_v51, %v955_v24 }
 0x1a5   : > { %2173 = vst.msk [vmem:[%s2790_s27 + $0xf8] sm:$0xff] %vm1109_vm1, %v1575_v0 }
 0x1a6   : > { %v1097_v27 = vadd.f32 %v2784_v3, %v1044_v63 }
 0x1a8   : > { %1130 = vst.msk [vmem:[%s2790_s27 + $0x140] sm:$0xff] %vm1109_vm1, %v1097_v27  ;;  %v3067_v18 = vpop.f32.mrf.mxu2  ;;  %v1515_v57 = vpop.f32.mrf.mxu3 }
 0x1a9   : > { %v1516_v60 = vadd.f32 %v1515_v57, %v1427_v46  ;;  %v956_v40 = vpop.f32.mrf.mxu1  ;;  %v1428_v23 = vpop.f32.mrf.mxu0 }
 0x1aa   : > { %v957_v32 = vadd.f32 %v956_v40, %v2646_v38  ;;  %v1429_v35 = vadd.f32 %v1428_v23, %v2655_v29  ;;  %v3296_v40 = vld [vmem:[#allocation3_spill] sm:$0xff] }
 0x1ab   : > { %v1576_v36 = vadd.f32 %v3041_v44, %v1516_v60 }
 0x1ac   : > { %v1046_v51 = vadd.f32 %v2937_v10, %v957_v32 }
 0x1ad   : > { %2174 = vst.msk [vmem:[%s2790_s27 + $0x110] sm:$0xff] %vm1109_vm1, %v1576_v36 }
 0x1ae   : > { %v1098_v21 = vadd.f32 %v2784_v3, %v1046_v51 }
 0x1b0   : > { %1131 = vst.msk [vmem:[%s2790_s27 + $0x148] sm:$0xff] %vm1109_vm1, %v1098_v21  ;;  %v1201_v6 = vpop.f32.mrf.mxu2  ;;  %v1517_v26 = vpop.f32.mrf.mxu3 }
 0x1b1   : > { %v1387_v55 = vadd.f32 %v2848_v17, %v1201_v6  ;;  %v1518_v38 = vadd.f32 %v1517_v26, %v1429_v35  ;;  %v959_v45 = vpop.f32.mrf.mxu1  ;;  %v1431_v61 = vpop.f32.mrf.mxu0  ;;  %v3295_v17 = vld [vmem:[#allocation2_spill] sm:$0xff] }
 0x1b2   : > { %v960_v10 = vadd.f32 %v959_v45, %v2659_v47  ;;  %v1432_v27 = vadd.f32 %v1431_v61, %v3295_v17  ;;  %v3298_v61 = vld [vmem:[#allocation5_spill] sm:$0xff] }
 0x1b3   : > { %v1476_v30 = vadd.f32 %v2858_v25, %v1387_v55  ;;  %v1577_v24 = vadd.f32 %v3041_v44, %v1518_v38 }
 0x1b4   : > { %v1049_v0 = vadd.f32 %v2952_v39, %v960_v10 }
 0x1b5   : > { %v1560_v29 = vadd.f32 %v3041_v44, %v1476_v30  ;;  %2175 = vst.msk [vmem:[%s2790_s27 + $0x118] sm:$0xff] %vm1109_vm1, %v1577_v24 }
 0x1b6   : > { %v1099_v63 = vadd.f32 %v2784_v3, %v1049_v0 }
 0x1b7   : > { %2158 = vst.msk [vmem:[%s2790_s27 + $0x10] sm:$0xff] %vm1109_vm1, %v1560_v29 }
 0x1b8   : > { %1132 = vst.msk [vmem:[%s2790_s27 + $0x160] sm:$0xff] %vm1109_vm1, %v1099_v63  ;;  %v1203_v47 = vpop.f32.mrf.mxu2  ;;  %v1520_v25 = vpop.f32.mrf.mxu3 }
 0x1b9   : > { %v1389_v46 = vadd.f32 %v2860_v62, %v1203_v47  ;;  %v1521_v39 = vadd.f32 %v1520_v25, %v1432_v27  ;;  %v961_v57 = vpop.f32.mrf.mxu1  ;;  %v1433_v60 = vpop.f32.mrf.mxu0  ;;  %v3297_v62 = vld [vmem:[#allocation4_spill] sm:$0xff] }
 0x1ba   : > { %v962_v23 = vadd.f32 %v961_v57, %v3296_v40  ;;  %v1434_v6 = vadd.f32 %v1433_v60, %v3297_v62 }
 0x1bb   : > { %v1478_v32 = vadd.f32 %v2873_v37, %v1389_v46  ;;  %v1578_v36 = vadd.f32 %v3041_v44, %v1521_v39  ;;  %v3300_v39 = vld [vmem:[#allocation7_spill] sm:$0xff] }
 0x1bc   : > { %v1051_v51 = vadd.f32 %v2964_v59, %v962_v23 }
 0x1bd   : > { %v1561_v21 = vadd.f32 %v3041_v44, %v1478_v32  ;;  %2176 = vst.msk [vmem:[%s2790_s27 + $0x130] sm:$0xff] %vm1109_vm1, %v1578_v36 }
 0x1be   : > { %v1100_v35 = vadd.f32 %v2784_v3, %v1051_v51 }
 0x1bf   : > { %2159 = vst.msk [vmem:[%s2790_s27 + $0x18] sm:$0xff] %vm1109_vm1, %v1561_v21 }
 0x1c0   : > { %1133 = vst.msk [vmem:[%s2790_s27 + $0x168] sm:$0xff] %vm1109_vm1, %v1100_v35  ;;  %v1206_v37 = vpop.f32.mrf.mxu2  ;;  %v1522_v26 = vpop.f32.mrf.mxu3 }
 0x1c1   : > { %v1392_v55 = vadd.f32 %v2875_v54, %v1206_v37  ;;  %v1523_v59 = vadd.f32 %v1522_v26, %v1434_v6  ;;  %v964_v38 = vpop.f32.mrf.mxu1  ;;  %v1436_v45 = vpop.f32.mrf.mxu0  ;;  %v3299_v54 = vld [vmem:[#allocation6_spill] sm:$0xff]  ;;  %v3302_v37 = vld [vmem:[#allocation9_spill] sm:$0xff] }
 0x1c2   : > { %v965_v10 = vadd.f32 %v964_v38, %v3298_v61  ;;  %v1437_v17 = vadd.f32 %v1436_v45, %v3299_v54 }
 0x1c3   : > { %v1481_v30 = vadd.f32 %v2885_v15, %v1392_v55  ;;  %v1579_v24 = vadd.f32 %v3041_v44, %v1523_v59 }
 0x1c4   : > { %v1054_v0 = vadd.f32 %v2979_v56, %v965_v10 }
 0x1c5   : > { %v1562_v29 = vadd.f32 %v3041_v44, %v1481_v30  ;;  %2177 = vst.msk [vmem:[%s2790_s27 + $0x138] sm:$0xff] %vm1109_vm1, %v1579_v24 }
 0x1c6   : > { %v1101_v63 = vadd.f32 %v2784_v3, %v1054_v0 }
 0x1c7   : > { %2160 = vst.msk [vmem:[%s2790_s27 + $0x30] sm:$0xff] %vm1109_vm1, %v1562_v29 }
 0x1c8   : > { %1134 = vst.msk [vmem:[%s2790_s27 + $0x180] sm:$0xff] %vm1109_vm1, %v1101_v63  ;;  %v1208_v15 = vpop.f32.mrf.mxu2  ;;  %v1525_v27 = vpop.f32.mrf.mxu3  ;;  %v3304_v63 = vld [vmem:[#allocation11_spill] sm:$0xff] }
 0x1c9   : > { %v1394_v47 = vadd.f32 %v2887_v9, %v1208_v15  ;;  %v1526_v56 = vadd.f32 %v1525_v27, %v1437_v17  ;;  %v966_v25 = vpop.f32.mrf.mxu1  ;;  %v1438_v46 = vpop.f32.mrf.mxu0  ;;  %v3301_v9 = vld [vmem:[#allocation8_spill] sm:$0xff] }
 0x1ca   : > { %v967_v57 = vadd.f32 %v966_v25, %v3300_v39  ;;  %v1439_v51 = vadd.f32 %v1438_v46, %v3301_v9 }
 0x1cb   : > { %v1483_v60 = vadd.f32 %v2900_v28, %v1394_v47  ;;  %v1580_v40 = vadd.f32 %v3041_v44, %v1526_v56 }
 0x1cc   : > { %v1056_v23 = vadd.f32 %v2991_v42, %v967_v57 }
 0x1cd   : > { %v1563_v32 = vadd.f32 %v3041_v44, %v1483_v60  ;;  %2178 = vst.msk [vmem:[%s2790_s27 + $0x150] sm:$0xff] %vm1109_vm1, %v1580_v40  ;;  %v3306_v40 = vld [vmem:[#allocation13_spill] sm:$0xff] }
 0x1ce   : > { %v1102_v36 = vadd.f32 %v2784_v3, %v1056_v23 }
 0x1cf   : > { %2161 = vst.msk [vmem:[%s2790_s27 + $0x38] sm:$0xff] %vm1109_vm1, %v1563_v32 }
 0x1d0   : > { %1135 = vst.msk [vmem:[%s2790_s27 + $0x188] sm:$0xff] %vm1109_vm1, %v1102_v36  ;;  %v1211_v28 = vpop.f32.mrf.mxu2  ;;  %v1527_v21 = vpop.f32.mrf.mxu3 }
 0x1d1   : > { %v1397_v35 = vadd.f32 %v2902_v7, %v1211_v28  ;;  %v1528_v42 = vadd.f32 %v1527_v21, %v1439_v51  ;;  %v969_v62 = vpop.f32.mrf.mxu1  ;;  %v1441_v6 = vpop.f32.mrf.mxu0  ;;  %v3303_v7 = vld [vmem:[#allocation10_spill] sm:$0xff] }
 0x1d2   : > { %v970_v26 = vadd.f32 %v969_v62, %v3302_v37  ;;  %v1442_v10 = vadd.f32 %v1441_v6, %v3303_v7  ;;  %v3308_v37 = vld [vmem:[#allocation15_spill] sm:$0xff] }
 0x1d3   : > { %v1486_v55 = vadd.f32 %v2912_v50, %v1397_v35  ;;  %v1581_v59 = vadd.f32 %v3041_v44, %v1528_v42 }
 0x1d4   : > { %v1059_v38 = vadd.f32 %v3004_v20, %v970_v26 }
 0x1d5   : > { %v1564_v45 = vadd.f32 %v3041_v44, %v1486_v55  ;;  %2179 = vst.msk [vmem:[%s2790_s27 + $0x158] sm:$0xff] %vm1109_vm1, %v1581_v59 }
 0x1d6   : > { %v1103_v61 = vadd.f32 %v2784_v3, %v1059_v38 }
 0x1d7   : > { %2162 = vst.msk [vmem:[%s2790_s27 + $0x50] sm:$0xff] %vm1109_vm1, %v1564_v45 }
 0x1d8   : > { %1136 = vst.msk [vmem:[%s2790_s27 + $0x1a0] sm:$0xff] %vm1109_vm1, %v1103_v61  ;;  %v1213_v50 = vpop.f32.mrf.mxu2  ;;  %v1530_v30 = vpop.f32.mrf.mxu3 }
 0x1d9   : > { %v1399_v24 = vadd.f32 %v2914_v19, %v1213_v50  ;;  %v1531_v20 = vadd.f32 %v1530_v30, %v1442_v10  ;;  %v971_v0 = vpop.f32.mrf.mxu1  ;;  %v1443_v29 = vpop.f32.mrf.mxu0  ;;  %v3305_v19 = vld [vmem:[#allocation12_spill] sm:$0xff] }
 0x1da   : > { %v972_v54 = vadd.f32 %v971_v0, %v3304_v63  ;;  %v1444_v25 = vadd.f32 %v1443_v29, %v3305_v19 }
 0x1db   : > { %v1488_v17 = vadd.f32 %v2927_v14, %v1399_v24  ;;  %v1582_v15 = vadd.f32 %v3041_v44, %v1531_v20  ;;  %v3310_v20 = vld [vmem:[#allocation17_spill] sm:$0xff] }
 0x1dc   : > { %v1061_v27 = vadd.f32 %v3016_v41, %v972_v54 }
 0x1dd   : > { %v1565_v47 = vadd.f32 %v3041_v44, %v1488_v17  ;;  %2180 = vst.msk [vmem:[%s2790_s27 + $0x170] sm:$0xff] %vm1109_vm1, %v1582_v15 }
 0x1de   : > { %v1104_v56 = vadd.f32 %v2784_v3, %v1061_v27 }
 0x1df   : > { %2163 = vst.msk [vmem:[%s2790_s27 + $0x58] sm:$0xff] %vm1109_vm1, %v1565_v47 }
 0x1e0   : > { %1137 = vst.msk [vmem:[%s2790_s27 + $0x1a8] sm:$0xff] %vm1109_vm1, %v1104_v56  ;;  %v1216_v14 = vpop.f32.mrf.mxu2  ;;  %v1532_v46 = vpop.f32.mrf.mxu3 }
 0x1e1   : > { %v1402_v39 = vadd.f32 %v2929_v34, %v1216_v14  ;;  %v1533_v41 = vadd.f32 %v1532_v46, %v1444_v25  ;;  %v974_v57 = vpop.f32.mrf.mxu1  ;;  %v1446_v60 = vpop.f32.mrf.mxu0  ;;  %v3307_v34 = vld [vmem:[#allocation14_spill] sm:$0xff]  ;;  %v3312_v14 = vld [vmem:[#allocation19_spill] sm:$0xff] }
 0x1e2   : > { %v975_v23 = vadd.f32 %v974_v57, %v3306_v40  ;;  %v1447_v21 = vadd.f32 %v1446_v60, %v3307_v34  ;;  %v3314_v34 = vld [vmem:[#allocation21_spill] sm:$0xff] }
 0x1e3   : > { %v1491_v32 = vadd.f32 %v2939_v2, %v1402_v39  ;;  %v1583_v36 = vadd.f32 %v3041_v44, %v1533_v41 }
 0x1e4   : > { %v1064_v9 = vadd.f32 %v3029_v13, %v975_v23 }
 0x1e5   : > { %v1566_v51 = vadd.f32 %v3041_v44, %v1491_v32  ;;  %2181 = vst.msk [vmem:[%s2790_s27 + $0x178] sm:$0xff] %vm1109_vm1, %v1583_v36 }
 0x1e6   : > { %v1105_v28 = vadd.f32 %v2784_v3, %v1064_v9 }
 0x1e7   : > { %2164 = vst.msk [vmem:[%s2790_s27 + $0x70] sm:$0xff] %vm1109_vm1, %v1566_v51 }
 0x1e8   : > { %1138 = vst.msk [vmem:[%s2790_s27 + $0x1c0] sm:$0xff] %vm1109_vm1, %v1105_v28  ;;  %v1218_v2 = vpop.f32.mrf.mxu2  ;;  %v1535_v35 = vpop.f32.mrf.mxu3 }
 0x1e9   : > { %v1404_v42 = vadd.f32 %v2941_v11, %v1218_v2  ;;  %v1536_v13 = vadd.f32 %v1535_v35, %v1447_v21  ;;  %v976_v62 = vpop.f32.mrf.mxu1  ;;  %v1448_v6 = vpop.f32.mrf.mxu0  ;;  %v3309_v11 = vld [vmem:[#allocation16_spill] sm:$0xff] }
 0x1ea   : > { %v977_v26 = vadd.f32 %v976_v62, %v3308_v37  ;;  %v1449_v7 = vadd.f32 %v1448_v6, %v3309_v11  ;;  %v3315_v37 = vld [vmem:[#allocation22_spill] sm:$0xff] }
 0x1eb   : > { %v1493_v55 = vadd.f32 %v2954_v53, %v1404_v42  ;;  %v1584_v59 = vadd.f32 %v3041_v44, %v1536_v13 }
 0x1ec   : > { %v1066_v38 = vadd.f32 %v3045_v58, %v977_v26 }
 0x1ed   : > { %v1567_v45 = vadd.f32 %v3041_v44, %v1493_v55  ;;  %2182 = vst.msk [vmem:[%s2790_s27 + $0x190] sm:$0xff] %vm1109_vm1, %v1584_v59 }
 0x1ee   : > { %v1106_v61 = vadd.f32 %v2784_v3, %v1066_v38 }
 0x1ef   : > { %2165 = vst.msk [vmem:[%s2790_s27 + $0x78] sm:$0xff] %vm1109_vm1, %v1567_v45 }
 0x1f0   : > { %1139 = vst.msk [vmem:[%s2790_s27 + $0x1c8] sm:$0xff] %vm1109_vm1, %v1106_v61  ;;  %v1221_v53 = vpop.f32.mrf.mxu2  ;;  %v1537_v10 = vpop.f32.mrf.mxu3 }
 0x1f1   : > { %v1407_v50 = vadd.f32 %v2956_v22, %v1221_v53  ;;  %v1538_v58 = vadd.f32 %v1537_v10, %v1449_v7  ;;  %v979_v30 = vpop.f32.mrf.mxu1  ;;  %v1451_v24 = vpop.f32.mrf.mxu0  ;;  %v3311_v22 = vld [vmem:[#allocation18_spill] sm:$0xff]  ;;  %v3316_v7 = vld [vmem:[#allocation23_spill] sm:$0xff] }
 0x1f2   : > { %v980_v0 = vadd.f32 %v979_v30, %v3310_v20  ;;  %v1452_v27 = vadd.f32 %v1451_v24, %v3311_v22 }
 0x1f3   : > { %v1496_v29 = vadd.f32 %v2966_v16, %v1407_v50  ;;  %v1585_v63 = vadd.f32 %v3041_v44, %v1538_v58 }
 0x1f4   : > { %v1069_v54 = vadd.f32 %v3056_v5, %v980_v0  ;;  %v3317_v0 = vld [vmem:[#allocation24_spill] sm:$0xff] }
 0x1f5   : > { %v1568_v17 = vadd.f32 %v3041_v44, %v1496_v29  ;;  %2183 = vst.msk [vmem:[%s2790_s27 + $0x198] sm:$0xff] %vm1109_vm1, %v1585_v63 }
 0x1f6   : > { %v1107_v15 = vadd.f32 %v2784_v3, %v1069_v54 }
 0x1f7   : > { %2166 = vst.msk [vmem:[%s2790_s27 + $0x90] sm:$0xff] %vm1109_vm1, %v1568_v17 }
 0x1f8   : > { %1140 = vst.msk [vmem:[%s2790_s27 + $0x1e0] sm:$0xff] %vm1109_vm1, %v1107_v15  ;;  %v1223_v16 = vpop.f32.mrf.mxu2  ;;  %v1540_v47 = vpop.f32.mrf.mxu3 }
 0x1f9   : > { %v1409_v56 = vadd.f32 %v2968_v4, %v1223_v16  ;;  %v1541_v5 = vadd.f32 %v1540_v47, %v1452_v27  ;;  %v981_v19 = vpop.f32.mrf.mxu1  ;;  %v1453_v25 = vpop.f32.mrf.mxu0  ;;  %v3313_v4 = vld [vmem:[#allocation20_spill] sm:$0xff] }
 0x1fa   : > { %v982_v46 = vadd.f32 %v981_v19, %v3312_v14  ;;  %v1454_v23 = vadd.f32 %v1453_v25, %v3313_v4 }
 0x1fb   : > { %v1498_v39 = vadd.f32 %v2981_v43, %v1409_v56  ;;  %v1586_v41 = vadd.f32 %v3041_v44, %v1541_v5 }
 0x1fc   : > { %v1071_v57 = vadd.f32 %v3067_v18, %v982_v46 }
 0x1fd   : > { %v1569_v60 = vadd.f32 %v3041_v44, %v1498_v39  ;;  %2184 = vst.msk [vmem:[%s2790_s27 + $0x1b0] sm:$0xff] %vm1109_vm1, %v1586_v41 }
 0x1fe   : > { %v1108_v40 = vadd.f32 %v2784_v3, %v1071_v57 }
 0x1ff   : > { %2167 = vst.msk [vmem:[%s2790_s27 + $0x98] sm:$0xff] %vm1109_vm1, %v1569_v60 }
 0x200   : > { %1141 = vst.msk [vmem:[%s2790_s27 + $0x1e8] sm:$0xff] %vm1109_vm1, %v1108_v40  ;;  %v1226_v32 = vpop.f32.mrf.mxu2  ;;  %v1542_v43 = vpop.f32.mrf.mxu3 }
 0x201   : > { %v1412_v36 = vadd.f32 %v2983_v12, %v1226_v32  ;;  %v1543_v9 = vadd.f32 %v1542_v43, %v1454_v23  ;;  %v1456_v18 = vpop.f32.mrf.mxu0 }
 0x202   : > { %v1457_v21 = vadd.f32 %v1456_v18, %v3314_v34 }
 0x203   : > { %v1501_v51 = vadd.f32 %v2993_v33, %v1412_v36  ;;  %v1587_v28 = vadd.f32 %v3041_v44, %v1543_v9 }
 0x205   : > { %v1570_v3 = vadd.f32 %v3041_v44, %v1501_v51  ;;  %2185 = vst.msk [vmem:[%s2790_s27 + $0x1b8] sm:$0xff] %vm1109_vm1, %v1587_v28 }
 0x207   : > { %2168 = vst.msk [vmem:[%s2790_s27 + $0xb0] sm:$0xff] %vm1109_vm1, %v1570_v3 }
 0x208   : > { %v1228_v2 = vpop.f32.mrf.mxu2  ;;  %v1545_v35 = vpop.f32.mrf.mxu3 }
 0x209   : > { %v1414_v12 = vadd.f32 %v2995_v49, %v1228_v2  ;;  %v1546_v42 = vadd.f32 %v1545_v35, %v1457_v21  ;;  %v1458_v13 = vpop.f32.mrf.mxu0 }
 0x20a   : > { %v1459_v26 = vadd.f32 %v1458_v13, %v3315_v37 }
 0x20b   : > { %v1503_v33 = vadd.f32 %v3006_v8, %v1414_v12  ;;  %v1588_v62 = vadd.f32 %v3041_v44, %v1546_v42 }
 0x20d   : > { %v1571_v6 = vadd.f32 %v3041_v44, %v1503_v33  ;;  %2186 = vst.msk [vmem:[%s2790_s27 + $0x1d0] sm:$0xff] %vm1109_vm1, %v1588_v62 }
 0x20f   : > { %2169 = vst.msk [vmem:[%s2790_s27 + $0xb8] sm:$0xff] %vm1109_vm1, %v1571_v6 }
 0x210   : > { %v1231_v55 = vpop.f32.mrf.mxu2  ;;  %v1547_v59 = vpop.f32.mrf.mxu3 }
 0x211   : > { %v1417_v49 = vadd.f32 %v3008_v52, %v1231_v55  ;;  %v1548_v38 = vadd.f32 %v1547_v59, %v1459_v26  ;;  %v1461_v45 = vpop.f32.mrf.mxu0 }
 0x212   : > { %v1462_v53 = vadd.f32 %v1461_v45, %v3316_v7 }
 0x213   : > { %v1506_v8 = vadd.f32 %v3018_v48, %v1417_v49  ;;  %v1589_v61 = vadd.f32 %v3041_v44, %v1548_v38 }
 0x215   : > { %v1572_v11 = vadd.f32 %v3041_v44, %v1506_v8  ;;  %2187 = vst.msk [vmem:[%s2790_s27 + $0x1d8] sm:$0xff] %vm1109_vm1, %v1589_v61 }
 0x217   : > { %2170 = vst.msk [vmem:[%s2790_s27 + $0xd0] sm:$0xff] %vm1109_vm1, %v1572_v11 }
 0x218   : > { %v1233_v10 = vpop.f32.mrf.mxu2  ;;  %v1550_v50 = vpop.f32.mrf.mxu3 }
 0x219   : > { %v1419_v52 = vadd.f32 %v3020_v1, %v1233_v10  ;;  %v1551_v58 = vadd.f32 %v1550_v50, %v1462_v53  ;;  %v1463_v24 = vpop.f32.mrf.mxu0 }
 0x21a   : > { %v1464_v29 = vadd.f32 %v1463_v24, %v3317_v0 }
 0x21b   : > { %v1508_v30 = vadd.f32 %v3031_v31, %v1419_v52  ;;  %v1590_v48 = vadd.f32 %v3041_v44, %v1551_v58 }
 0x21d   : > { %v1573_v20 = vadd.f32 %v3041_v44, %v1508_v30  ;;  %2188 = vst.msk [vmem:[%s2790_s27 + $0x1f0] sm:$0xff] %vm1109_vm1, %v1590_v48 }
 0x21f   : > { %2171 = vst.msk [vmem:[%s2790_s27 + $0xd8] sm:$0xff] %vm1109_vm1, %v1573_v20 }
 0x220   : > { %v1552_v63 = vpop.f32.mrf.mxu3 }
 0x221   : > { %v1553_v54 = vadd.f32 %v1552_v63, %v1464_v29 }
 0x223   : > { %v1591_v17 = vadd.f32 %v3041_v44, %v1553_v54 }
 0x225   : > { %2189 = vst.msk [vmem:[%s2790_s27 + $0x1f8] sm:$0xff] %vm1109_vm1, %v1591_v17 }
 0x226 PF: > { %s15_s20 = sadd.s32 1, %s2331_s20   ;;  %s3318_s18 = smov %s2327_s19 }
 0x227   : > { %p12_p5 = scmp.ge.s32.totalorder %s15_s20, 4   ;;  %s3319_s19 = smov %s3321_s21 }
 0x229   :  { %14 = sbr.rel (!%p12_p5) target bundleno = 2 (0x2), region = 77 }

// kernel: table_decoder_forward.4
= control target key start
LH: loop header
LB: loop body
LE: loop exit
PB: predicated region body
PF: predicated region fallthrough
CT: control target
= control target key end

     0   :  { %s2390_s18 = smov 0   ;;  %s2392_s19 = smov 0   ;;  %s3420_s0 = inlined_call_operand.vmem [shape: bf16[2,8,8,128], index: 0, kind: input, shape index: {}]   ;;  %s3421_s1 = inlined_call_operand.vmem [shape: bf16[2,8,8,64], index: 1, kind: input, shape index: {}]   ;;  %s3422_s2 = inlined_call_operand.vmem [shape: bf16[2,128,512], index: 2, kind: input, shape index: {}]   ;;  %s3423_s3 = inlined_call_operand.vmem [shape: bf16[2,64,512], index: 3, kind: input, shape index: {}]   ;;  %s3424_s4 = inlined_call_operand.vmem [shape: f32[2,1,512], index: 4, kind: input, shape index: {}]   ;;  %s3425_s5 = inlined_call_operand.vmem [shape: bf16[2,8,2,8,512], index: 5, kind: output, shape index: {}]  }
   0x1   :  { %s2394_s20 = smov 0  }
   0x2 LB: > { %s27_s21 = sadd.s32 1, %s2354_s19  ;;  %p1683_p0 = scmp.ge.s32.totalorder %s2358_s20, 1  ;;  %s2358_s20 = sphi %s2394_s20, %s15_s20   ;;  %s2354_s19 = sphi %s2392_s19, %s3427_s19   ;;  %s2350_s18 = sphi %s2390_s18, %s3426_s18  }
   0x3   : > { %p29_p1 = scmp.ge.s32.totalorder %s27_s21, 2  ;;  %p225_p2 = scmp.lt.s32.totalorder %s2358_s20, 3 }
   0x5   : > { %s3429_s21 = smov (%p29_p1, %s27_s21), 0  ;;  %p226_p3 = pnand %p1683_p0, %p225_p2 }
   0x6   : > { %p272_p4 = scmp.lt.s32.totalorder (!%p226_p3), %s2350_s18, 1 }
   0x7   : > { %229 = sbr.rel (%p226_p3) target bundleno = 419 (0x1a3), region = 40 }
   0xc   : > { %v1756_v0 = vld [vmem:[%s3423_s3 + $0x60] sm:$0xf]  ;;  %v2262_v1 = vld [vmem:[%s3423_s3 + $0x6c] sm:$0xf0]  ;;  %v2260_v2 = vld [vmem:[%s3423_s3 + $0x64] sm:$0xf] }
   0xd   : > { %v1757_v3 = vor.u32 %v2262_v1, %v1756_v0  ;;  %v1758_v4 = vld [vmem:[%s3423_s3 + $0x70] sm:$0xf0]  ;;  %v1764_v5 = vld [vmem:[%s3423_s3 + $0x68] sm:$0xf]  ;;  %v2263_v6 = vld [vmem:[%s3423_s3 + $0x74] sm:$0xf0] }
   0xe   : > { %v1761_v7 = vor.u32 %v2260_v2, %v1758_v4  ;;  %v1765_v8 = vor.u32 %v2263_v6, %v1764_v5  ;;  %v2261_v9 = vld [vmem:[%s3423_s3 + $0x6c] sm:$0xf]  ;;  %v1766_v10 = vld [vmem:[%s3423_s3 + $0x78] sm:$0xf0]  ;;  %v1740_v11 = vld [vmem:[%s3423_s3 + $0x40] sm:$0xf] }
   0xf   : > { %484 = vmatpush.bf16.msra.mxu0 %v1757_v3  ;;  %v1769_v12 = vor.u32 %v2261_v9, %v1766_v10  ;;  %v2258_v13 = vld [vmem:[%s3423_s3 + $0x4c] sm:$0xf0]  ;;  %v2256_v14 = vld [vmem:[%s3423_s3 + $0x44] sm:$0xf]  ;;  %v1742_v15 = vld [vmem:[%s3423_s3 + $0x50] sm:$0xf0] }
  0x10   : > { %513 = vmatpush.bf16.msra.mxu1 %v1761_v7  ;;  %542 = vmatpush.bf16.msra.mxu2 %v1765_v8  ;;  %v1741_v16 = vor.u32 %v2258_v13, %v1740_v11  ;;  %v1745_v17 = vor.u32 %v2256_v14, %v1742_v15  ;;  %v1748_v18 = vld [vmem:[%s3423_s3 + $0x48] sm:$0xf]  ;;  %v2259_v19 = vld [vmem:[%s3423_s3 + $0x54] sm:$0xf0]  ;;  %v2257_v20 = vld [vmem:[%s3423_s3 + $0x4c] sm:$0xf] }
  0x11   : > { %571 = vmatpush.bf16.msra.mxu3 %v1769_v12  ;;  %v1749_v21 = vor.u32 %v2259_v19, %v1748_v18  ;;  %v1750_v22 = vld [vmem:[%s3423_s3 + $0x58] sm:$0xf0]  ;;  %v1724_v23 = vld [vmem:[%s3423_s3 + $0x20] sm:$0xf]  ;;  %v2254_v24 = vld [vmem:[%s3423_s3 + $0x2c] sm:$0xf0] }
  0x12   : > { %v1753_v25 = vor.u32 %v2257_v20, %v1750_v22  ;;  %v2252_v26 = vld [vmem:[%s3423_s3 + $0x24] sm:$0xf]  ;;  %v1726_v27 = vld [vmem:[%s3423_s3 + $0x30] sm:$0xf0]  ;;  %v1732_v28 = vld [vmem:[%s3423_s3 + $0x28] sm:$0xf]  ;;  %v1725_v29 = vor.u32 %v2254_v24, %v1724_v23 }
  0x13   : > { %485 = vmatpush.bf16.msra.mxu0 %v1741_v16  ;;  %v2255_v30 = vld [vmem:[%s3423_s3 + $0x34] sm:$0xf0]  ;;  %v2253_v31 = vld [vmem:[%s3423_s3 + $0x2c] sm:$0xf]  ;;  %v1734_v32 = vld [vmem:[%s3423_s3 + $0x38] sm:$0xf0]  ;;  %v1729_v33 = vor.u32 %v2252_v26, %v1726_v27 }
  0x14   : > { %514 = vmatpush.bf16.msra.mxu1 %v1745_v17  ;;  %543 = vmatpush.bf16.msra.mxu2 %v1749_v21  ;;  %v1733_v34 = vor.u32 %v2255_v30, %v1732_v28  ;;  %v1708_v35 = vld [vmem:[%s3423_s3] sm:$0xf]  ;;  %v2250_v36 = vld [vmem:[%s3423_s3 + $0xc] sm:$0xf0]  ;;  %v2248_v37 = vld [vmem:[%s3423_s3 + $0x4] sm:$0xf]  ;;  %v1737_v38 = vor.u32 %v2253_v31, %v1734_v32 }
  0x15   : > { %572 = vmatpush.bf16.msra.mxu3 %v1753_v25  ;;  %v1710_v39 = vld [vmem:[%s3423_s3 + $0x10] sm:$0xf0]  ;;  %v1716_v40 = vld [vmem:[%s3423_s3 + $0x8] sm:$0xf]  ;;  %v2251_v41 = vld [vmem:[%s3423_s3 + $0x14] sm:$0xf0]  ;;  %v1709_v44 = vor.u32 %v2250_v36, %v1708_v35 }
  0x16   : > { %v2249_v42 = vld [vmem:[%s3423_s3 + $0xc] sm:$0xf]  ;;  %v1718_v43 = vld [vmem:[%s3423_s3 + $0x18] sm:$0xf0]  ;;  %v1924_v45 = vld [vmem:[%s3422_s2 + $0xe8] sm:$0xf]  ;;  %v1713_v48 = vor.u32 %v2248_v37, %v1710_v39  ;;  %v1717_v49 = vor.u32 %v2251_v41, %v1716_v40 }
  0x17   : > { %486 = vmatpush.bf16.msra.mxu0 %v1725_v29  ;;  %v2247_v46 = vld [vmem:[%s3422_s2 + $0xf4] sm:$0xf0]  ;;  %v2245_v47 = vld [vmem:[%s3422_s2 + $0xec] sm:$0xf]  ;;  %s3431_s18 = smov (!%p272_p4, %s2350_s18), 1  ;;  %v1721_v52 = vor.u32 %v2249_v42, %v1718_v43  ;;  %vm467_vm0 = vcmask 523264  }
  0x18   : > { %515 = vmatpush.bf16.msra.mxu1 %v1729_v33  ;;  %544 = vmatpush.bf16.msra.mxu2 %v1733_v34  ;;  %v1926_v50 = vld [vmem:[%s3422_s2 + $0xf8] sm:$0xf0]  ;;  %v1916_v51 = vld [vmem:[%s3422_s2 + $0xe0] sm:$0xf]  ;;  %v1925_v53 = vor.u32 %v2247_v46, %v1924_v45  ;;  %v2246_v54 = vld [vmem:[%s3422_s2 + $0xec] sm:$0xf0] }
  0x19   : > { %573 = vmatpush.bf16.msra.mxu3 %v1737_v38  ;;  %v2244_v55 = vld [vmem:[%s3422_s2 + $0xe4] sm:$0xf]  ;;  %v1918_v56 = vld [vmem:[%s3422_s2 + $0xf0] sm:$0xf0]  ;;  %s2205_s14 = sshll.u32 %s3431_s18, 5  ;;  %v1929_v57 = vor.u32 %v2245_v47, %v1926_v50  ;;  %v1917_v63 = vor.u32 %v2246_v54, %v1916_v51  ;;  %s2207_s6 = sshll.u32 %s3431_s18, 8 }
  0x1a   : > { %v1908_v58 = vld [vmem:[%s3422_s2 + $0xc8] sm:$0xf]  ;;  %v2243_v59 = vld [vmem:[%s3422_s2 + $0xd4] sm:$0xf0]  ;;  %s2546_s25 = scalar_lea.vmem %s3421_s1, %s2205_s14  ;;  %v2241_v60 = vld [vmem:[%s3422_s2 + $0xcc] sm:$0xf]  ;;  %v1921_v0 = vor.u32 %v2244_v55, %v1918_v56  ;;  %s2807_s9 = scalar_lea.vmem %s3420_s0, %s2205_s14 }
  0x1b   : > { %487 = vmatpush.bf16.msra.mxu0 %v1709_v44  ;;  %v1910_v61 = vld [vmem:[%s3422_s2 + $0xd8] sm:$0xf0]  ;;  %v2555_v62 = vld [vmem:[%s2546_s25] sm:$0xff]  ;;  %v1909_v1 = vor.u32 %v2243_v59, %v1908_v58  ;;  %v2242_v3 = vld [vmem:[%s3422_s2 + $0xcc] sm:$0xf0]  ;;  %s3191_s10 = scalar_lea.vmem %s3425_s5, %s2207_s6 }
  0x1c   : > { %516 = vmatpush.bf16.msra.mxu1 %v1713_v48  ;;  %545 = vmatpush.bf16.msra.mxu2 %v1717_v49  ;;  %v1900_v2 = vld [vmem:[%s3422_s2 + $0xc0] sm:$0xf]  ;;  %v2240_v4 = vld [vmem:[%s3422_s2 + $0xc4] sm:$0xf]  ;;  %v1913_v5 = vor.u32 %v2241_v60, %v1910_v61  ;;  %v1902_v6 = vld [vmem:[%s3422_s2 + $0xd0] sm:$0xf0] }
  0x1d   : > { %574 = vmatpush.bf16.msra.mxu3 %v1721_v52  ;;  %v1892_v7 = vld [vmem:[%s3422_s2 + $0xa8] sm:$0xf]  ;;  %v2239_v8 = vld [vmem:[%s3422_s2 + $0xb4] sm:$0xf0]  ;;  %v2237_v9 = vld [vmem:[%s3422_s2 + $0xac] sm:$0xf]  ;;  %v1901_v11 = vor.u32 %v2242_v3, %v1900_v2  ;;  %v1905_v12 = vor.u32 %v2240_v4, %v1902_v6 }
  0x1e   : > { %1770 = vmatmul.msk.bf16.vlgmr.msra.gmra.mxu0 %vm467_vm0, %v2555_v62  ;;  %v1894_v10 = vld [vmem:[%s3422_s2 + $0xb8] sm:$0xf0]  ;;  %v1893_v13 = vor.u32 %v2239_v8, %v1892_v7  ;;  %v1884_v14 = vld [vmem:[%s3422_s2 + $0xa0] sm:$0xf]  ;;  %v2238_v15 = vld [vmem:[%s3422_s2 + $0xac] sm:$0xf0] }
  0x1f   : > { %1774 = vmatmul.msk.bf16.vlgmr.msra.gmra.mxu1 %vm467_vm0, %v2555_v62  ;;  %1778 = vmatmul.msk.bf16.vlgmr.msra.gmra.mxu2 %vm467_vm0, %v2555_v62  ;;  %v2236_v16 = vld [vmem:[%s3422_s2 + $0xa4] sm:$0xf]  ;;  %v1897_v17 = vor.u32 %v2237_v9, %v1894_v10  ;;  %v1886_v18 = vld [vmem:[%s3422_s2 + $0xb0] sm:$0xf0]  ;;  %v1876_v19 = vld [vmem:[%s3422_s2 + $0x88] sm:$0xf]  ;;  %v1885_v23 = vor.u32 %v2238_v15, %v1884_v14 }
  0x20   : > { %838 = vmatpush.bf16.msrb.mxu2 %v1925_v53  ;;  %1782 = vmatmul.msk.bf16.vlgmr.msra.gmra.mxu3 %vm467_vm0, %v2555_v62  ;;  %v2235_v20 = vld [vmem:[%s3422_s2 + $0x94] sm:$0xf0]  ;;  %v2233_v21 = vld [vmem:[%s3422_s2 + $0x8c] sm:$0xf]  ;;  %v1878_v22 = vld [vmem:[%s3422_s2 + $0x98] sm:$0xf0]  ;;  %v1889_v24 = vor.u32 %v2236_v16, %v1886_v18 }
  0x21   : > { %867 = vmatpush.bf16.msrb.mxu3 %v1929_v57  ;;  %780 = vmatpush.bf16.msrb.mxu0 %v1917_v63  ;;  %v1877_v25 = vor.u32 %v2235_v20, %v1876_v19  ;;  %v1868_v26 = vld [vmem:[%s3422_s2 + $0x80] sm:$0xf]  ;;  %v2234_v27 = vld [vmem:[%s3422_s2 + $0x8c] sm:$0xf0]  ;;  %v2232_v28 = vld [vmem:[%s3422_s2 + $0x84] sm:$0xf]  ;;  %v1881_v29 = vor.u32 %v2233_v21, %v1878_v22 }
  0x22   : > { %809 = vmatpush.bf16.msrb.mxu1 %v1921_v0  ;;  %v1870_v30 = vld [vmem:[%s3422_s2 + $0x90] sm:$0xf0]  ;;  %v1860_v31 = vld [vmem:[%s3422_s2 + $0x68] sm:$0xf]  ;;  %v2231_v32 = vld [vmem:[%s3422_s2 + $0x74] sm:$0xf0]  ;;  %v1869_v36 = vor.u32 %v2234_v27, %v1868_v26 }
  0x23   : > { %v2229_v33 = vld [vmem:[%s3422_s2 + $0x6c] sm:$0xf]  ;;  %v1862_v34 = vld [vmem:[%s3422_s2 + $0x78] sm:$0xf0]  ;;  %v1873_v37 = vor.u32 %v2232_v28, %v1870_v30  ;;  %v1861_v38 = vor.u32 %v2231_v32, %v1860_v31  ;;  %v1852_v39 = vld [vmem:[%s3422_s2 + $0x60] sm:$0xf] }
  0x24   : > { %839 = vmatpush.bf16.msrb.mxu2 %v1909_v1  ;;  %v2638_v35 = vld [vmem:[%s2546_s25 + $0x8] sm:$0xff]  ;;  %v2230_v40 = vld [vmem:[%s3422_s2 + $0x6c] sm:$0xf0]  ;;  %v2228_v41 = vld [vmem:[%s3422_s2 + $0x64] sm:$0xf]  ;;  %v1865_v42 = vor.u32 %v2229_v33, %v1862_v34 }
  0x25   : > { %868 = vmatpush.bf16.msrb.mxu3 %v1913_v5  ;;  %781 = vmatpush.bf16.msrb.mxu0 %v1901_v11  ;;  %v1854_v43 = vld [vmem:[%s3422_s2 + $0x70] sm:$0xf0]  ;;  %v1844_v44 = vld [vmem:[%s3422_s2 + $0x48] sm:$0xf]  ;;  %v2227_v45 = vld [vmem:[%s3422_s2 + $0x54] sm:$0xf0]  ;;  %v1853_v48 = vor.u32 %v2230_v40, %v1852_v39 }
  0x26   : > { %810 = vmatpush.bf16.msrb.mxu1 %v1905_v12  ;;  %v2225_v46 = vld [vmem:[%s3422_s2 + $0x4c] sm:$0xf]  ;;  %v1846_v47 = vld [vmem:[%s3422_s2 + $0x58] sm:$0xf0]  ;;  %v1857_v49 = vor.u32 %v2228_v41, %v1854_v43  ;;  %v1845_v50 = vor.u32 %v2227_v45, %v1844_v44  ;;  %v1836_v51 = vld [vmem:[%s3422_s2 + $0x40] sm:$0xf] }
  0x27   : > { %v2226_v52 = vld [vmem:[%s3422_s2 + $0x4c] sm:$0xf0]  ;;  %v1849_v53 = vor.u32 %v2225_v46, %v1846_v47  ;;  %v2224_v54 = vld [vmem:[%s3422_s2 + $0x44] sm:$0xf]  ;;  %v1838_v55 = vld [vmem:[%s3422_s2 + $0x50] sm:$0xf0] }
  0x28   : > { %840 = vmatpush.bf16.msrb.mxu2 %v1893_v13  ;;  %v1837_v56 = vor.u32 %v2226_v52, %v1836_v51  ;;  %v1828_v57 = vld [vmem:[%s3422_s2 + $0x28] sm:$0xf]  ;;  %v2223_v58 = vld [vmem:[%s3422_s2 + $0x34] sm:$0xf0]  ;;  %v2221_v59 = vld [vmem:[%s3422_s2 + $0x2c] sm:$0xf]  ;;  %v1841_v60 = vor.u32 %v2224_v54, %v1838_v55 }
  0x29   : > { %869 = vmatpush.bf16.msrb.mxu3 %v1897_v17  ;;  %782 = vmatpush.bf16.msrb.mxu0 %v1885_v23  ;;  %v1829_v61 = vor.u32 %v2223_v58, %v1828_v57  ;;  %v1830_v63 = vld [vmem:[%s3422_s2 + $0x38] sm:$0xf0]  ;;  %v1820_v0 = vld [vmem:[%s3422_s2 + $0x20] sm:$0xf]  ;;  %v2222_v1 = vld [vmem:[%s3422_s2 + $0x2c] sm:$0xf0] }
  0x2a   : > { %811 = vmatpush.bf16.msrb.mxu1 %v1889_v24  ;;  %v1833_v2 = vor.u32 %v2221_v59, %v1830_v63  ;;  %v2220_v3 = vld [vmem:[%s3422_s2 + $0x24] sm:$0xf]  ;;  %v1822_v4 = vld [vmem:[%s3422_s2 + $0x30] sm:$0xf0]  ;;  %v1812_v5 = vld [vmem:[%s3422_s2 + $0x8] sm:$0xf]  ;;  %v1821_v9 = vor.u32 %v2222_v1, %v1820_v0 }
  0x2b   : > { %v2219_v6 = vld [vmem:[%s3422_s2 + $0x14] sm:$0xf0]  ;;  %v2217_v7 = vld [vmem:[%s3422_s2 + $0xc] sm:$0xf]  ;;  %v1814_v8 = vld [vmem:[%s3422_s2 + $0x18] sm:$0xf0]  ;;  %v1825_v10 = vor.u32 %v2220_v3, %v1822_v4 }
  0x2c   : > { %841 = vmatpush.bf16.msrb.mxu2 %v1877_v25  ;;  %v1813_v11 = vor.u32 %v2219_v6, %v1812_v5  ;;  %v1804_v12 = vld [vmem:[%s3422_s2] sm:$0xf]  ;;  %v2218_v13 = vld [vmem:[%s3422_s2 + $0xc] sm:$0xf0]  ;;  %v1817_v14 = vor.u32 %v2217_v7, %v1814_v8  ;;  %v2216_v15 = vld [vmem:[%s3422_s2 + $0x4] sm:$0xf] }
  0x2d   : > { %870 = vmatpush.bf16.msrb.mxu3 %v1881_v29  ;;  %783 = vmatpush.bf16.msrb.mxu0 %v1869_v36  ;;  %v1806_v16 = vld [vmem:[%s3422_s2 + $0x10] sm:$0xf0]  ;;  %v1805_v17 = vor.u32 %v2218_v13, %v1804_v12  ;;  %v2036_v20 = vld [vmem:[%s3423_s3 + $0xe8] sm:$0xf]  ;;  %v2311_v21 = vld [vmem:[%s3423_s3 + $0xf4] sm:$0xf0] }
  0x2e   : > { %812 = vmatpush.bf16.msrb.mxu1 %v1873_v37  ;;  %1771 = vmatmul.msk.bf16.gmra.mxu0 %vm467_vm0, %v2638_v35  ;;  %v1809_v18 = vor.u32 %v2216_v15, %v1806_v16  ;;  %v2733_v19 = vld [vmem:[%s2546_s25 + $0x10] sm:$0xff]  ;;  %v2309_v22 = vld [vmem:[%s3423_s3 + $0xec] sm:$0xf]  ;;  %v2037_v23 = vor.u32 %v2311_v21, %v2036_v20  ;;  %v2038_v24 = vld [vmem:[%s3423_s3 + $0xf8] sm:$0xf0] }
  0x2f   : > { %1775 = vmatmul.msk.bf16.gmra.mxu1 %vm467_vm0, %v2638_v35  ;;  %1779 = vmatmul.msk.bf16.gmra.mxu2 %vm467_vm0, %v2638_v35  ;;  %v2028_v25 = vld [vmem:[%s3423_s3 + $0xe0] sm:$0xf]  ;;  %v2310_v26 = vld [vmem:[%s3423_s3 + $0xec] sm:$0xf0]  ;;  %v2041_v27 = vor.u32 %v2309_v22, %v2038_v24  ;;  %v2308_v29 = vld [vmem:[%s3423_s3 + $0xe4] sm:$0xf] }
  0x30   : > { %842 = vmatpush.bf16.msrb.mxu2 %v1861_v38  ;;  %1783 = vmatmul.msk.bf16.gmra.mxu3 %vm467_vm0, %v2638_v35  ;;  %v2029_v28 = vor.u32 %v2310_v26, %v2028_v25  ;;  %v2030_v30 = vld [vmem:[%s3423_s3 + $0xf0] sm:$0xf0]  ;;  %v2768_v32 = vld [vmem:[%s2546_s25 + $0x18] sm:$0xff]  ;;  %v2020_v33 = vld [vmem:[%s3423_s3 + $0xc8] sm:$0xf] }
  0x31   : > { %871 = vmatpush.bf16.msrb.mxu3 %v1865_v42  ;;  %784 = vmatpush.bf16.msrb.mxu0 %v1853_v48  ;;  %v2033_v31 = vor.u32 %v2308_v29, %v2030_v30  ;;  %v2307_v34 = vld [vmem:[%s3423_s3 + $0xd4] sm:$0xf0]  ;;  %v2305_v36 = vld [vmem:[%s3423_s3 + $0xcc] sm:$0xf]  ;;  %v2022_v38 = vld [vmem:[%s3423_s3 + $0xd8] sm:$0xf0] }
  0x32   : > { %813 = vmatpush.bf16.msrb.mxu1 %v1857_v49  ;;  %v2021_v37 = vor.u32 %v2307_v34, %v2020_v33  ;;  %v2012_v39 = vld [vmem:[%s3423_s3 + $0xc0] sm:$0xf]  ;;  %v2306_v40 = vld [vmem:[%s3423_s3 + $0xcc] sm:$0xf0]  ;;  %v2025_v41 = vor.u32 %v2305_v36, %v2022_v38  ;;  %v2304_v43 = vld [vmem:[%s3423_s3 + $0xc4] sm:$0xf] }
  0x33   : > { %v2013_v42 = vor.u32 %v2306_v40, %v2012_v39  ;;  %v2014_v44 = vld [vmem:[%s3423_s3 + $0xd0] sm:$0xf0]  ;;  %v2810_v46 = vld [vmem:[%s2807_s9] sm:$0xff]  ;;  %v2004_v47 = vld [vmem:[%s3423_s3 + $0xa8] sm:$0xf] }
  0x34   : > { %843 = vmatpush.bf16.msrb.mxu2 %v1845_v50  ;;  %v2017_v45 = vor.u32 %v2304_v43, %v2014_v44  ;;  %v2303_v48 = vld [vmem:[%s3423_s3 + $0xb4] sm:$0xf0]  ;;  %v2301_v49 = vld [vmem:[%s3423_s3 + $0xac] sm:$0xf]  ;;  %v2006_v51 = vld [vmem:[%s3423_s3 + $0xb8] sm:$0xf0] }
  0x35   : > { %872 = vmatpush.bf16.msrb.mxu3 %v1849_v53  ;;  %785 = vmatpush.bf16.msrb.mxu0 %v1837_v56  ;;  %v2005_v50 = vor.u32 %v2303_v48, %v2004_v47  ;;  %v1996_v52 = vld [vmem:[%s3423_s3 + $0xa0] sm:$0xf]  ;;  %v2302_v53 = vld [vmem:[%s3423_s3 + $0xac] sm:$0xf0]  ;;  %v2009_v54 = vor.u32 %v2301_v49, %v2006_v51  ;;  %v2300_v56 = vld [vmem:[%s3423_s3 + $0xa4] sm:$0xf] }
  0x36   : > { %814 = vmatpush.bf16.msrb.mxu1 %v1841_v60  ;;  %v1997_v55 = vor.u32 %v2302_v53, %v1996_v52  ;;  %v1998_v57 = vld [vmem:[%s3423_s3 + $0xb0] sm:$0xf0]  ;;  %v2841_v59 = vld [vmem:[%s2807_s9 + $0x8] sm:$0xff]  ;;  %v1990_v1 = vld [vmem:[%s3423_s3 + $0x98] sm:$0xf0] }
  0x37   : > { %v2001_v58 = vor.u32 %v2300_v56, %v1998_v57  ;;  %v1988_v60 = vld [vmem:[%s3423_s3 + $0x88] sm:$0xf]  ;;  %v2297_v63 = vld [vmem:[%s3423_s3 + $0x8c] sm:$0xf]  ;;  %v2298_v3 = vld [vmem:[%s3423_s3 + $0x8c] sm:$0xf0] }
  0x38   : > { %844 = vmatpush.bf16.msrb.mxu2 %v1829_v61  ;;  %v2299_v61 = vld [vmem:[%s3423_s3 + $0x94] sm:$0xf0]  ;;  %v1993_v4 = vor.u32 %v2297_v63, %v1990_v1  ;;  %v2296_v6 = vld [vmem:[%s3423_s3 + $0x84] sm:$0xf]  ;;  %v1982_v7 = vld [vmem:[%s3423_s3 + $0x90] sm:$0xf0] }
  0x39   : > { %873 = vmatpush.bf16.msrb.mxu3 %v1833_v2  ;;  %786 = vmatpush.bf16.msrb.mxu0 %v1821_v9  ;;  %v1989_v0 = vor.u32 %v2299_v61, %v1988_v60  ;;  %v1980_v2 = vld [vmem:[%s3423_s3 + $0x80] sm:$0xf]  ;;  %v1985_v8 = vor.u32 %v2296_v6, %v1982_v7  ;;  %v2872_v9 = vld [vmem:[%s2807_s9 + $0x10] sm:$0xff]  ;;  %v2293_v12 = vld [vmem:[%s3422_s2 + $0x1ec] sm:$0xf] }
  0x3a   : > { %815 = vmatpush.bf16.msrb.mxu1 %v1825_v10  ;;  %v1981_v5 = vor.u32 %v2298_v3, %v1980_v2  ;;  %v2180_v10 = vld [vmem:[%s3422_s2 + $0x1e8] sm:$0xf]  ;;  %v2172_v16 = vld [vmem:[%s3422_s2 + $0x1e0] sm:$0xf]  ;;  %v2174_v21 = vld [vmem:[%s3422_s2 + $0x1f0] sm:$0xf0] }
  0x3b   : > { %v2164_v22 = vld [vmem:[%s3422_s2 + $0x1c8] sm:$0xf]  ;;  %v2289_v26 = vld [vmem:[%s3422_s2 + $0x1cc] sm:$0xf]  ;;  %v2915_v29 = vld [vmem:[%s2807_s9 + $0x18] sm:$0xff] }
  0x3c   : > { %845 = vmatpush.bf16.msrb.mxu2 %v1813_v11  ;;  %v2295_v11 = vld [vmem:[%s3422_s2 + $0x1f4] sm:$0xf0]  ;;  %v2156_v30 = vld [vmem:[%s3422_s2 + $0x1c0] sm:$0xf]  ;;  %v2288_v33 = vld [vmem:[%s3422_s2 + $0x1c4] sm:$0xf] }
  0x3d   : > { %874 = vmatpush.bf16.msrb.mxu3 %v1817_v14  ;;  %787 = vmatpush.bf16.msrb.mxu0 %v1805_v17  ;;  %v2181_v13 = vor.u32 %v2295_v11, %v2180_v10  ;;  %v2182_v14 = vld [vmem:[%s3422_s2 + $0x1f8] sm:$0xf0]  ;;  %v2294_v17 = vld [vmem:[%s3422_s2 + $0x1ec] sm:$0xf0]  ;;  %v2158_v36 = vld [vmem:[%s3422_s2 + $0x1d0] sm:$0xf0] }
  0x3e   : > { %816 = vmatpush.bf16.msrb.mxu1 %v1809_v18  ;;  %1772 = vmatmul.msk.bf16.gmra.mxu0 %vm467_vm0, %v2733_v19  ;;  %v2185_v15 = vor.u32 %v2293_v12, %v2182_v14  ;;  %v2292_v18 = vld [vmem:[%s3422_s2 + $0x1e4] sm:$0xf]  ;;  %v2173_v20 = vor.u32 %v2294_v17, %v2172_v16  ;;  %v2148_v38 = vld [vmem:[%s3422_s2 + $0x1a8] sm:$0xf]  ;;  %v2287_v39 = vld [vmem:[%s3422_s2 + $0x1b4] sm:$0xf0] }
  0x3f   : > { %1776 = vmatmul.msk.bf16.gmra.mxu1 %vm467_vm0, %v2733_v19  ;;  %1780 = vmatmul.msk.bf16.gmra.mxu2 %vm467_vm0, %v2733_v19  ;;  %v2177_v24 = vor.u32 %v2292_v18, %v2174_v21  ;;  %v2285_v40 = vld [vmem:[%s3422_s2 + $0x1ac] sm:$0xf]  ;;  %v2140_v44 = vld [vmem:[%s3422_s2 + $0x1a0] sm:$0xf]  ;;  %v2284_v47 = vld [vmem:[%s3422_s2 + $0x1a4] sm:$0xf] }
  0x40   : > { %1784 = vmatmul.msk.bf16.gmra.mxu3 %vm467_vm0, %v2733_v19  ;;  %1162 = vmatpush.bf16.msra.mxu2 %v2037_v23  ;;  %v2291_v23 = vld [vmem:[%s3422_s2 + $0x1d4] sm:$0xf0]  ;;  %v2142_v49 = vld [vmem:[%s3422_s2 + $0x1b0] sm:$0xf0]  ;;  %v2124_v60 = vld [vmem:[%s3422_s2 + $0x180] sm:$0xf] }
  0x41   : > { %1191 = vmatpush.bf16.msra.mxu3 %v2041_v27  ;;  %1104 = vmatpush.bf16.msra.mxu0 %v2029_v28  ;;  %v2165_v25 = vor.u32 %v2291_v23, %v2164_v22  ;;  %v2166_v27 = vld [vmem:[%s3422_s2 + $0x1d8] sm:$0xf0]  ;;  %v2283_v51 = vld [vmem:[%s3422_s2 + $0x194] sm:$0xf0]  ;;  %v2145_v52 = vor.u32 %v2284_v47, %v2142_v49  ;;  %v2282_v61 = vld [vmem:[%s3422_s2 + $0x18c] sm:$0xf0] }
  0x42   : > { %1133 = vmatpush.bf16.msra.mxu1 %v2033_v31  ;;  %v2169_v28 = vor.u32 %v2289_v26, %v2166_v27  ;;  %v2290_v31 = vld [vmem:[%s3422_s2 + $0x1cc] sm:$0xf0]  ;;  %v2280_v63 = vld [vmem:[%s3422_s2 + $0x184] sm:$0xf]  ;;  %v2126_v1 = vld [vmem:[%s3422_s2 + $0x190] sm:$0xf0] }
  0x43   : > { %v2157_v34 = vor.u32 %v2290_v31, %v2156_v30  ;;  %v2129_v2 = vor.u32 %v2280_v63, %v2126_v1  ;;  %v2116_v3 = vld [vmem:[%s3422_s2 + $0x168] sm:$0xf]  ;;  %v2118_v7 = vld [vmem:[%s3422_s2 + $0x178] sm:$0xf0]  ;;  %v2278_v14 = vld [vmem:[%s3422_s2 + $0x16c] sm:$0xf0] }
  0x44   : > { %1163 = vmatpush.bf16.msra.mxu2 %v2021_v37  ;;  %v2161_v37 = vor.u32 %v2288_v33, %v2158_v36  ;;  %v2110_v17 = vld [vmem:[%s3422_s2 + $0x170] sm:$0xf0]  ;;  %v2100_v18 = vld [vmem:[%s3422_s2 + $0x148] sm:$0xf]  ;;  %v2273_v23 = vld [vmem:[%s3422_s2 + $0x14c] sm:$0xf] }
  0x45   : > { %1192 = vmatpush.bf16.msra.mxu3 %v2025_v41  ;;  %1105 = vmatpush.bf16.msra.mxu0 %v2013_v42  ;;  %v2149_v41 = vor.u32 %v2287_v39, %v2148_v38  ;;  %v2150_v42 = vld [vmem:[%s3422_s2 + $0x1b8] sm:$0xf0]  ;;  %v2092_v31 = vld [vmem:[%s3422_s2 + $0x140] sm:$0xf]  ;;  %v2274_v33 = vld [vmem:[%s3422_s2 + $0x14c] sm:$0xf0] }
  0x46   : > { %1134 = vmatpush.bf16.msra.mxu1 %v2017_v45  ;;  %v2153_v43 = vor.u32 %v2285_v40, %v2150_v42  ;;  %v2286_v45 = vld [vmem:[%s3422_s2 + $0x1ac] sm:$0xf0]  ;;  %v2093_v36 = vor.u32 %v2274_v33, %v2092_v31  ;;  %v2084_v39 = vld [vmem:[%s3422_s2 + $0x128] sm:$0xf]  ;;  %v2271_v40 = vld [vmem:[%s3422_s2 + $0x134] sm:$0xf0] }
  0x47   : > { %v2141_v48 = vor.u32 %v2286_v45, %v2140_v44  ;;  %v2085_v42 = vor.u32 %v2271_v40, %v2084_v39  ;;  %v2076_v49 = vld [vmem:[%s3422_s2 + $0x120] sm:$0xf]  ;;  %v2070_v63 = vld [vmem:[%s3422_s2 + $0x118] sm:$0xf0] }
  0x48   : > { %1164 = vmatpush.bf16.msra.mxu2 %v2005_v50  ;;  %v2132_v50 = vld [vmem:[%s3422_s2 + $0x188] sm:$0xf]  ;;  %v896_v33 = vld [vmem:[%s3424_s4] sm:$0xf] }
  0x49   : > { %1193 = vmatpush.bf16.msra.mxu3 %v2009_v54  ;;  %1106 = vmatpush.bf16.msra.mxu0 %v1997_v55  ;;  %v2133_v53 = vor.u32 %v2283_v51, %v2132_v50  ;;  %v2281_v54 = vld [vmem:[%s3422_s2 + $0x18c] sm:$0xf]  ;;  %v2134_v55 = vld [vmem:[%s3422_s2 + $0x198] sm:$0xf0]  ;;  %v2270_v50 = vld [vmem:[%s3422_s2 + $0x12c] sm:$0xf0] }
  0x4a   : > { %1135 = vmatpush.bf16.msra.mxu1 %v2001_v58  ;;  %v2137_v56 = vor.u32 %v2281_v54, %v2134_v55  ;;  %v2268_v51 = vld [vmem:[%s3422_s2 + $0x124] sm:$0xf]  ;;  %v2068_v54 = vld [vmem:[%s3422_s2 + $0x108] sm:$0xf]  ;;  %v2267_v55 = vld [vmem:[%s3422_s2 + $0x114] sm:$0xf0] }
  0x4c   : > { %1165 = vmatpush.bf16.msra.mxu2 %v1989_v0  ;;  %v2125_v0 = vor.u32 %v2282_v61, %v2124_v60  ;;  %v2069_v60 = vor.u32 %v2267_v55, %v2068_v54  ;;  %v2265_v61 = vld [vmem:[%s3422_s2 + $0x10c] sm:$0xf] }
  0x4d   : > { %1194 = vmatpush.bf16.msra.mxu3 %v1993_v4  ;;  %1107 = vmatpush.bf16.msra.mxu0 %v1981_v5  ;;  %v2279_v4 = vld [vmem:[%s3422_s2 + $0x174] sm:$0xf0]  ;;  %v2277_v5 = vld [vmem:[%s3422_s2 + $0x16c] sm:$0xf] }
  0x4e   : > { %1773 = vmatmul.msk.bf16.gmra.mxu0 %vm467_vm0, %v2768_v32  ;;  %1136 = vmatpush.bf16.msra.mxu1 %v1985_v8  ;;  %v2117_v6 = vor.u32 %v2279_v4, %v2116_v3  ;;  %v2121_v8 = vor.u32 %v2277_v5, %v2118_v7  ;;  %v2266_v3 = vld [vmem:[%s3422_s2 + $0x10c] sm:$0xf0]  ;;  %v2264_v4 = vld [vmem:[%s3422_s2 + $0x104] sm:$0xf] }
  0x4f   : > { %1777 = vmatmul.msk.bf16.gmra.mxu1 %vm467_vm0, %v2768_v32  ;;  %1781 = vmatmul.msk.bf16.gmra.mxu2 %vm467_vm0, %v2768_v32 }
  0x50   : > { %1785 = vmatmul.msk.bf16.gmra.mxu3 %vm467_vm0, %v2768_v32 }
  0x5e   : > { %788 = vmatmul.bf16.vlgmr.msrb.gmra.mxu0 %v2810_v46 }
  0x5f   : > { %817 = vmatmul.bf16.vlgmr.msrb.gmra.mxu1 %v2810_v46  ;;  %846 = vmatmul.bf16.vlgmr.msrb.gmra.mxu2 %v2810_v46 }
  0x60   : > { %875 = vmatmul.bf16.vlgmr.msrb.gmra.mxu3 %v2810_v46  ;;  %1434 = vmatpush.bf16.msrb.mxu2 %v2181_v13  ;;  %v2108_v13 = vld [vmem:[%s3422_s2 + $0x160] sm:$0xf] }
  0x61   : > { %1463 = vmatpush.bf16.msrb.mxu3 %v2185_v15  ;;  %1376 = vmatpush.bf16.msrb.mxu0 %v2173_v20  ;;  %v2276_v15 = vld [vmem:[%s3422_s2 + $0x164] sm:$0xf]  ;;  %v2109_v16 = vor.u32 %v2278_v14, %v2108_v13  ;;  %v2275_v20 = vld [vmem:[%s3422_s2 + $0x154] sm:$0xf0] }
  0x62   : > { %1405 = vmatpush.bf16.msrb.mxu1 %v2177_v24  ;;  %v2113_v21 = vor.u32 %v2276_v15, %v2110_v17  ;;  %v2101_v22 = vor.u32 %v2275_v20, %v2100_v18  ;;  %v2102_v24 = vld [vmem:[%s3422_s2 + $0x158] sm:$0xf0] }
  0x64   : > { %1435 = vmatpush.bf16.msrb.mxu2 %v2165_v25  ;;  %v2105_v25 = vor.u32 %v2273_v23, %v2102_v24 }
  0x65   : > { %1464 = vmatpush.bf16.msrb.mxu3 %v2169_v28  ;;  %1377 = vmatpush.bf16.msrb.mxu0 %v2157_v34  ;;  %v2272_v34 = vld [vmem:[%s3422_s2 + $0x144] sm:$0xf] }
  0x66   : > { %1406 = vmatpush.bf16.msrb.mxu1 %v2161_v37  ;;  %v2094_v37 = vld [vmem:[%s3422_s2 + $0x150] sm:$0xf0] }
  0x67   : > { %v2097_v38 = vor.u32 %v2272_v34, %v2094_v37 }
  0x68   : > { %1436 = vmatpush.bf16.msrb.mxu2 %v2149_v41  ;;  %v2269_v41 = vld [vmem:[%s3422_s2 + $0x12c] sm:$0xf] }
  0x69   : > { %1465 = vmatpush.bf16.msrb.mxu3 %v2153_v43  ;;  %1378 = vmatpush.bf16.msrb.mxu0 %v2141_v48  ;;  %v2086_v43 = vld [vmem:[%s3422_s2 + $0x138] sm:$0xf0] }
  0x6a   : > { %1407 = vmatpush.bf16.msrb.mxu1 %v2145_v52  ;;  %v2089_v44 = vor.u32 %v2269_v41, %v2086_v43  ;;  %v2077_v52 = vor.u32 %v2270_v50, %v2076_v49  ;;  %v3196_v49 = vperm.slane %v896_v33, 3 }
  0x6c   : > { %1437 = vmatpush.bf16.msrb.mxu2 %v2133_v53  ;;  %v2078_v53 = vld [vmem:[%s3422_s2 + $0x130] sm:$0xf0] }
  0x6d   : > { %1466 = vmatpush.bf16.msrb.mxu3 %v2137_v56  ;;  %1379 = vmatpush.bf16.msrb.mxu0 %v2125_v0  ;;  %v2081_v56 = vor.u32 %v2268_v51, %v2078_v53  ;;  %v2073_v0 = vor.u32 %v2265_v61, %v2070_v63 }
  0x6e   : > { %793 = vmatmul.bf16.gmra.mxu0 %v2841_v59  ;;  %1408 = vmatpush.bf16.msrb.mxu1 %v2129_v2  ;;  %v2060_v2 = vld [vmem:[%s3422_s2 + $0x100] sm:$0xf] }
  0x6f   : > { %822 = vmatmul.bf16.gmra.mxu1 %v2841_v59  ;;  %851 = vmatmul.bf16.gmra.mxu2 %v2841_v59  ;;  %v2061_v7 = vor.u32 %v2266_v3, %v2060_v2 }
  0x70   : > { %880 = vmatmul.bf16.gmra.mxu3 %v2841_v59  ;;  %1438 = vmatpush.bf16.msrb.mxu2 %v2117_v6 }
  0x71   : > { %1467 = vmatpush.bf16.msrb.mxu3 %v2121_v8  ;;  %1380 = vmatpush.bf16.msrb.mxu0 %v2109_v16  ;;  %v2062_v8 = vld [vmem:[%s3422_s2 + $0x110] sm:$0xf0] }
  0x72   : > { %1409 = vmatpush.bf16.msrb.mxu1 %v2113_v21  ;;  %v2065_v14 = vor.u32 %v2264_v4, %v2062_v8 }
  0x74   : > { %1439 = vmatpush.bf16.msrb.mxu2 %v2101_v22 }
  0x75   : > { %1468 = vmatpush.bf16.msrb.mxu3 %v2105_v25  ;;  %1381 = vmatpush.bf16.msrb.mxu0 %v2093_v36  ;;  %v3174_v36 = vperm.slane %v896_v33, 0 }
  0x76   : > { %1410 = vmatpush.bf16.msrb.mxu1 %v2097_v38 }
  0x78   : > { %1440 = vmatpush.bf16.msrb.mxu2 %v2085_v42 }
  0x79   : > { %1469 = vmatpush.bf16.msrb.mxu3 %v2089_v44  ;;  %1382 = vmatpush.bf16.msrb.mxu0 %v2077_v52 }
  0x7a   : > { %1411 = vmatpush.bf16.msrb.mxu1 %v2081_v56 }
  0x7c   : > { %1441 = vmatpush.bf16.msrb.mxu2 %v2069_v60 }
  0x7d   : > { %1470 = vmatpush.bf16.msrb.mxu3 %v2073_v0  ;;  %1383 = vmatpush.bf16.msrb.mxu0 %v2061_v7 }
  0x7e   : > { %798 = vmatmul.bf16.gmra.mxu0 %v2872_v9  ;;  %1412 = vmatpush.bf16.msrb.mxu1 %v2065_v14 }
  0x7f   : > { %827 = vmatmul.bf16.gmra.mxu1 %v2872_v9  ;;  %856 = vmatmul.bf16.gmra.mxu2 %v2872_v9 }
  0x80   : > { %885 = vmatmul.bf16.gmra.mxu3 %v2872_v9 }
  0x8e   : > { %803 = vmatmul.bf16.gmra.mxu0 %v2915_v29 }
  0x8f   : > { %832 = vmatmul.bf16.gmra.mxu1 %v2915_v29  ;;  %861 = vmatmul.bf16.gmra.mxu2 %v2915_v29 }
  0x90   : > { %890 = vmatmul.bf16.gmra.mxu3 %v2915_v29 }
  0x9b   : > { %v2969_v57 = vpop.f32.mrf.mxu0 }
  0x9c   : > { %v2971_v58 = vpop.f32.mrf.mxu1 }
  0x9e   : > { %2042 = vmatmul.msk.bf16.vlgmr.msra.gmra.mxu0 %vm467_vm0, %v2555_v62 }
  0x9f   : > { %2046 = vmatmul.msk.bf16.vlgmr.msra.gmra.mxu1 %vm467_vm0, %v2555_v62  ;;  %2050 = vmatmul.msk.bf16.vlgmr.msra.gmra.mxu2 %vm467_vm0, %v2555_v62 }
  0xa0   : > { %2054 = vmatmul.msk.bf16.vlgmr.msra.gmra.mxu3 %vm467_vm0, %v2555_v62 }
  0xa2   : > { %v3005_v62 = vpop.f32.mrf.mxu2 }
  0xa3   : > { %v3007_v10 = vpop.f32.mrf.mxu3  ;;  %v3009_v11 = vpop.f32.mrf.mxu0 }
  0xa4   : > { %v3011_v12 = vpop.f32.mrf.mxu1 }
  0xaa   : > { %v3037_v26 = vpop.f32.mrf.mxu2 }
  0xab   : > { %v3039_v27 = vpop.f32.mrf.mxu3  ;;  %v3041_v28 = vpop.f32.mrf.mxu0 }
  0xac   : > { %v3043_v30 = vpop.f32.mrf.mxu1 }
  0xae   : > { %2043 = vmatmul.msk.bf16.gmra.mxu0 %vm467_vm0, %v2638_v35 }
  0xaf   : > { %2047 = vmatmul.msk.bf16.gmra.mxu1 %vm467_vm0, %v2638_v35  ;;  %2051 = vmatmul.msk.bf16.gmra.mxu2 %vm467_vm0, %v2638_v35 }
  0xb0   : > { %2055 = vmatmul.msk.bf16.gmra.mxu3 %vm467_vm0, %v2638_v35 }
  0xb2   : > { %v3077_v35 = vpop.f32.mrf.mxu2 }
  0xb3   : > { %v3079_v45 = vpop.f32.mrf.mxu3  ;;  %v3081_v47 = vpop.f32.mrf.mxu0 }
  0xb4   : > { %v3083_v48 = vpop.f32.mrf.mxu1 }
  0xba   : > { %v3109_v1 = vpop.f32.mrf.mxu2 }
  0xbb   : > { %v3120_v5 = vpop.f32.mrf.mxu3  ;;  %v3122_v6 = vpop.f32.mrf.mxu0 }
  0xbc   : > { %v3127_v13 = vpop.f32.mrf.mxu1 }
  0xbe   : > { %2044 = vmatmul.msk.bf16.gmra.mxu0 %vm467_vm0, %v2733_v19 }
  0xbf   : > { %2048 = vmatmul.msk.bf16.gmra.mxu1 %vm467_vm0, %v2733_v19  ;;  %2052 = vmatmul.msk.bf16.gmra.mxu2 %vm467_vm0, %v2733_v19 }
  0xc0   : > { %2056 = vmatmul.msk.bf16.gmra.mxu3 %vm467_vm0, %v2733_v19 }
  0xc2   : > { %v3137_v15 = vpop.f32.mrf.mxu2 }
  0xc3   : > { %v3139_v16 = vpop.f32.mrf.mxu3  ;;  %v3141_v17 = vpop.f32.mrf.mxu0 }
  0xc4   : > { %v3143_v18 = vpop.f32.mrf.mxu1 }
  0xca   : > { %v3145_v20 = vpop.f32.mrf.mxu2 }
  0xcb   : > { %v3147_v21 = vpop.f32.mrf.mxu3  ;;  %v3149_v22 = vpop.f32.mrf.mxu0 }
  0xcc   : > { %v3151_v23 = vpop.f32.mrf.mxu1 }
  0xce   : > { %2045 = vmatmul.msk.bf16.gmra.mxu0 %vm467_vm0, %v2768_v32 }
  0xcf   : > { %2049 = vmatmul.msk.bf16.gmra.mxu1 %vm467_vm0, %v2768_v32  ;;  %2053 = vmatmul.msk.bf16.gmra.mxu2 %vm467_vm0, %v2768_v32 }
  0xd0   : > { %2057 = vmatmul.msk.bf16.gmra.mxu3 %vm467_vm0, %v2768_v32  ;;  %v3178_v32 = vperm.slane %v896_v33, 1 }
  0xd2   : > { %v3161_v19 = vpop.f32.mrf.mxu2 }
  0xd3   : > { %v3163_v24 = vpop.f32.mrf.mxu3  ;;  %v3165_v25 = vpop.f32.mrf.mxu0 }
  0xd4   : > { %v3167_v31 = vpop.f32.mrf.mxu1 }
  0xda   : > { %v3172_v34 = vpop.f32.mrf.mxu2 }
  0xdb   : > { %v3176_v37 = vpop.f32.mrf.mxu3  ;;  %v789_v38 = vpop.f32.mrf.mxu0 }
  0xdc   : > { %v790_v39 = vadd.f32 %v789_v38, %v2969_v57  ;;  %v818_v40 = vpop.f32.mrf.mxu1 }
  0xdd   : > { %v819_v41 = vadd.f32 %v818_v40, %v2971_v58  ;;  %v3194_v58 = vperm.slane %v896_v33, 2 }
  0xde   : > { %v906_v42 = vadd.f32 %v3174_v36, %v790_v39  ;;  %1384 = vmatmul.bf16.vlgmr.msrb.gmra.mxu0 %v2810_v46 }
  0xdf   : > { %v907_v43 = vadd.f32 %v3178_v32, %v819_v41  ;;  %1413 = vmatmul.bf16.vlgmr.msrb.gmra.mxu1 %v2810_v46  ;;  %1442 = vmatmul.bf16.vlgmr.msrb.gmra.mxu2 %v2810_v46 }
  0xe0   : > { %1471 = vmatmul.bf16.vlgmr.msrb.gmra.mxu3 %v2810_v46 }
  0xe1   : > { %v938_v57 = vpack.c.bf16 %v907_v43, %v906_v42 }
  0xe2   : > { %v847_v44 = vpop.f32.mrf.mxu2 }
  0xe3   : > { %954 = vst [vmem:[%s3191_s10] sm:$0xff] %v938_v57  ;;  %v848_v50 = vadd.f32 %v847_v44, %v3005_v62  ;;  %v876_v51 = vpop.f32.mrf.mxu3  ;;  %v791_v52 = vpop.f32.mrf.mxu0 }
  0xe4   : > { %v877_v53 = vadd.f32 %v876_v51, %v3007_v10  ;;  %v792_v54 = vadd.f32 %v791_v52, %v3009_v11  ;;  %v820_v55 = vpop.f32.mrf.mxu1 }
  0xe5   : > { %v908_v46 = vadd.f32 %v3194_v58, %v848_v50  ;;  %v821_v56 = vadd.f32 %v820_v55, %v3011_v12 }
  0xe6   : > { %v909_v60 = vadd.f32 %v3196_v49, %v877_v53  ;;  %v910_v61 = vadd.f32 %v3174_v36, %v792_v54 }
  0xe7   : > { %v911_v63 = vadd.f32 %v3178_v32, %v821_v56 }
  0xe8   : > { %v939_v0 = vpack.c.bf16 %v909_v60, %v908_v46 }
  0xe9   : > { %v940_v2 = vpack.c.bf16 %v911_v63, %v910_v61 }
  0xea   : > { %955 = vst [vmem:[%s3191_s10 + $0x8] sm:$0xff] %v939_v0  ;;  %v849_v62 = vpop.f32.mrf.mxu2 }
  0xeb   : > { %956 = vst [vmem:[%s3191_s10 + $0x20] sm:$0xff] %v940_v2  ;;  %v850_v10 = vadd.f32 %v849_v62, %v3037_v26  ;;  %v878_v3 = vpop.f32.mrf.mxu3  ;;  %v794_v11 = vpop.f32.mrf.mxu0 }
  0xec   : > { %v879_v4 = vadd.f32 %v878_v3, %v3039_v27  ;;  %v795_v12 = vadd.f32 %v794_v11, %v3041_v28  ;;  %v823_v7 = vpop.f32.mrf.mxu1 }
  0xed   : > { %v912_v8 = vadd.f32 %v3194_v58, %v850_v10  ;;  %v824_v14 = vadd.f32 %v823_v7, %v3043_v30 }
  0xee   : > { %v913_v33 = vadd.f32 %v3196_v49, %v879_v4  ;;  %v914_v38 = vadd.f32 %v3174_v36, %v795_v12  ;;  %1389 = vmatmul.bf16.gmra.mxu0 %v2841_v59 }
  0xef   : > { %v915_v26 = vadd.f32 %v3178_v32, %v824_v14  ;;  %1418 = vmatmul.bf16.gmra.mxu1 %v2841_v59  ;;  %1447 = vmatmul.bf16.gmra.mxu2 %v2841_v59 }
  0xf0   : > { %v941_v27 = vpack.c.bf16 %v913_v33, %v912_v8  ;;  %1476 = vmatmul.bf16.gmra.mxu3 %v2841_v59 }
  0xf1   : > { %v942_v28 = vpack.c.bf16 %v915_v26, %v914_v38 }
  0xf2   : > { %957 = vst [vmem:[%s3191_s10 + $0x28] sm:$0xff] %v941_v27  ;;  %v852_v39 = vpop.f32.mrf.mxu2 }
  0xf3   : > { %958 = vst [vmem:[%s3191_s10 + $0x40] sm:$0xff] %v942_v28  ;;  %v853_v30 = vadd.f32 %v852_v39, %v3077_v35  ;;  %v881_v40 = vpop.f32.mrf.mxu3  ;;  %v796_v41 = vpop.f32.mrf.mxu0 }
  0xf4   : > { %v882_v42 = vadd.f32 %v881_v40, %v3079_v45  ;;  %v797_v43 = vadd.f32 %v796_v41, %v3081_v47  ;;  %v825_v57 = vpop.f32.mrf.mxu1 }
  0xf5   : > { %v916_v44 = vadd.f32 %v3194_v58, %v853_v30  ;;  %v826_v50 = vadd.f32 %v825_v57, %v3083_v48 }
  0xf6   : > { %v917_v59 = vadd.f32 %v3196_v49, %v882_v42  ;;  %v918_v51 = vadd.f32 %v3174_v36, %v797_v43 }
  0xf7   : > { %v919_v52 = vadd.f32 %v3178_v32, %v826_v50 }
  0xf8   : > { %v943_v53 = vpack.c.bf16 %v917_v59, %v916_v44 }
  0xf9   : > { %v944_v54 = vpack.c.bf16 %v919_v52, %v918_v51 }
  0xfa   : > { %959 = vst [vmem:[%s3191_s10 + $0x48] sm:$0xff] %v943_v53  ;;  %v854_v35 = vpop.f32.mrf.mxu2 }
  0xfb   : > { %960 = vst [vmem:[%s3191_s10 + $0x60] sm:$0xff] %v944_v54  ;;  %v855_v45 = vadd.f32 %v854_v35, %v3109_v1  ;;  %v883_v55 = vpop.f32.mrf.mxu3  ;;  %v799_v47 = vpop.f32.mrf.mxu0 }
  0xfc   : > { %v884_v46 = vadd.f32 %v883_v55, %v3120_v5  ;;  %v800_v48 = vadd.f32 %v799_v47, %v3122_v6  ;;  %v828_v56 = vpop.f32.mrf.mxu1 }
  0xfd   : > { %v920_v60 = vadd.f32 %v3194_v58, %v855_v45  ;;  %v829_v61 = vadd.f32 %v828_v56, %v3127_v13 }
  0xfe   : > { %v921_v63 = vadd.f32 %v3196_v49, %v884_v46  ;;  %v922_v0 = vadd.f32 %v3174_v36, %v800_v48  ;;  %1394 = vmatmul.bf16.gmra.mxu0 %v2872_v9 }
  0xff   : > { %v923_v1 = vadd.f32 %v3178_v32, %v829_v61  ;;  %1423 = vmatmul.bf16.gmra.mxu1 %v2872_v9  ;;  %1452 = vmatmul.bf16.gmra.mxu2 %v2872_v9 }
 0x100   : > { %v945_v5 = vpack.c.bf16 %v921_v63, %v920_v60  ;;  %1481 = vmatmul.bf16.gmra.mxu3 %v2872_v9 }
 0x101   : > { %v946_v6 = vpack.c.bf16 %v923_v1, %v922_v0 }
 0x102   : > { %961 = vst [vmem:[%s3191_s10 + $0x68] sm:$0xff] %v945_v5  ;;  %v857_v2 = vpop.f32.mrf.mxu2 }
 0x103   : > { %962 = vst [vmem:[%s3191_s10 + $0x80] sm:$0xff] %v946_v6  ;;  %v858_v13 = vadd.f32 %v857_v2, %v3137_v15  ;;  %v886_v62 = vpop.f32.mrf.mxu3  ;;  %v801_v10 = vpop.f32.mrf.mxu0 }
 0x104   : > { %v887_v3 = vadd.f32 %v886_v62, %v3139_v16  ;;  %v802_v11 = vadd.f32 %v801_v10, %v3141_v17  ;;  %v830_v4 = vpop.f32.mrf.mxu1 }
 0x105   : > { %v924_v12 = vadd.f32 %v3194_v58, %v858_v13  ;;  %v831_v7 = vadd.f32 %v830_v4, %v3143_v18 }
 0x106   : > { %v925_v9 = vadd.f32 %v3196_v49, %v887_v3  ;;  %v926_v8 = vadd.f32 %v3174_v36, %v802_v11 }
 0x107   : > { %v927_v14 = vadd.f32 %v3178_v32, %v831_v7 }
 0x108   : > { %v947_v33 = vpack.c.bf16 %v925_v9, %v924_v12 }
 0x109   : > { %v948_v38 = vpack.c.bf16 %v927_v14, %v926_v8 }
 0x10a   : > { %963 = vst [vmem:[%s3191_s10 + $0x88] sm:$0xff] %v947_v33  ;;  %v859_v15 = vpop.f32.mrf.mxu2 }
 0x10b   : > { %964 = vst [vmem:[%s3191_s10 + $0xa0] sm:$0xff] %v948_v38  ;;  %v860_v16 = vadd.f32 %v859_v15, %v3145_v20  ;;  %v888_v26 = vpop.f32.mrf.mxu3  ;;  %v804_v17 = vpop.f32.mrf.mxu0 }
 0x10c   : > { %v889_v27 = vadd.f32 %v888_v26, %v3147_v21  ;;  %v805_v18 = vadd.f32 %v804_v17, %v3149_v22  ;;  %v833_v28 = vpop.f32.mrf.mxu1 }
 0x10d   : > { %v928_v39 = vadd.f32 %v3194_v58, %v860_v16  ;;  %v834_v30 = vadd.f32 %v833_v28, %v3151_v23  ;;  %v2186_v16 = vld [vmem:[%s3424_s4 + $0x4] sm:$0xf] }
 0x10e   : > { %v929_v40 = vadd.f32 %v3196_v49, %v889_v27  ;;  %v930_v41 = vadd.f32 %v3174_v36, %v805_v18  ;;  %1399 = vmatmul.bf16.gmra.mxu0 %v2915_v29  ;;  %v3331_v17 = vperm.slane %v2186_v16, 0  ;;  %v3335_v28 = vperm.slane %v2186_v16, 1 }
 0x10f   : > { %v931_v20 = vadd.f32 %v3178_v32, %v834_v30  ;;  %1428 = vmatmul.bf16.gmra.mxu1 %v2915_v29  ;;  %1457 = vmatmul.bf16.gmra.mxu2 %v2915_v29 }
 0x110   : > { %v949_v21 = vpack.c.bf16 %v929_v40, %v928_v39  ;;  %1486 = vmatmul.bf16.gmra.mxu3 %v2915_v29 }
 0x111   : > { %v950_v22 = vpack.c.bf16 %v931_v20, %v930_v41 }
 0x112   : > { %965 = vst [vmem:[%s3191_s10 + $0xa8] sm:$0xff] %v949_v21  ;;  %v862_v42 = vpop.f32.mrf.mxu2 }
 0x113   : > { %966 = vst [vmem:[%s3191_s10 + $0xc0] sm:$0xff] %v950_v22  ;;  %v863_v23 = vadd.f32 %v862_v42, %v3161_v19  ;;  %v891_v43 = vpop.f32.mrf.mxu3  ;;  %v806_v57 = vpop.f32.mrf.mxu0  ;;  %v3339_v22 = vperm.slane %v2186_v16, 2 }
 0x114   : > { %v892_v44 = vadd.f32 %v891_v43, %v3163_v24  ;;  %v807_v50 = vadd.f32 %v806_v57, %v3165_v25  ;;  %v835_v59 = vpop.f32.mrf.mxu1 }
 0x115   : > { %v932_v51 = vadd.f32 %v3194_v58, %v863_v23  ;;  %v836_v52 = vadd.f32 %v835_v59, %v3167_v31  ;;  %v3341_v23 = vperm.slane %v2186_v16, 3 }
 0x116   : > { %v933_v29 = vadd.f32 %v3196_v49, %v892_v44  ;;  %v934_v53 = vadd.f32 %v3174_v36, %v807_v50 }
 0x117   : > { %v935_v54 = vadd.f32 %v3178_v32, %v836_v52 }
 0x118   : > { %v951_v35 = vpack.c.bf16 %v933_v29, %v932_v51 }
 0x119   : > { %v952_v19 = vpack.c.bf16 %v935_v54, %v934_v53 }
 0x11a   : > { %967 = vst [vmem:[%s3191_s10 + $0xc8] sm:$0xff] %v951_v35  ;;  %v864_v45 = vpop.f32.mrf.mxu2 }
 0x11b   : > { %968 = vst [vmem:[%s3191_s10 + $0xe0] sm:$0xff] %v952_v19  ;;  %v865_v24 = vadd.f32 %v864_v45, %v3172_v34  ;;  %v893_v25 = vpop.f32.mrf.mxu3  ;;  %v1109_v55 = vpop.f32.mrf.mxu0 }
 0x11c   : > { %v894_v47 = vadd.f32 %v893_v25, %v3176_v37  ;;  %v1138_v46 = vpop.f32.mrf.mxu1 }
 0x11d   : > { %v936_v31 = vadd.f32 %v3194_v58, %v865_v24 }
 0x11e   : > { %v937_v48 = vadd.f32 %v3196_v49, %v894_v47 }
 0x120   : > { %v953_v56 = vpack.c.bf16 %v937_v48, %v936_v31 }
 0x122   : > { %969 = vst [vmem:[%s3191_s10 + $0xe8] sm:$0xff] %v953_v56  ;;  %v1167_v36 = vpop.f32.mrf.mxu2 }
 0x123   : > { %v1196_v32 = vpop.f32.mrf.mxu3  ;;  %v1111_v60 = vpop.f32.mrf.mxu0 }
 0x124   : > { %v1140_v61 = vpop.f32.mrf.mxu1 }
 0x12a   : > { %v1169_v63 = vpop.f32.mrf.mxu2 }
 0x12b   : > { %v1198_v0 = vpop.f32.mrf.mxu3  ;;  %v1114_v1 = vpop.f32.mrf.mxu0 }
 0x12c   : > { %v1143_v5 = vpop.f32.mrf.mxu1 }
 0x132   : > { %v3286_v34 = vpop.f32.mrf.mxu2 }
 0x133   : > { %v3288_v6 = vpop.f32.mrf.mxu3  ;;  %v3290_v37 = vpop.f32.mrf.mxu0 }
 0x134   : > { %v3292_v2 = vpop.f32.mrf.mxu1 }
 0x13a   : > { %v3294_v58 = vpop.f32.mrf.mxu2 }
 0x13b   : > { %v3296_v49 = vpop.f32.mrf.mxu3  ;;  %v3298_v13 = vpop.f32.mrf.mxu0 }
 0x13c   : > { %v3300_v62 = vpop.f32.mrf.mxu1 }
 0x142   : > { %v3302_v10 = vpop.f32.mrf.mxu2 }
 0x143   : > { %v3304_v3 = vpop.f32.mrf.mxu3  ;;  %v3306_v11 = vpop.f32.mrf.mxu0 }
 0x144   : > { %v3308_v4 = vpop.f32.mrf.mxu1 }
 0x14a   : > { %v3310_v12 = vpop.f32.mrf.mxu2 }
 0x14b   : > { %v3312_v7 = vpop.f32.mrf.mxu3  ;;  %v3314_v9 = vpop.f32.mrf.mxu0 }
 0x14c   : > { %v3316_v8 = vpop.f32.mrf.mxu1 }
 0x152   : > { %v3318_v14 = vpop.f32.mrf.mxu2 }
 0x153   : > { %v3320_v33 = vpop.f32.mrf.mxu3  ;;  %v3322_v38 = vpop.f32.mrf.mxu0 }
 0x154   : > { %v3324_v15 = vpop.f32.mrf.mxu1 }
 0x15a   : > { %v3329_v26 = vpop.f32.mrf.mxu2 }
 0x15b   : > { %v3333_v27 = vpop.f32.mrf.mxu3  ;;  %v1385_v18 = vpop.f32.mrf.mxu0 }
 0x15c   : > { %v1386_v39 = vadd.f32 %v1385_v18, %v1109_v55  ;;  %v1414_v30 = vpop.f32.mrf.mxu1 }
 0x15d   : > { %v1415_v40 = vadd.f32 %v1414_v30, %v1138_v46 }
 0x15e   : > { %v1503_v41 = vadd.f32 %v3331_v17, %v1386_v39 }
 0x15f   : > { %v1504_v20 = vadd.f32 %v3335_v28, %v1415_v40 }
 0x161   : > { %v1535_v21 = vpack.c.bf16 %v1504_v20, %v1503_v41 }
 0x162   : > { %v1443_v42 = vpop.f32.mrf.mxu2 }
 0x163   : > { %2187 = vst [vmem:[%s3191_s10 + $0x10] sm:$0xff] %v1535_v21  ;;  %v1444_v43 = vadd.f32 %v1443_v42, %v1167_v36  ;;  %v1472_v57 = vpop.f32.mrf.mxu3  ;;  %v1387_v44 = vpop.f32.mrf.mxu0 }
 0x164   : > { %v1473_v50 = vadd.f32 %v1472_v57, %v1196_v32  ;;  %v1388_v59 = vadd.f32 %v1387_v44, %v1111_v60  ;;  %v1416_v51 = vpop.f32.mrf.mxu1 }
 0x165   : > { %v1505_v52 = vadd.f32 %v3339_v22, %v1444_v43  ;;  %v1417_v29 = vadd.f32 %v1416_v51, %v1140_v61 }
 0x166   : > { %v1506_v53 = vadd.f32 %v3341_v23, %v1473_v50  ;;  %v1507_v54 = vadd.f32 %v3331_v17, %v1388_v59 }
 0x167   : > { %v1508_v35 = vadd.f32 %v3335_v28, %v1417_v29 }
 0x168   : > { %v1536_v19 = vpack.c.bf16 %v1506_v53, %v1505_v52 }
 0x169   : > { %v1537_v45 = vpack.c.bf16 %v1508_v35, %v1507_v54 }
 0x16a   : > { %2188 = vst [vmem:[%s3191_s10 + $0x18] sm:$0xff] %v1536_v19  ;;  %v1445_v24 = vpop.f32.mrf.mxu2 }
 0x16b   : > { %2189 = vst [vmem:[%s3191_s10 + $0x30] sm:$0xff] %v1537_v45  ;;  %v1446_v25 = vadd.f32 %v1445_v24, %v1169_v63  ;;  %v1474_v55 = vpop.f32.mrf.mxu3  ;;  %v1390_v47 = vpop.f32.mrf.mxu0 }
 0x16c   : > { %v1475_v46 = vadd.f32 %v1474_v55, %v1198_v0  ;;  %v1391_v31 = vadd.f32 %v1390_v47, %v1114_v1  ;;  %v1419_v48 = vpop.f32.mrf.mxu1 }
 0x16d   : > { %v1509_v56 = vadd.f32 %v3339_v22, %v1446_v25  ;;  %v1420_v36 = vadd.f32 %v1419_v48, %v1143_v5 }
 0x16e   : > { %v1510_v32 = vadd.f32 %v3341_v23, %v1475_v46  ;;  %v1511_v60 = vadd.f32 %v3331_v17, %v1391_v31 }
 0x16f   : > { %v1512_v61 = vadd.f32 %v3335_v28, %v1420_v36 }
 0x170   : > { %v1538_v16 = vpack.c.bf16 %v1510_v32, %v1509_v56 }
 0x171   : > { %v1539_v18 = vpack.c.bf16 %v1512_v61, %v1511_v60 }
 0x172   : > { %2190 = vst [vmem:[%s3191_s10 + $0x38] sm:$0xff] %v1538_v16  ;;  %v1448_v39 = vpop.f32.mrf.mxu2 }
 0x173   : > { %2191 = vst [vmem:[%s3191_s10 + $0x50] sm:$0xff] %v1539_v18  ;;  %v1449_v63 = vadd.f32 %v1448_v39, %v3286_v34  ;;  %v1477_v0 = vpop.f32.mrf.mxu3  ;;  %v1392_v1 = vpop.f32.mrf.mxu0 }
 0x174   : > { %v1478_v30 = vadd.f32 %v1477_v0, %v3288_v6  ;;  %v1393_v5 = vadd.f32 %v1392_v1, %v3290_v37  ;;  %v1421_v40 = vpop.f32.mrf.mxu1 }
 0x175   : > { %v1513_v41 = vadd.f32 %v3339_v22, %v1449_v63  ;;  %v1422_v20 = vadd.f32 %v1421_v40, %v3292_v2 }
 0x176   : > { %v1514_v21 = vadd.f32 %v3341_v23, %v1478_v30  ;;  %v1515_v42 = vadd.f32 %v3331_v17, %v1393_v5 }
 0x177   : > { %v1516_v43 = vadd.f32 %v3335_v28, %v1422_v20 }
 0x178   : > { %v1540_v57 = vpack.c.bf16 %v1514_v21, %v1513_v41 }
 0x179   : > { %v1541_v44 = vpack.c.bf16 %v1516_v43, %v1515_v42 }
 0x17a   : > { %2192 = vst [vmem:[%s3191_s10 + $0x58] sm:$0xff] %v1540_v57  ;;  %v1450_v34 = vpop.f32.mrf.mxu2 }
 0x17b   : > { %2193 = vst [vmem:[%s3191_s10 + $0x70] sm:$0xff] %v1541_v44  ;;  %v1451_v6 = vadd.f32 %v1450_v34, %v3294_v58  ;;  %v1479_v37 = vpop.f32.mrf.mxu3  ;;  %v1395_v50 = vpop.f32.mrf.mxu0 }
 0x17c   : > { %v1480_v59 = vadd.f32 %v1479_v37, %v3296_v49  ;;  %v1396_v2 = vadd.f32 %v1395_v50, %v3298_v13  ;;  %v1424_v51 = vpop.f32.mrf.mxu1 }
 0x17d   : > { %v1517_v52 = vadd.f32 %v3339_v22, %v1451_v6  ;;  %v1425_v29 = vadd.f32 %v1424_v51, %v3300_v62 }
 0x17e   : > { %v1518_v53 = vadd.f32 %v3341_v23, %v1480_v59  ;;  %v1519_v54 = vadd.f32 %v3331_v17, %v1396_v2 }
 0x17f   : > { %v1520_v35 = vadd.f32 %v3335_v28, %v1425_v29 }
 0x180   : > { %v1542_v19 = vpack.c.bf16 %v1518_v53, %v1517_v52 }
 0x181   : > { %v1543_v45 = vpack.c.bf16 %v1520_v35, %v1519_v54 }
 0x182   : > { %2194 = vst [vmem:[%s3191_s10 + $0x78] sm:$0xff] %v1542_v19  ;;  %v1453_v58 = vpop.f32.mrf.mxu2 }
 0x183   : > { %2195 = vst [vmem:[%s3191_s10 + $0x90] sm:$0xff] %v1543_v45  ;;  %v1454_v49 = vadd.f32 %v1453_v58, %v3302_v10  ;;  %v1482_v13 = vpop.f32.mrf.mxu3  ;;  %v1397_v24 = vpop.f32.mrf.mxu0 }
 0x184   : > { %v1483_v25 = vadd.f32 %v1482_v13, %v3304_v3  ;;  %v1398_v62 = vadd.f32 %v1397_v24, %v3306_v11  ;;  %v1426_v55 = vpop.f32.mrf.mxu1 }
 0x185   : > { %v1521_v47 = vadd.f32 %v3339_v22, %v1454_v49  ;;  %v1427_v46 = vadd.f32 %v1426_v55, %v3308_v4 }
 0x186   : > { %v1522_v31 = vadd.f32 %v3341_v23, %v1483_v25  ;;  %v1523_v48 = vadd.f32 %v3331_v17, %v1398_v62 }
 0x187   : > { %v1524_v56 = vadd.f32 %v3335_v28, %v1427_v46 }
 0x188   : > { %v1544_v36 = vpack.c.bf16 %v1522_v31, %v1521_v47 }
 0x189   : > { %v1545_v32 = vpack.c.bf16 %v1524_v56, %v1523_v48 }
 0x18a   : > { %2196 = vst [vmem:[%s3191_s10 + $0x98] sm:$0xff] %v1544_v36  ;;  %v1455_v10 = vpop.f32.mrf.mxu2 }
 0x18b   : > { %2197 = vst [vmem:[%s3191_s10 + $0xb0] sm:$0xff] %v1545_v32  ;;  %v1456_v3 = vadd.f32 %v1455_v10, %v3310_v12  ;;  %v1484_v11 = vpop.f32.mrf.mxu3  ;;  %v1400_v60 = vpop.f32.mrf.mxu0 }
 0x18c   : > { %v1485_v61 = vadd.f32 %v1484_v11, %v3312_v7  ;;  %v1401_v4 = vadd.f32 %v1400_v60, %v3314_v9  ;;  %v1429_v16 = vpop.f32.mrf.mxu1 }
 0x18d   : > { %v1525_v18 = vadd.f32 %v3339_v22, %v1456_v3  ;;  %v1430_v39 = vadd.f32 %v1429_v16, %v3316_v8 }
 0x18e   : > { %v1526_v63 = vadd.f32 %v3341_v23, %v1485_v61  ;;  %v1527_v0 = vadd.f32 %v3331_v17, %v1401_v4 }
 0x18f   : > { %v1528_v1 = vadd.f32 %v3335_v28, %v1430_v39 }
 0x190   : > { %v1546_v30 = vpack.c.bf16 %v1526_v63, %v1525_v18 }
 0x191   : > { %v1547_v5 = vpack.c.bf16 %v1528_v1, %v1527_v0 }
 0x192   : > { %2198 = vst [vmem:[%s3191_s10 + $0xb8] sm:$0xff] %v1546_v30  ;;  %v1458_v12 = vpop.f32.mrf.mxu2 }
 0x193   : > { %2199 = vst [vmem:[%s3191_s10 + $0xd0] sm:$0xff] %v1547_v5  ;;  %v1459_v7 = vadd.f32 %v1458_v12, %v3318_v14  ;;  %v1487_v9 = vpop.f32.mrf.mxu3  ;;  %v1402_v40 = vpop.f32.mrf.mxu0 }
 0x194   : > { %v1488_v41 = vadd.f32 %v1487_v9, %v3320_v33  ;;  %v1403_v8 = vadd.f32 %v1402_v40, %v3322_v38  ;;  %v1431_v20 = vpop.f32.mrf.mxu1 }
 0x195   : > { %v1529_v21 = vadd.f32 %v3339_v22, %v1459_v7  ;;  %v1432_v42 = vadd.f32 %v1431_v20, %v3324_v15 }
 0x196   : > { %v1530_v43 = vadd.f32 %v3341_v23, %v1488_v41  ;;  %v1531_v57 = vadd.f32 %v3331_v17, %v1403_v8 }
 0x197   : > { %v1532_v44 = vadd.f32 %v3335_v28, %v1432_v42 }
 0x198   : > { %v1548_v34 = vpack.c.bf16 %v1530_v43, %v1529_v21 }
 0x199   : > { %v1549_v14 = vpack.c.bf16 %v1532_v44, %v1531_v57 }
 0x19a   : > { %2200 = vst [vmem:[%s3191_s10 + $0xd8] sm:$0xff] %v1548_v34  ;;  %v1460_v6 = vpop.f32.mrf.mxu2 }
 0x19b   : > { %2201 = vst [vmem:[%s3191_s10 + $0xf0] sm:$0xff] %v1549_v14  ;;  %v1461_v33 = vadd.f32 %v1460_v6, %v3329_v26  ;;  %v1489_v38 = vpop.f32.mrf.mxu3 }
 0x19c   : > { %v1490_v37 = vadd.f32 %v1489_v38, %v3333_v27 }
 0x19d   : > { %v1533_v50 = vadd.f32 %v3339_v22, %v1461_v33 }
 0x19e   : > { %v1534_v15 = vadd.f32 %v3341_v23, %v1490_v37 }
 0x1a0   : > { %v1550_v59 = vpack.c.bf16 %v1534_v15, %v1533_v50 }
 0x1a2   : > { %2202 = vst [vmem:[%s3191_s10 + $0xf8] sm:$0xff] %v1550_v59 }
 0x1a3 PF: > { %s15_s20 = sadd.s32 1, %s2358_s20   ;;  %s3426_s18 = smov %s2354_s19 }
 0x1a4   : > { %p12_p5 = scmp.ge.s32.totalorder %s15_s20, 4   ;;  %s3427_s19 = smov %s3429_s21 }
 0x1a6   :  { %14 = sbr.rel (!%p12_p5) target bundleno = 2 (0x2), region = 77 }

</bundles_post_ra>
